<compile_context>
chip_gen: v5e
topology: v5e:2x2
jax: 0.10.0
libtpu: 0.0.40
codegen_flags: <defaults>
</compile_context>

<pallas_src>
import functools

import jax
import jax.numpy as jnp
from jax.experimental import pallas as pl
from jax.experimental.pallas import tpu as pltpu


def _fam_conv_kernel(w_ref, b_ref, x1_ref, x2_ref, o_ref, pad_ref, *, C, H, W, Cout):
    """3x3 / stride-1 / pad-1 conv over cat([x1, x2], channel) for one batch element.

    w_ref   : SMEM (Cout*2C*9,)  flattened PyTorch OIHW weights
    b_ref   : SMEM (Cout,)       bias
    x1_ref  : VMEM (1, C, H, W)
    x2_ref  : VMEM (1, C, H, W)
    o_ref   : VMEM (1, Cout, H, W)
    pad_ref : VMEM scratch (2C, H+2, W+2) — zero-padded concatenated input planes
    """
    Cin = 2 * C

    # Build the zero-padded concatenated input in VMEM (borders stay zero).
    pad_ref[...] = jnp.zeros_like(pad_ref)
    pad_ref[0:C, 1:H + 1, 1:W + 1] = x1_ref[0]
    pad_ref[C:Cin, 1:H + 1, 1:W + 1] = x2_ref[0]

    # One f32 accumulator per output channel (Cout is small -> stays in vregs).
    accs = [jnp.zeros((H, W), jnp.float32) for _ in range(Cout)]

    for ci in range(Cin):
        # Load the 9 shifted (H, W) taps of this input plane once and reuse
        # them for every output channel (avoids redundant VMEM loads).
        taps = [[pad_ref[ci, kh:kh + H, kw:kw + W] for kw in range(3)]
                for kh in range(3)]
        for co in range(Cout):
            base = (co * Cin + ci) * 9
            for kh in range(3):
                for kw in range(3):
                    wv = w_ref[base + 3 * kh + kw]            # scalar from SMEM
                    accs[co] = accs[co] + taps[kh][kw] * wv   # VPU MAC

    for co in range(Cout):
        o_ref[0, co] = (accs[co] + b_ref[co]).astype(o_ref.dtype)


def fam_forward(x1_nchw, x2_nchw, weight, bias):
    """FAM forward.

    x1_nchw, x2_nchw : (B, C, H, W) float32   (PyTorch layout, unchanged)
    weight           : (Cout, 2C, 3, 3) float32 (PyTorch OIHW conv layout)
    bias             : (Cout,) float32
    returns          : (B, Cout, H, W) float32
    """
    B, C, H, W = x1_nchw.shape
    Cin = 2 * C
    Cout = weight.shape[0]

    # Tiny parameter reshapes only — no full-tensor HBM glue passes.
    w_flat = weight.reshape(Cout * Cin * 9).astype(jnp.float32)
    b = bias.astype(jnp.float32)

    kernel = functools.partial(_fam_conv_kernel, C=C, H=H, W=W, Cout=Cout)

    flops = int(2 * B * Cout * Cin * 9 * H * W)
    bytes_accessed = int(4 * (2 * B * C * H * W + B * Cout * H * W)
                         + 4 * (Cout * Cin * 9 + Cout))

    return pl.pallas_call(
        kernel,
        out_shape=jax.ShapeDtypeStruct((B, Cout, H, W), jnp.float32),
        grid=(B,),
        in_specs=[
            pl.BlockSpec(memory_space=pltpu.MemorySpace.SMEM),        # weights (scalars)
            pl.BlockSpec(memory_space=pltpu.MemorySpace.SMEM),        # bias    (scalars)
            pl.BlockSpec((1, C, H, W), lambda b_: (b_, 0, 0, 0)),     # x1
            pl.BlockSpec((1, C, H, W), lambda b_: (b_, 0, 0, 0)),     # x2
        ],
        out_specs=pl.BlockSpec((1, Cout, H, W), lambda b_: (b_, 0, 0, 0)),
        scratch_shapes=[pltpu.VMEM((Cin, H + 2, W + 2), jnp.float32)],
        compiler_params=pltpu.CompilerParams(
            dimension_semantics=("parallel",),
            vmem_limit_bytes=48 * 1024 * 1024,
        ),
        cost_estimate=pl.CostEstimate(
            flops=flops, transcendentals=0, bytes_accessed=bytes_accessed),
    )(w_flat, b, x1_nchw, x2_nchw)


def _reference_conv(x1_nchw, x2_nchw, weight, bias):
    x = jnp.concatenate([x1_nchw, x2_nchw], axis=1)
    out = jax.lax.conv_general_dilated(
        x, weight,
        window_strides=(1, 1),
        padding=((1, 1), (1, 1)),
        dimension_numbers=("NCHW", "OIHW", "NCHW"),
        precision=jax.lax.Precision.HIGHEST,
    )
    return out + bias[None, :, None, None]


if __name__ == "__main__":
    B, C, H, W = 2, 4, 16, 16
    Cin, Cout = 2 * C, C

    key = jax.random.PRNGKey(0)
    k1, k2, kw, kb = jax.random.split(key, 4)

    x1 = jax.random.normal(k1, (B, C, H, W), dtype=jnp.float32)
    x2 = jax.random.normal(k2, (B, C, H, W), dtype=jnp.float32)

    # Deterministic init mimicking PyTorch Conv2d defaults:
    # kaiming_uniform(a=sqrt(5)) -> U(-1/sqrt(fan_in), 1/sqrt(fan_in)); same bound for bias.
    fan_in = Cin * 3 * 3
    bound = 1.0 / (fan_in ** 0.5)
    weight = jax.random.uniform(kw, (Cout, Cin, 3, 3), jnp.float32, -bound, bound)
    bias = jax.random.uniform(kb, (Cout,), jnp.float32, -bound, bound)

    out = fam_forward(x1, x2, weight, bias)
    jax.block_until_ready(out)

    ref = _reference_conv(x1, x2, weight, bias)
    jax.block_until_ready(ref)

    assert out.shape == (B, Cout, H, W)
    assert jnp.allclose(out, ref, atol=5e-4, rtol=5e-4), "Pallas FAM conv mismatch vs reference"

    print("KERNEL_OK")
</pallas_src>

<mosaic_0001>
module attributes {stable_mosaic.version = 11 : i64} {
  func.func @_fam_conv_kernel(%arg0: i32, %arg1: memref<288xf32, #tpu.memory_space<smem>>, %arg2: memref<4xf32, #tpu.memory_space<smem>>, %arg3: memref<1x4x16x16xf32, #tpu.memory_space<vmem>>, %arg4: memref<1x4x16x16xf32, #tpu.memory_space<vmem>>, %arg5: memref<1x4x16x16xf32, #tpu.memory_space<vmem>>, %arg6: memref<8x18x18xf32, #tpu.memory_space<vmem>>) attributes {dimension_semantics = [#tpu.dimension_semantics<parallel>], iteration_bounds = array<i64: 2>, scalar_prefetch = 0 : i64, scratch_operands = 1 : i64, tpu.core_type = #tpu.core_type<tc>, window_params = [{transform_indices = @transform_0, window_bounds = array<i64: 288>}, {transform_indices = @transform_1, window_bounds = array<i64: 4>}, {transform_indices = @transform_2, window_bounds = array<i64: 1, 4, 16, 16>}, {transform_indices = @transform_3, window_bounds = array<i64: 1, 4, 16, 16>}, {transform_indices = @transform_4, window_bounds = array<i64: 1, 4, 16, 16>}]} {
    %cst = arith.constant 0.000000e+00 : f32
    %0 = vector.broadcast %cst : f32 to vector<8x18x18xf32>
    %c0 = arith.constant 0 : index
    %c0_0 = arith.constant 0 : index
    %c0_1 = arith.constant 0 : index
    %1 = vector.load %arg6[%c0, %c0_0, %c0_1] : memref<8x18x18xf32, #tpu.memory_space<vmem>>, vector<8x18x18xf32>
    tpu.vector_store %arg6[%c0, %c0_0, %c0_1], %0 {strides = array<i32>} : memref<8x18x18xf32, #tpu.memory_space<vmem>>, vector<8x18x18xf32>,
    %c0_2 = arith.constant 0 : index
    %c0_3 = arith.constant 0 : index
    %c0_4 = arith.constant 0 : index
    %c0_5 = arith.constant 0 : index
    %2 = vector.load %arg3[%c0_2, %c0_3, %c0_4, %c0_5] : memref<1x4x16x16xf32, #tpu.memory_space<vmem>>, vector<1x4x16x16xf32>
    %3 = vector.shape_cast %2 : vector<1x4x16x16xf32> to vector<4x16x16xf32>
    %c0_6 = arith.constant 0 : index
    %c1 = arith.constant 1 : index
    %c1_7 = arith.constant 1 : index
    %4 = vector.load %arg6[%c0_6, %c1, %c1_7] : memref<8x18x18xf32, #tpu.memory_space<vmem>>, vector<4x16x16xf32>
    tpu.vector_store %arg6[%c0_6, %c1, %c1_7], %3 {strides = array<i32>} : memref<8x18x18xf32, #tpu.memory_space<vmem>>, vector<4x16x16xf32>,
    %c0_8 = arith.constant 0 : index
    %c0_9 = arith.constant 0 : index
    %c0_10 = arith.constant 0 : index
    %c0_11 = arith.constant 0 : index
    %5 = vector.load %arg4[%c0_8, %c0_9, %c0_10, %c0_11] : memref<1x4x16x16xf32, #tpu.memory_space<vmem>>, vector<1x4x16x16xf32>
    %6 = vector.shape_cast %5 : vector<1x4x16x16xf32> to vector<4x16x16xf32>
    %c4 = arith.constant 4 : index
    %c1_12 = arith.constant 1 : index
    %c1_13 = arith.constant 1 : index
    %7 = vector.load %arg6[%c4, %c1_12, %c1_13] : memref<8x18x18xf32, #tpu.memory_space<vmem>>, vector<4x16x16xf32>
    tpu.vector_store %arg6[%c4, %c1_12, %c1_13], %6 {strides = array<i32>} : memref<8x18x18xf32, #tpu.memory_space<vmem>>, vector<4x16x16xf32>,
    %cst_14 = arith.constant 0.000000e+00 : f32
    %8 = vector.broadcast %cst_14 : f32 to vector<16x16xf32>
    %cst_15 = arith.constant 0.000000e+00 : f32
    %9 = vector.broadcast %cst_15 : f32 to vector<16x16xf32>
    %cst_16 = arith.constant 0.000000e+00 : f32
    %10 = vector.broadcast %cst_16 : f32 to vector<16x16xf32>
    %cst_17 = arith.constant 0.000000e+00 : f32
    %11 = vector.broadcast %cst_17 : f32 to vector<16x16xf32>
    %c0_18 = arith.constant 0 : index
    %c0_19 = arith.constant 0 : index
    %c0_20 = arith.constant 0 : index
    %12 = vector.load %arg6[%c0_18, %c0_19, %c0_20] : memref<8x18x18xf32, #tpu.memory_space<vmem>>, vector<1x16x16xf32>
    %13 = vector.shape_cast %12 : vector<1x16x16xf32> to vector<16x16xf32>
    %c0_21 = arith.constant 0 : index
    %c0_22 = arith.constant 0 : index
    %c1_23 = arith.constant 1 : index
    %14 = vector.load %arg6[%c0_21, %c0_22, %c1_23] : memref<8x18x18xf32, #tpu.memory_space<vmem>>, vector<1x16x16xf32>
    %15 = vector.shape_cast %14 : vector<1x16x16xf32> to vector<16x16xf32>
    %c0_24 = arith.constant 0 : index
    %c0_25 = arith.constant 0 : index
    %c2 = arith.constant 2 : index
    %16 = vector.load %arg6[%c0_24, %c0_25, %c2] : memref<8x18x18xf32, #tpu.memory_space<vmem>>, vector<1x16x16xf32>
    %17 = vector.shape_cast %16 : vector<1x16x16xf32> to vector<16x16xf32>
    %c0_26 = arith.constant 0 : index
    %c1_27 = arith.constant 1 : index
    %c0_28 = arith.constant 0 : index
    %18 = vector.load %arg6[%c0_26, %c1_27, %c0_28] : memref<8x18x18xf32, #tpu.memory_space<vmem>>, vector<1x16x16xf32>
    %19 = vector.shape_cast %18 : vector<1x16x16xf32> to vector<16x16xf32>
    %c0_29 = arith.constant 0 : index
    %c1_30 = arith.constant 1 : index
    %c1_31 = arith.constant 1 : index
    %20 = vector.load %arg6[%c0_29, %c1_30, %c1_31] : memref<8x18x18xf32, #tpu.memory_space<vmem>>, vector<1x16x16xf32>
    %21 = vector.shape_cast %20 : vector<1x16x16xf32> to vector<16x16xf32>
    %c0_32 = arith.constant 0 : index
    %c1_33 = arith.constant 1 : index
    %c2_34 = arith.constant 2 : index
    %22 = vector.load %arg6[%c0_32, %c1_33, %c2_34] : memref<8x18x18xf32, #tpu.memory_space<vmem>>, vector<1x16x16xf32>
    %23 = vector.shape_cast %22 : vector<1x16x16xf32> to vector<16x16xf32>
    %c0_35 = arith.constant 0 : index
    %c2_36 = arith.constant 2 : index
    %c0_37 = arith.constant 0 : index
    %24 = vector.load %arg6[%c0_35, %c2_36, %c0_37] : memref<8x18x18xf32, #tpu.memory_space<vmem>>, vector<1x16x16xf32>
    %25 = vector.shape_cast %24 : vector<1x16x16xf32> to vector<16x16xf32>
    %c0_38 = arith.constant 0 : index
    %c2_39 = arith.constant 2 : index
    %c1_40 = arith.constant 1 : index
    %26 = vector.load %arg6[%c0_38, %c2_39, %c1_40] : memref<8x18x18xf32, #tpu.memory_space<vmem>>, vector<1x16x16xf32>
    %27 = vector.shape_cast %26 : vector<1x16x16xf32> to vector<16x16xf32>
    %c0_41 = arith.constant 0 : index
    %c2_42 = arith.constant 2 : index
    %c2_43 = arith.constant 2 : index
    %28 = vector.load %arg6[%c0_41, %c2_42, %c2_43] : memref<8x18x18xf32, #tpu.memory_space<vmem>>, vector<1x16x16xf32>
    %29 = vector.shape_cast %28 : vector<1x16x16xf32> to vector<16x16xf32>
    %c0_44 = arith.constant 0 : index
    %30 = memref.load %arg1[%c0_44] : memref<288xf32, #tpu.memory_space<smem>>
    %31 = vector.broadcast %30 : f32 to vector<16x16xf32>
    %32 = arith.mulf %13, %31 : vector<16x16xf32>
    %33 = arith.addf %8, %32 : vector<16x16xf32>
    %c1_45 = arith.constant 1 : index
    %34 = memref.load %arg1[%c1_45] : memref<288xf32, #tpu.memory_space<smem>>
    %35 = vector.broadcast %34 : f32 to vector<16x16xf32>
    %36 = arith.mulf %15, %35 : vector<16x16xf32>
    %37 = arith.addf %33, %36 : vector<16x16xf32>
    %c2_46 = arith.constant 2 : index
    %38 = memref.load %arg1[%c2_46] : memref<288xf32, #tpu.memory_space<smem>>
    %39 = vector.broadcast %38 : f32 to vector<16x16xf32>
    %40 = arith.mulf %17, %39 : vector<16x16xf32>
    %41 = arith.addf %37, %40 : vector<16x16xf32>
    %c3 = arith.constant 3 : index
    %42 = memref.load %arg1[%c3] : memref<288xf32, #tpu.memory_space<smem>>
    %43 = vector.broadcast %42 : f32 to vector<16x16xf32>
    %44 = arith.mulf %19, %43 : vector<16x16xf32>
    %45 = arith.addf %41, %44 : vector<16x16xf32>
    %c4_47 = arith.constant 4 : index
    %46 = memref.load %arg1[%c4_47] : memref<288xf32, #tpu.memory_space<smem>>
    %47 = vector.broadcast %46 : f32 to vector<16x16xf32>
    %48 = arith.mulf %21, %47 : vector<16x16xf32>
    %49 = arith.addf %45, %48 : vector<16x16xf32>
    %c5 = arith.constant 5 : index
    %50 = memref.load %arg1[%c5] : memref<288xf32, #tpu.memory_space<smem>>
    %51 = vector.broadcast %50 : f32 to vector<16x16xf32>
    %52 = arith.mulf %23, %51 : vector<16x16xf32>
    %53 = arith.addf %49, %52 : vector<16x16xf32>
    %c6 = arith.constant 6 : index
    %54 = memref.load %arg1[%c6] : memref<288xf32, #tpu.memory_space<smem>>
    %55 = vector.broadcast %54 : f32 to vector<16x16xf32>
    %56 = arith.mulf %25, %55 : vector<16x16xf32>
    %57 = arith.addf %53, %56 : vector<16x16xf32>
    %c7 = arith.constant 7 : index
    %58 = memref.load %arg1[%c7] : memref<288xf32, #tpu.memory_space<smem>>
    %59 = vector.broadcast %58 : f32 to vector<16x16xf32>
    %60 = arith.mulf %27, %59 : vector<16x16xf32>
    %61 = arith.addf %57, %60 : vector<16x16xf32>
    %c8 = arith.constant 8 : index
    %62 = memref.load %arg1[%c8] : memref<288xf32, #tpu.memory_space<smem>>
    %63 = vector.broadcast %62 : f32 to vector<16x16xf32>
    %64 = arith.mulf %29, %63 : vector<16x16xf32>
    %65 = arith.addf %61, %64 : vector<16x16xf32>
    %c72 = arith.constant 72 : index
    %66 = memref.load %arg1[%c72] : memref<288xf32, #tpu.memory_space<smem>>
    %67 = vector.broadcast %66 : f32 to vector<16x16xf32>
    %68 = arith.mulf %13, %67 : vector<16x16xf32>
    %69 = arith.addf %9, %68 : vector<16x16xf32>
    %c73 = arith.constant 73 : index
    %70 = memref.load %arg1[%c73] : memref<288xf32, #tpu.memory_space<smem>>
    %71 = vector.broadcast %70 : f32 to vector<16x16xf32>
    %72 = arith.mulf %15, %71 : vector<16x16xf32>
    %73 = arith.addf %69, %72 : vector<16x16xf32>
    %c74 = arith.constant 74 : index
    %74 = memref.load %arg1[%c74] : memref<288xf32, #tpu.memory_space<smem>>
    %75 = vector.broadcast %74 : f32 to vector<16x16xf32>
    %76 = arith.mulf %17, %75 : vector<16x16xf32>
    %77 = arith.addf %73, %76 : vector<16x16xf32>
    %c75 = arith.constant 75 : index
    %78 = memref.load %arg1[%c75] : memref<288xf32, #tpu.memory_space<smem>>
    %79 = vector.broadcast %78 : f32 to vector<16x16xf32>
    %80 = arith.mulf %19, %79 : vector<16x16xf32>
    %81 = arith.addf %77, %80 : vector<16x16xf32>
    %c76 = arith.constant 76 : index
    %82 = memref.load %arg1[%c76] : memref<288xf32, #tpu.memory_space<smem>>
    %83 = vector.broadcast %82 : f32 to vector<16x16xf32>
    %84 = arith.mulf %21, %83 : vector<16x16xf32>
    %85 = arith.addf %81, %84 : vector<16x16xf32>
    %c77 = arith.constant 77 : index
    %86 = memref.load %arg1[%c77] : memref<288xf32, #tpu.memory_space<smem>>
    %87 = vector.broadcast %86 : f32 to vector<16x16xf32>
    %88 = arith.mulf %23, %87 : vector<16x16xf32>
    %89 = arith.addf %85, %88 : vector<16x16xf32>
    %c78 = arith.constant 78 : index
    %90 = memref.load %arg1[%c78] : memref<288xf32, #tpu.memory_space<smem>>
    %91 = vector.broadcast %90 : f32 to vector<16x16xf32>
    %92 = arith.mulf %25, %91 : vector<16x16xf32>
    %93 = arith.addf %89, %92 : vector<16x16xf32>
    %c79 = arith.constant 79 : index
    %94 = memref.load %arg1[%c79] : memref<288xf32, #tpu.memory_space<smem>>
    %95 = vector.broadcast %94 : f32 to vector<16x16xf32>
    %96 = arith.mulf %27, %95 : vector<16x16xf32>
    %97 = arith.addf %93, %96 : vector<16x16xf32>
    %c80 = arith.constant 80 : index
    %98 = memref.load %arg1[%c80] : memref<288xf32, #tpu.memory_space<smem>>
    %99 = vector.broadcast %98 : f32 to vector<16x16xf32>
    %100 = arith.mulf %29, %99 : vector<16x16xf32>
    %101 = arith.addf %97, %100 : vector<16x16xf32>
    %c144 = arith.constant 144 : index
    %102 = memref.load %arg1[%c144] : memref<288xf32, #tpu.memory_space<smem>>
    %103 = vector.broadcast %102 : f32 to vector<16x16xf32>
    %104 = arith.mulf %13, %103 : vector<16x16xf32>
    %105 = arith.addf %10, %104 : vector<16x16xf32>
    %c145 = arith.constant 145 : index
    %106 = memref.load %arg1[%c145] : memref<288xf32, #tpu.memory_space<smem>>
    %107 = vector.broadcast %106 : f32 to vector<16x16xf32>
    %108 = arith.mulf %15, %107 : vector<16x16xf32>
    %109 = arith.addf %105, %108 : vector<16x16xf32>
    %c146 = arith.constant 146 : index
    %110 = memref.load %arg1[%c146] : memref<288xf32, #tpu.memory_space<smem>>
    %111 = vector.broadcast %110 : f32 to vector<16x16xf32>
    %112 = arith.mulf %17, %111 : vector<16x16xf32>
    %113 = arith.addf %109, %112 : vector<16x16xf32>
    %c147 = arith.constant 147 : index
    %114 = memref.load %arg1[%c147] : memref<288xf32, #tpu.memory_space<smem>>
    %115 = vector.broadcast %114 : f32 to vector<16x16xf32>
    %116 = arith.mulf %19, %115 : vector<16x16xf32>
    %117 = arith.addf %113, %116 : vector<16x16xf32>
    %c148 = arith.constant 148 : index
    %118 = memref.load %arg1[%c148] : memref<288xf32, #tpu.memory_space<smem>>
    %119 = vector.broadcast %118 : f32 to vector<16x16xf32>
    %120 = arith.mulf %21, %119 : vector<16x16xf32>
    %121 = arith.addf %117, %120 : vector<16x16xf32>
    %c149 = arith.constant 149 : index
    %122 = memref.load %arg1[%c149] : memref<288xf32, #tpu.memory_space<smem>>
    %123 = vector.broadcast %122 : f32 to vector<16x16xf32>
    %124 = arith.mulf %23, %123 : vector<16x16xf32>
    %125 = arith.addf %121, %124 : vector<16x16xf32>
    %c150 = arith.constant 150 : index
    %126 = memref.load %arg1[%c150] : memref<288xf32, #tpu.memory_space<smem>>
    %127 = vector.broadcast %126 : f32 to vector<16x16xf32>
    %128 = arith.mulf %25, %127 : vector<16x16xf32>
    %129 = arith.addf %125, %128 : vector<16x16xf32>
    %c151 = arith.constant 151 : index
    %130 = memref.load %arg1[%c151] : memref<288xf32, #tpu.memory_space<smem>>
    %131 = vector.broadcast %130 : f32 to vector<16x16xf32>
    %132 = arith.mulf %27, %131 : vector<16x16xf32>
    %133 = arith.addf %129, %132 : vector<16x16xf32>
    %c152 = arith.constant 152 : index
    %134 = memref.load %arg1[%c152] : memref<288xf32, #tpu.memory_space<smem>>
    %135 = vector.broadcast %134 : f32 to vector<16x16xf32>
    %136 = arith.mulf %29, %135 : vector<16x16xf32>
    %137 = arith.addf %133, %136 : vector<16x16xf32>
    %c216 = arith.constant 216 : index
    %138 = memref.load %arg1[%c216] : memref<288xf32, #tpu.memory_space<smem>>
    %139 = vector.broadcast %138 : f32 to vector<16x16xf32>
    %140 = arith.mulf %13, %139 : vector<16x16xf32>
    %141 = arith.addf %11, %140 : vector<16x16xf32>
    %c217 = arith.constant 217 : index
    %142 = memref.load %arg1[%c217] : memref<288xf32, #tpu.memory_space<smem>>
    %143 = vector.broadcast %142 : f32 to vector<16x16xf32>
    %144 = arith.mulf %15, %143 : vector<16x16xf32>
    %145 = arith.addf %141, %144 : vector<16x16xf32>
    %c218 = arith.constant 218 : index
    %146 = memref.load %arg1[%c218] : memref<288xf32, #tpu.memory_space<smem>>
    %147 = vector.broadcast %146 : f32 to vector<16x16xf32>
    %148 = arith.mulf %17, %147 : vector<16x16xf32>
    %149 = arith.addf %145, %148 : vector<16x16xf32>
    %c219 = arith.constant 219 : index
    %150 = memref.load %arg1[%c219] : memref<288xf32, #tpu.memory_space<smem>>
    %151 = vector.broadcast %150 : f32 to vector<16x16xf32>
    %152 = arith.mulf %19, %151 : vector<16x16xf32>
    %153 = arith.addf %149, %152 : vector<16x16xf32>
    %c220 = arith.constant 220 : index
    %154 = memref.load %arg1[%c220] : memref<288xf32, #tpu.memory_space<smem>>
    %155 = vector.broadcast %154 : f32 to vector<16x16xf32>
    %156 = arith.mulf %21, %155 : vector<16x16xf32>
    %157 = arith.addf %153, %156 : vector<16x16xf32>
    %c221 = arith.constant 221 : index
    %158 = memref.load %arg1[%c221] : memref<288xf32, #tpu.memory_space<smem>>
    %159 = vector.broadcast %158 : f32 to vector<16x16xf32>
    %160 = arith.mulf %23, %159 : vector<16x16xf32>
    %161 = arith.addf %157, %160 : vector<16x16xf32>
    %c222 = arith.constant 222 : index
    %162 = memref.load %arg1[%c222] : memref<288xf32, #tpu.memory_space<smem>>
    %163 = vector.broadcast %162 : f32 to vector<16x16xf32>
    %164 = arith.mulf %25, %163 : vector<16x16xf32>
    %165 = arith.addf %161, %164 : vector<16x16xf32>
    %c223 = arith.constant 223 : index
    %166 = memref.load %arg1[%c223] : memref<288xf32, #tpu.memory_space<smem>>
    %167 = vector.broadcast %166 : f32 to vector<16x16xf32>
    %168 = arith.mulf %27, %167 : vector<16x16xf32>
    %169 = arith.addf %165, %168 : vector<16x16xf32>
    %c224 = arith.constant 224 : index
    %170 = memref.load %arg1[%c224] : memref<288xf32, #tpu.memory_space<smem>>
    %171 = vector.broadcast %170 : f32 to vector<16x16xf32>
    %172 = arith.mulf %29, %171 : vector<16x16xf32>
    %173 = arith.addf %169, %172 : vector<16x16xf32>
    %c1_48 = arith.constant 1 : index
    %c0_49 = arith.constant 0 : index
    %c0_50 = arith.constant 0 : index
    %174 = vector.load %arg6[%c1_48, %c0_49, %c0_50] : memref<8x18x18xf32, #tpu.memory_space<vmem>>, vector<1x16x16xf32>
    %175 = vector.shape_cast %174 : vector<1x16x16xf32> to vector<16x16xf32>
    %c1_51 = arith.constant 1 : index
    %c0_52 = arith.constant 0 : index
    %c1_53 = arith.constant 1 : index
    %176 = vector.load %arg6[%c1_51, %c0_52, %c1_53] : memref<8x18x18xf32, #tpu.memory_space<vmem>>, vector<1x16x16xf32>
    %177 = vector.shape_cast %176 : vector<1x16x16xf32> to vector<16x16xf32>
    %c1_54 = arith.constant 1 : index
    %c0_55 = arith.constant 0 : index
    %c2_56 = arith.constant 2 : index
    %178 = vector.load %arg6[%c1_54, %c0_55, %c2_56] : memref<8x18x18xf32, #tpu.memory_space<vmem>>, vector<1x16x16xf32>
    %179 = vector.shape_cast %178 : vector<1x16x16xf32> to vector<16x16xf32>
    %c1_57 = arith.constant 1 : index
    %c1_58 = arith.constant 1 : index
    %c0_59 = arith.constant 0 : index
    %180 = vector.load %arg6[%c1_57, %c1_58, %c0_59] : memref<8x18x18xf32, #tpu.memory_space<vmem>>, vector<1x16x16xf32>
    %181 = vector.shape_cast %180 : vector<1x16x16xf32> to vector<16x16xf32>
    %c1_60 = arith.constant 1 : index
    %c1_61 = arith.constant 1 : index
    %c1_62 = arith.constant 1 : index
    %182 = vector.load %arg6[%c1_60, %c1_61, %c1_62] : memref<8x18x18xf32, #tpu.memory_space<vmem>>, vector<1x16x16xf32>
    %183 = vector.shape_cast %182 : vector<1x16x16xf32> to vector<16x16xf32>
    %c1_63 = arith.constant 1 : index
    %c1_64 = arith.constant 1 : index
    %c2_65 = arith.constant 2 : index
    %184 = vector.load %arg6[%c1_63, %c1_64, %c2_65] : memref<8x18x18xf32, #tpu.memory_space<vmem>>, vector<1x16x16xf32>
    %185 = vector.shape_cast %184 : vector<1x16x16xf32> to vector<16x16xf32>
    %c1_66 = arith.constant 1 : index
    %c2_67 = arith.constant 2 : index
    %c0_68 = arith.constant 0 : index
    %186 = vector.load %arg6[%c1_66, %c2_67, %c0_68] : memref<8x18x18xf32, #tpu.memory_space<vmem>>, vector<1x16x16xf32>
    %187 = vector.shape_cast %186 : vector<1x16x16xf32> to vector<16x16xf32>
    %c1_69 = arith.constant 1 : index
    %c2_70 = arith.constant 2 : index
    %c1_71 = arith.constant 1 : index
    %188 = vector.load %arg6[%c1_69, %c2_70, %c1_71] : memref<8x18x18xf32, #tpu.memory_space<vmem>>, vector<1x16x16xf32>
    %189 = vector.shape_cast %188 : vector<1x16x16xf32> to vector<16x16xf32>
    %c1_72 = arith.constant 1 : index
    %c2_73 = arith.constant 2 : index
    %c2_74 = arith.constant 2 : index
    %190 = vector.load %arg6[%c1_72, %c2_73, %c2_74] : memref<8x18x18xf32, #tpu.memory_space<vmem>>, vector<1x16x16xf32>
    %191 = vector.shape_cast %190 : vector<1x16x16xf32> to vector<16x16xf32>
    %c9 = arith.constant 9 : index
    %192 = memref.load %arg1[%c9] : memref<288xf32, #tpu.memory_space<smem>>
    %193 = vector.broadcast %192 : f32 to vector<16x16xf32>
    %194 = arith.mulf %175, %193 : vector<16x16xf32>
    %195 = arith.addf %65, %194 : vector<16x16xf32>
    %c10 = arith.constant 10 : index
    %196 = memref.load %arg1[%c10] : memref<288xf32, #tpu.memory_space<smem>>
    %197 = vector.broadcast %196 : f32 to vector<16x16xf32>
    %198 = arith.mulf %177, %197 : vector<16x16xf32>
    %199 = arith.addf %195, %198 : vector<16x16xf32>
    %c11 = arith.constant 11 : index
    %200 = memref.load %arg1[%c11] : memref<288xf32, #tpu.memory_space<smem>>
    %201 = vector.broadcast %200 : f32 to vector<16x16xf32>
    %202 = arith.mulf %179, %201 : vector<16x16xf32>
    %203 = arith.addf %199, %202 : vector<16x16xf32>
    %c12 = arith.constant 12 : index
    %204 = memref.load %arg1[%c12] : memref<288xf32, #tpu.memory_space<smem>>
    %205 = vector.broadcast %204 : f32 to vector<16x16xf32>
    %206 = arith.mulf %181, %205 : vector<16x16xf32>
    %207 = arith.addf %203, %206 : vector<16x16xf32>
    %c13 = arith.constant 13 : index
    %208 = memref.load %arg1[%c13] : memref<288xf32, #tpu.memory_space<smem>>
    %209 = vector.broadcast %208 : f32 to vector<16x16xf32>
    %210 = arith.mulf %183, %209 : vector<16x16xf32>
    %211 = arith.addf %207, %210 : vector<16x16xf32>
    %c14 = arith.constant 14 : index
    %212 = memref.load %arg1[%c14] : memref<288xf32, #tpu.memory_space<smem>>
    %213 = vector.broadcast %212 : f32 to vector<16x16xf32>
    %214 = arith.mulf %185, %213 : vector<16x16xf32>
    %215 = arith.addf %211, %214 : vector<16x16xf32>
    %c15 = arith.constant 15 : index
    %216 = memref.load %arg1[%c15] : memref<288xf32, #tpu.memory_space<smem>>
    %217 = vector.broadcast %216 : f32 to vector<16x16xf32>
    %218 = arith.mulf %187, %217 : vector<16x16xf32>
    %219 = arith.addf %215, %218 : vector<16x16xf32>
    %c16 = arith.constant 16 : index
    %220 = memref.load %arg1[%c16] : memref<288xf32, #tpu.memory_space<smem>>
    %221 = vector.broadcast %220 : f32 to vector<16x16xf32>
    %222 = arith.mulf %189, %221 : vector<16x16xf32>
    %223 = arith.addf %219, %222 : vector<16x16xf32>
    %c17 = arith.constant 17 : index
    %224 = memref.load %arg1[%c17] : memref<288xf32, #tpu.memory_space<smem>>
    %225 = vector.broadcast %224 : f32 to vector<16x16xf32>
    %226 = arith.mulf %191, %225 : vector<16x16xf32>
    %227 = arith.addf %223, %226 : vector<16x16xf32>
    %c81 = arith.constant 81 : index
    %228 = memref.load %arg1[%c81] : memref<288xf32, #tpu.memory_space<smem>>
    %229 = vector.broadcast %228 : f32 to vector<16x16xf32>
    %230 = arith.mulf %175, %229 : vector<16x16xf32>
    %231 = arith.addf %101, %230 : vector<16x16xf32>
    %c82 = arith.constant 82 : index
    %232 = memref.load %arg1[%c82] : memref<288xf32, #tpu.memory_space<smem>>
    %233 = vector.broadcast %232 : f32 to vector<16x16xf32>
    %234 = arith.mulf %177, %233 : vector<16x16xf32>
    %235 = arith.addf %231, %234 : vector<16x16xf32>
    %c83 = arith.constant 83 : index
    %236 = memref.load %arg1[%c83] : memref<288xf32, #tpu.memory_space<smem>>
    %237 = vector.broadcast %236 : f32 to vector<16x16xf32>
    %238 = arith.mulf %179, %237 : vector<16x16xf32>
    %239 = arith.addf %235, %238 : vector<16x16xf32>
    %c84 = arith.constant 84 : index
    %240 = memref.load %arg1[%c84] : memref<288xf32, #tpu.memory_space<smem>>
    %241 = vector.broadcast %240 : f32 to vector<16x16xf32>
    %242 = arith.mulf %181, %241 : vector<16x16xf32>
    %243 = arith.addf %239, %242 : vector<16x16xf32>
    %c85 = arith.constant 85 : index
    %244 = memref.load %arg1[%c85] : memref<288xf32, #tpu.memory_space<smem>>
    %245 = vector.broadcast %244 : f32 to vector<16x16xf32>
    %246 = arith.mulf %183, %245 : vector<16x16xf32>
    %247 = arith.addf %243, %246 : vector<16x16xf32>
    %c86 = arith.constant 86 : index
    %248 = memref.load %arg1[%c86] : memref<288xf32, #tpu.memory_space<smem>>
    %249 = vector.broadcast %248 : f32 to vector<16x16xf32>
    %250 = arith.mulf %185, %249 : vector<16x16xf32>
    %251 = arith.addf %247, %250 : vector<16x16xf32>
    %c87 = arith.constant 87 : index
    %252 = memref.load %arg1[%c87] : memref<288xf32, #tpu.memory_space<smem>>
    %253 = vector.broadcast %252 : f32 to vector<16x16xf32>
    %254 = arith.mulf %187, %253 : vector<16x16xf32>
    %255 = arith.addf %251, %254 : vector<16x16xf32>
    %c88 = arith.constant 88 : index
    %256 = memref.load %arg1[%c88] : memref<288xf32, #tpu.memory_space<smem>>
    %257 = vector.broadcast %256 : f32 to vector<16x16xf32>
    %258 = arith.mulf %189, %257 : vector<16x16xf32>
    %259 = arith.addf %255, %258 : vector<16x16xf32>
    %c89 = arith.constant 89 : index
    %260 = memref.load %arg1[%c89] : memref<288xf32, #tpu.memory_space<smem>>
    %261 = vector.broadcast %260 : f32 to vector<16x16xf32>
    %262 = arith.mulf %191, %261 : vector<16x16xf32>
    %263 = arith.addf %259, %262 : vector<16x16xf32>
    %c153 = arith.constant 153 : index
    %264 = memref.load %arg1[%c153] : memref<288xf32, #tpu.memory_space<smem>>
    %265 = vector.broadcast %264 : f32 to vector<16x16xf32>
    %266 = arith.mulf %175, %265 : vector<16x16xf32>
    %267 = arith.addf %137, %266 : vector<16x16xf32>
    %c154 = arith.constant 154 : index
    %268 = memref.load %arg1[%c154] : memref<288xf32, #tpu.memory_space<smem>>
    %269 = vector.broadcast %268 : f32 to vector<16x16xf32>
    %270 = arith.mulf %177, %269 : vector<16x16xf32>
    %271 = arith.addf %267, %270 : vector<16x16xf32>
    %c155 = arith.constant 155 : index
    %272 = memref.load %arg1[%c155] : memref<288xf32, #tpu.memory_space<smem>>
    %273 = vector.broadcast %272 : f32 to vector<16x16xf32>
    %274 = arith.mulf %179, %273 : vector<16x16xf32>
    %275 = arith.addf %271, %274 : vector<16x16xf32>
    %c156 = arith.constant 156 : index
    %276 = memref.load %arg1[%c156] : memref<288xf32, #tpu.memory_space<smem>>
    %277 = vector.broadcast %276 : f32 to vector<16x16xf32>
    %278 = arith.mulf %181, %277 : vector<16x16xf32>
    %279 = arith.addf %275, %278 : vector<16x16xf32>
    %c157 = arith.constant 157 : index
    %280 = memref.load %arg1[%c157] : memref<288xf32, #tpu.memory_space<smem>>
    %281 = vector.broadcast %280 : f32 to vector<16x16xf32>
    %282 = arith.mulf %183, %281 : vector<16x16xf32>
    %283 = arith.addf %279, %282 : vector<16x16xf32>
    %c158 = arith.constant 158 : index
    %284 = memref.load %arg1[%c158] : memref<288xf32, #tpu.memory_space<smem>>
    %285 = vector.broadcast %284 : f32 to vector<16x16xf32>
    %286 = arith.mulf %185, %285 : vector<16x16xf32>
    %287 = arith.addf %283, %286 : vector<16x16xf32>
    %c159 = arith.constant 159 : index
    %288 = memref.load %arg1[%c159] : memref<288xf32, #tpu.memory_space<smem>>
    %289 = vector.broadcast %288 : f32 to vector<16x16xf32>
    %290 = arith.mulf %187, %289 : vector<16x16xf32>
    %291 = arith.addf %287, %290 : vector<16x16xf32>
    %c160 = arith.constant 160 : index
    %292 = memref.load %arg1[%c160] : memref<288xf32, #tpu.memory_space<smem>>
    %293 = vector.broadcast %292 : f32 to vector<16x16xf32>
    %294 = arith.mulf %189, %293 : vector<16x16xf32>
    %295 = arith.addf %291, %294 : vector<16x16xf32>
    %c161 = arith.constant 161 : index
    %296 = memref.load %arg1[%c161] : memref<288xf32, #tpu.memory_space<smem>>
    %297 = vector.broadcast %296 : f32 to vector<16x16xf32>
    %298 = arith.mulf %191, %297 : vector<16x16xf32>
    %299 = arith.addf %295, %298 : vector<16x16xf32>
    %c225 = arith.constant 225 : index
    %300 = memref.load %arg1[%c225] : memref<288xf32, #tpu.memory_space<smem>>
    %301 = vector.broadcast %300 : f32 to vector<16x16xf32>
    %302 = arith.mulf %175, %301 : vector<16x16xf32>
    %303 = arith.addf %173, %302 : vector<16x16xf32>
    %c226 = arith.constant 226 : index
    %304 = memref.load %arg1[%c226] : memref<288xf32, #tpu.memory_space<smem>>
    %305 = vector.broadcast %304 : f32 to vector<16x16xf32>
    %306 = arith.mulf %177, %305 : vector<16x16xf32>
    %307 = arith.addf %303, %306 : vector<16x16xf32>
    %c227 = arith.constant 227 : index
    %308 = memref.load %arg1[%c227] : memref<288xf32, #tpu.memory_space<smem>>
    %309 = vector.broadcast %308 : f32 to vector<16x16xf32>
    %310 = arith.mulf %179, %309 : vector<16x16xf32>
    %311 = arith.addf %307, %310 : vector<16x16xf32>
    %c228 = arith.constant 228 : index
    %312 = memref.load %arg1[%c228] : memref<288xf32, #tpu.memory_space<smem>>
    %313 = vector.broadcast %312 : f32 to vector<16x16xf32>
    %314 = arith.mulf %181, %313 : vector<16x16xf32>
    %315 = arith.addf %311, %314 : vector<16x16xf32>
    %c229 = arith.constant 229 : index
    %316 = memref.load %arg1[%c229] : memref<288xf32, #tpu.memory_space<smem>>
    %317 = vector.broadcast %316 : f32 to vector<16x16xf32>
    %318 = arith.mulf %183, %317 : vector<16x16xf32>
    %319 = arith.addf %315, %318 : vector<16x16xf32>
    %c230 = arith.constant 230 : index
    %320 = memref.load %arg1[%c230] : memref<288xf32, #tpu.memory_space<smem>>
    %321 = vector.broadcast %320 : f32 to vector<16x16xf32>
    %322 = arith.mulf %185, %321 : vector<16x16xf32>
    %323 = arith.addf %319, %322 : vector<16x16xf32>
    %c231 = arith.constant 231 : index
    %324 = memref.load %arg1[%c231] : memref<288xf32, #tpu.memory_space<smem>>
    %325 = vector.broadcast %324 : f32 to vector<16x16xf32>
    %326 = arith.mulf %187, %325 : vector<16x16xf32>
    %327 = arith.addf %323, %326 : vector<16x16xf32>
    %c232 = arith.constant 232 : index
    %328 = memref.load %arg1[%c232] : memref<288xf32, #tpu.memory_space<smem>>
    %329 = vector.broadcast %328 : f32 to vector<16x16xf32>
    %330 = arith.mulf %189, %329 : vector<16x16xf32>
    %331 = arith.addf %327, %330 : vector<16x16xf32>
    %c233 = arith.constant 233 : index
    %332 = memref.load %arg1[%c233] : memref<288xf32, #tpu.memory_space<smem>>
    %333 = vector.broadcast %332 : f32 to vector<16x16xf32>
    %334 = arith.mulf %191, %333 : vector<16x16xf32>
    %335 = arith.addf %331, %334 : vector<16x16xf32>
    %c2_75 = arith.constant 2 : index
    %c0_76 = arith.constant 0 : index
    %c0_77 = arith.constant 0 : index
    %336 = vector.load %arg6[%c2_75, %c0_76, %c0_77] : memref<8x18x18xf32, #tpu.memory_space<vmem>>, vector<1x16x16xf32>
    %337 = vector.shape_cast %336 : vector<1x16x16xf32> to vector<16x16xf32>
    %c2_78 = arith.constant 2 : index
    %c0_79 = arith.constant 0 : index
    %c1_80 = arith.constant 1 : index
    %338 = vector.load %arg6[%c2_78, %c0_79, %c1_80] : memref<8x18x18xf32, #tpu.memory_space<vmem>>, vector<1x16x16xf32>
    %339 = vector.shape_cast %338 : vector<1x16x16xf32> to vector<16x16xf32>
    %c2_81 = arith.constant 2 : index
    %c0_82 = arith.constant 0 : index
    %c2_83 = arith.constant 2 : index
    %340 = vector.load %arg6[%c2_81, %c0_82, %c2_83] : memref<8x18x18xf32, #tpu.memory_space<vmem>>, vector<1x16x16xf32>
    %341 = vector.shape_cast %340 : vector<1x16x16xf32> to vector<16x16xf32>
    %c2_84 = arith.constant 2 : index
    %c1_85 = arith.constant 1 : index
    %c0_86 = arith.constant 0 : index
    %342 = vector.load %arg6[%c2_84, %c1_85, %c0_86] : memref<8x18x18xf32, #tpu.memory_space<vmem>>, vector<1x16x16xf32>
    %343 = vector.shape_cast %342 : vector<1x16x16xf32> to vector<16x16xf32>
    %c2_87 = arith.constant 2 : index
    %c1_88 = arith.constant 1 : index
    %c1_89 = arith.constant 1 : index
    %344 = vector.load %arg6[%c2_87, %c1_88, %c1_89] : memref<8x18x18xf32, #tpu.memory_space<vmem>>, vector<1x16x16xf32>
    %345 = vector.shape_cast %344 : vector<1x16x16xf32> to vector<16x16xf32>
    %c2_90 = arith.constant 2 : index
    %c1_91 = arith.constant 1 : index
    %c2_92 = arith.constant 2 : index
    %346 = vector.load %arg6[%c2_90, %c1_91, %c2_92] : memref<8x18x18xf32, #tpu.memory_space<vmem>>, vector<1x16x16xf32>
    %347 = vector.shape_cast %346 : vector<1x16x16xf32> to vector<16x16xf32>
    %c2_93 = arith.constant 2 : index
    %c2_94 = arith.constant 2 : index
    %c0_95 = arith.constant 0 : index
    %348 = vector.load %arg6[%c2_93, %c2_94, %c0_95] : memref<8x18x18xf32, #tpu.memory_space<vmem>>, vector<1x16x16xf32>
    %349 = vector.shape_cast %348 : vector<1x16x16xf32> to vector<16x16xf32>
    %c2_96 = arith.constant 2 : index
    %c2_97 = arith.constant 2 : index
    %c1_98 = arith.constant 1 : index
    %350 = vector.load %arg6[%c2_96, %c2_97, %c1_98] : memref<8x18x18xf32, #tpu.memory_space<vmem>>, vector<1x16x16xf32>
    %351 = vector.shape_cast %350 : vector<1x16x16xf32> to vector<16x16xf32>
    %c2_99 = arith.constant 2 : index
    %c2_100 = arith.constant 2 : index
    %c2_101 = arith.constant 2 : index
    %352 = vector.load %arg6[%c2_99, %c2_100, %c2_101] : memref<8x18x18xf32, #tpu.memory_space<vmem>>, vector<1x16x16xf32>
    %353 = vector.shape_cast %352 : vector<1x16x16xf32> to vector<16x16xf32>
    %c18 = arith.constant 18 : index
    %354 = memref.load %arg1[%c18] : memref<288xf32, #tpu.memory_space<smem>>
    %355 = vector.broadcast %354 : f32 to vector<16x16xf32>
    %356 = arith.mulf %337, %355 : vector<16x16xf32>
    %357 = arith.addf %227, %356 : vector<16x16xf32>
    %c19 = arith.constant 19 : index
    %358 = memref.load %arg1[%c19] : memref<288xf32, #tpu.memory_space<smem>>
    %359 = vector.broadcast %358 : f32 to vector<16x16xf32>
    %360 = arith.mulf %339, %359 : vector<16x16xf32>
    %361 = arith.addf %357, %360 : vector<16x16xf32>
    %c20 = arith.constant 20 : index
    %362 = memref.load %arg1[%c20] : memref<288xf32, #tpu.memory_space<smem>>
    %363 = vector.broadcast %362 : f32 to vector<16x16xf32>
    %364 = arith.mulf %341, %363 : vector<16x16xf32>
    %365 = arith.addf %361, %364 : vector<16x16xf32>
    %c21 = arith.constant 21 : index
    %366 = memref.load %arg1[%c21] : memref<288xf32, #tpu.memory_space<smem>>
    %367 = vector.broadcast %366 : f32 to vector<16x16xf32>
    %368 = arith.mulf %343, %367 : vector<16x16xf32>
    %369 = arith.addf %365, %368 : vector<16x16xf32>
    %c22 = arith.constant 22 : index
    %370 = memref.load %arg1[%c22] : memref<288xf32, #tpu.memory_space<smem>>
    %371 = vector.broadcast %370 : f32 to vector<16x16xf32>
    %372 = arith.mulf %345, %371 : vector<16x16xf32>
    %373 = arith.addf %369, %372 : vector<16x16xf32>
    %c23 = arith.constant 23 : index
    %374 = memref.load %arg1[%c23] : memref<288xf32, #tpu.memory_space<smem>>
    %375 = vector.broadcast %374 : f32 to vector<16x16xf32>
    %376 = arith.mulf %347, %375 : vector<16x16xf32>
    %377 = arith.addf %373, %376 : vector<16x16xf32>
    %c24 = arith.constant 24 : index
    %378 = memref.load %arg1[%c24] : memref<288xf32, #tpu.memory_space<smem>>
    %379 = vector.broadcast %378 : f32 to vector<16x16xf32>
    %380 = arith.mulf %349, %379 : vector<16x16xf32>
    %381 = arith.addf %377, %380 : vector<16x16xf32>
    %c25 = arith.constant 25 : index
    %382 = memref.load %arg1[%c25] : memref<288xf32, #tpu.memory_space<smem>>
    %383 = vector.broadcast %382 : f32 to vector<16x16xf32>
    %384 = arith.mulf %351, %383 : vector<16x16xf32>
    %385 = arith.addf %381, %384 : vector<16x16xf32>
    %c26 = arith.constant 26 : index
    %386 = memref.load %arg1[%c26] : memref<288xf32, #tpu.memory_space<smem>>
    %387 = vector.broadcast %386 : f32 to vector<16x16xf32>
    %388 = arith.mulf %353, %387 : vector<16x16xf32>
    %389 = arith.addf %385, %388 : vector<16x16xf32>
    %c90 = arith.constant 90 : index
    %390 = memref.load %arg1[%c90] : memref<288xf32, #tpu.memory_space<smem>>
    %391 = vector.broadcast %390 : f32 to vector<16x16xf32>
    %392 = arith.mulf %337, %391 : vector<16x16xf32>
    %393 = arith.addf %263, %392 : vector<16x16xf32>
    %c91 = arith.constant 91 : index
    %394 = memref.load %arg1[%c91] : memref<288xf32, #tpu.memory_space<smem>>
    %395 = vector.broadcast %394 : f32 to vector<16x16xf32>
    %396 = arith.mulf %339, %395 : vector<16x16xf32>
    %397 = arith.addf %393, %396 : vector<16x16xf32>
    %c92 = arith.constant 92 : index
    %398 = memref.load %arg1[%c92] : memref<288xf32, #tpu.memory_space<smem>>
    %399 = vector.broadcast %398 : f32 to vector<16x16xf32>
    %400 = arith.mulf %341, %399 : vector<16x16xf32>
    %401 = arith.addf %397, %400 : vector<16x16xf32>
    %c93 = arith.constant 93 : index
    %402 = memref.load %arg1[%c93] : memref<288xf32, #tpu.memory_space<smem>>
    %403 = vector.broadcast %402 : f32 to vector<16x16xf32>
    %404 = arith.mulf %343, %403 : vector<16x16xf32>
    %405 = arith.addf %401, %404 : vector<16x16xf32>
    %c94 = arith.constant 94 : index
    %406 = memref.load %arg1[%c94] : memref<288xf32, #tpu.memory_space<smem>>
    %407 = vector.broadcast %406 : f32 to vector<16x16xf32>
    %408 = arith.mulf %345, %407 : vector<16x16xf32>
    %409 = arith.addf %405, %408 : vector<16x16xf32>
    %c95 = arith.constant 95 : index
    %410 = memref.load %arg1[%c95] : memref<288xf32, #tpu.memory_space<smem>>
    %411 = vector.broadcast %410 : f32 to vector<16x16xf32>
    %412 = arith.mulf %347, %411 : vector<16x16xf32>
    %413 = arith.addf %409, %412 : vector<16x16xf32>
    %c96 = arith.constant 96 : index
    %414 = memref.load %arg1[%c96] : memref<288xf32, #tpu.memory_space<smem>>
    %415 = vector.broadcast %414 : f32 to vector<16x16xf32>
    %416 = arith.mulf %349, %415 : vector<16x16xf32>
    %417 = arith.addf %413, %416 : vector<16x16xf32>
    %c97 = arith.constant 97 : index
    %418 = memref.load %arg1[%c97] : memref<288xf32, #tpu.memory_space<smem>>
    %419 = vector.broadcast %418 : f32 to vector<16x16xf32>
    %420 = arith.mulf %351, %419 : vector<16x16xf32>
    %421 = arith.addf %417, %420 : vector<16x16xf32>
    %c98 = arith.constant 98 : index
    %422 = memref.load %arg1[%c98] : memref<288xf32, #tpu.memory_space<smem>>
    %423 = vector.broadcast %422 : f32 to vector<16x16xf32>
    %424 = arith.mulf %353, %423 : vector<16x16xf32>
    %425 = arith.addf %421, %424 : vector<16x16xf32>
    %c162 = arith.constant 162 : index
    %426 = memref.load %arg1[%c162] : memref<288xf32, #tpu.memory_space<smem>>
    %427 = vector.broadcast %426 : f32 to vector<16x16xf32>
    %428 = arith.mulf %337, %427 : vector<16x16xf32>
    %429 = arith.addf %299, %428 : vector<16x16xf32>
    %c163 = arith.constant 163 : index
    %430 = memref.load %arg1[%c163] : memref<288xf32, #tpu.memory_space<smem>>
    %431 = vector.broadcast %430 : f32 to vector<16x16xf32>
    %432 = arith.mulf %339, %431 : vector<16x16xf32>
    %433 = arith.addf %429, %432 : vector<16x16xf32>
    %c164 = arith.constant 164 : index
    %434 = memref.load %arg1[%c164] : memref<288xf32, #tpu.memory_space<smem>>
    %435 = vector.broadcast %434 : f32 to vector<16x16xf32>
    %436 = arith.mulf %341, %435 : vector<16x16xf32>
    %437 = arith.addf %433, %436 : vector<16x16xf32>
    %c165 = arith.constant 165 : index
    %438 = memref.load %arg1[%c165] : memref<288xf32, #tpu.memory_space<smem>>
    %439 = vector.broadcast %438 : f32 to vector<16x16xf32>
    %440 = arith.mulf %343, %439 : vector<16x16xf32>
    %441 = arith.addf %437, %440 : vector<16x16xf32>
    %c166 = arith.constant 166 : index
    %442 = memref.load %arg1[%c166] : memref<288xf32, #tpu.memory_space<smem>>
    %443 = vector.broadcast %442 : f32 to vector<16x16xf32>
    %444 = arith.mulf %345, %443 : vector<16x16xf32>
    %445 = arith.addf %441, %444 : vector<16x16xf32>
    %c167 = arith.constant 167 : index
    %446 = memref.load %arg1[%c167] : memref<288xf32, #tpu.memory_space<smem>>
    %447 = vector.broadcast %446 : f32 to vector<16x16xf32>
    %448 = arith.mulf %347, %447 : vector<16x16xf32>
    %449 = arith.addf %445, %448 : vector<16x16xf32>
    %c168 = arith.constant 168 : index
    %450 = memref.load %arg1[%c168] : memref<288xf32, #tpu.memory_space<smem>>
    %451 = vector.broadcast %450 : f32 to vector<16x16xf32>
    %452 = arith.mulf %349, %451 : vector<16x16xf32>
    %453 = arith.addf %449, %452 : vector<16x16xf32>
    %c169 = arith.constant 169 : index
    %454 = memref.load %arg1[%c169] : memref<288xf32, #tpu.memory_space<smem>>
    %455 = vector.broadcast %454 : f32 to vector<16x16xf32>
    %456 = arith.mulf %351, %455 : vector<16x16xf32>
    %457 = arith.addf %453, %456 : vector<16x16xf32>
    %c170 = arith.constant 170 : index
    %458 = memref.load %arg1[%c170] : memref<288xf32, #tpu.memory_space<smem>>
    %459 = vector.broadcast %458 : f32 to vector<16x16xf32>
    %460 = arith.mulf %353, %459 : vector<16x16xf32>
    %461 = arith.addf %457, %460 : vector<16x16xf32>
    %c234 = arith.constant 234 : index
    %462 = memref.load %arg1[%c234] : memref<288xf32, #tpu.memory_space<smem>>
    %463 = vector.broadcast %462 : f32 to vector<16x16xf32>
    %464 = arith.mulf %337, %463 : vector<16x16xf32>
    %465 = arith.addf %335, %464 : vector<16x16xf32>
    %c235 = arith.constant 235 : index
    %466 = memref.load %arg1[%c235] : memref<288xf32, #tpu.memory_space<smem>>
    %467 = vector.broadcast %466 : f32 to vector<16x16xf32>
    %468 = arith.mulf %339, %467 : vector<16x16xf32>
    %469 = arith.addf %465, %468 : vector<16x16xf32>
    %c236 = arith.constant 236 : index
    %470 = memref.load %arg1[%c236] : memref<288xf32, #tpu.memory_space<smem>>
    %471 = vector.broadcast %470 : f32 to vector<16x16xf32>
    %472 = arith.mulf %341, %471 : vector<16x16xf32>
    %473 = arith.addf %469, %472 : vector<16x16xf32>
    %c237 = arith.constant 237 : index
    %474 = memref.load %arg1[%c237] : memref<288xf32, #tpu.memory_space<smem>>
    %475 = vector.broadcast %474 : f32 to vector<16x16xf32>
    %476 = arith.mulf %343, %475 : vector<16x16xf32>
    %477 = arith.addf %473, %476 : vector<16x16xf32>
    %c238 = arith.constant 238 : index
    %478 = memref.load %arg1[%c238] : memref<288xf32, #tpu.memory_space<smem>>
    %479 = vector.broadcast %478 : f32 to vector<16x16xf32>
    %480 = arith.mulf %345, %479 : vector<16x16xf32>
    %481 = arith.addf %477, %480 : vector<16x16xf32>
    %c239 = arith.constant 239 : index
    %482 = memref.load %arg1[%c239] : memref<288xf32, #tpu.memory_space<smem>>
    %483 = vector.broadcast %482 : f32 to vector<16x16xf32>
    %484 = arith.mulf %347, %483 : vector<16x16xf32>
    %485 = arith.addf %481, %484 : vector<16x16xf32>
    %c240 = arith.constant 240 : index
    %486 = memref.load %arg1[%c240] : memref<288xf32, #tpu.memory_space<smem>>
    %487 = vector.broadcast %486 : f32 to vector<16x16xf32>
    %488 = arith.mulf %349, %487 : vector<16x16xf32>
    %489 = arith.addf %485, %488 : vector<16x16xf32>
    %c241 = arith.constant 241 : index
    %490 = memref.load %arg1[%c241] : memref<288xf32, #tpu.memory_space<smem>>
    %491 = vector.broadcast %490 : f32 to vector<16x16xf32>
    %492 = arith.mulf %351, %491 : vector<16x16xf32>
    %493 = arith.addf %489, %492 : vector<16x16xf32>
    %c242 = arith.constant 242 : index
    %494 = memref.load %arg1[%c242] : memref<288xf32, #tpu.memory_space<smem>>
    %495 = vector.broadcast %494 : f32 to vector<16x16xf32>
    %496 = arith.mulf %353, %495 : vector<16x16xf32>
    %497 = arith.addf %493, %496 : vector<16x16xf32>
    %c3_102 = arith.constant 3 : index
    %c0_103 = arith.constant 0 : index
    %c0_104 = arith.constant 0 : index
    %498 = vector.load %arg6[%c3_102, %c0_103, %c0_104] : memref<8x18x18xf32, #tpu.memory_space<vmem>>, vector<1x16x16xf32>
    %499 = vector.shape_cast %498 : vector<1x16x16xf32> to vector<16x16xf32>
    %c3_105 = arith.constant 3 : index
    %c0_106 = arith.constant 0 : index
    %c1_107 = arith.constant 1 : index
    %500 = vector.load %arg6[%c3_105, %c0_106, %c1_107] : memref<8x18x18xf32, #tpu.memory_space<vmem>>, vector<1x16x16xf32>
    %501 = vector.shape_cast %500 : vector<1x16x16xf32> to vector<16x16xf32>
    %c3_108 = arith.constant 3 : index
    %c0_109 = arith.constant 0 : index
    %c2_110 = arith.constant 2 : index
    %502 = vector.load %arg6[%c3_108, %c0_109, %c2_110] : memref<8x18x18xf32, #tpu.memory_space<vmem>>, vector<1x16x16xf32>
    %503 = vector.shape_cast %502 : vector<1x16x16xf32> to vector<16x16xf32>
    %c3_111 = arith.constant 3 : index
    %c1_112 = arith.constant 1 : index
    %c0_113 = arith.constant 0 : index
    %504 = vector.load %arg6[%c3_111, %c1_112, %c0_113] : memref<8x18x18xf32, #tpu.memory_space<vmem>>, vector<1x16x16xf32>
    %505 = vector.shape_cast %504 : vector<1x16x16xf32> to vector<16x16xf32>
    %c3_114 = arith.constant 3 : index
    %c1_115 = arith.constant 1 : index
    %c1_116 = arith.constant 1 : index
    %506 = vector.load %arg6[%c3_114, %c1_115, %c1_116] : memref<8x18x18xf32, #tpu.memory_space<vmem>>, vector<1x16x16xf32>
    %507 = vector.shape_cast %506 : vector<1x16x16xf32> to vector<16x16xf32>
    %c3_117 = arith.constant 3 : index
    %c1_118 = arith.constant 1 : index
    %c2_119 = arith.constant 2 : index
    %508 = vector.load %arg6[%c3_117, %c1_118, %c2_119] : memref<8x18x18xf32, #tpu.memory_space<vmem>>, vector<1x16x16xf32>
    %509 = vector.shape_cast %508 : vector<1x16x16xf32> to vector<16x16xf32>
    %c3_120 = arith.constant 3 : index
    %c2_121 = arith.constant 2 : index
    %c0_122 = arith.constant 0 : index
    %510 = vector.load %arg6[%c3_120, %c2_121, %c0_122] : memref<8x18x18xf32, #tpu.memory_space<vmem>>, vector<1x16x16xf32>
    %511 = vector.shape_cast %510 : vector<1x16x16xf32> to vector<16x16xf32>
    %c3_123 = arith.constant 3 : index
    %c2_124 = arith.constant 2 : index
    %c1_125 = arith.constant 1 : index
    %512 = vector.load %arg6[%c3_123, %c2_124, %c1_125] : memref<8x18x18xf32, #tpu.memory_space<vmem>>, vector<1x16x16xf32>
    %513 = vector.shape_cast %512 : vector<1x16x16xf32> to vector<16x16xf32>
    %c3_126 = arith.constant 3 : index
    %c2_127 = arith.constant 2 : index
    %c2_128 = arith.constant 2 : index
    %514 = vector.load %arg6[%c3_126, %c2_127, %c2_128] : memref<8x18x18xf32, #tpu.memory_space<vmem>>, vector<1x16x16xf32>
    %515 = vector.shape_cast %514 : vector<1x16x16xf32> to vector<16x16xf32>
    %c27 = arith.constant 27 : index
    %516 = memref.load %arg1[%c27] : memref<288xf32, #tpu.memory_space<smem>>
    %517 = vector.broadcast %516 : f32 to vector<16x16xf32>
    %518 = arith.mulf %499, %517 : vector<16x16xf32>
    %519 = arith.addf %389, %518 : vector<16x16xf32>
    %c28 = arith.constant 28 : index
    %520 = memref.load %arg1[%c28] : memref<288xf32, #tpu.memory_space<smem>>
    %521 = vector.broadcast %520 : f32 to vector<16x16xf32>
    %522 = arith.mulf %501, %521 : vector<16x16xf32>
    %523 = arith.addf %519, %522 : vector<16x16xf32>
    %c29 = arith.constant 29 : index
    %524 = memref.load %arg1[%c29] : memref<288xf32, #tpu.memory_space<smem>>
    %525 = vector.broadcast %524 : f32 to vector<16x16xf32>
    %526 = arith.mulf %503, %525 : vector<16x16xf32>
    %527 = arith.addf %523, %526 : vector<16x16xf32>
    %c30 = arith.constant 30 : index
    %528 = memref.load %arg1[%c30] : memref<288xf32, #tpu.memory_space<smem>>
    %529 = vector.broadcast %528 : f32 to vector<16x16xf32>
    %530 = arith.mulf %505, %529 : vector<16x16xf32>
    %531 = arith.addf %527, %530 : vector<16x16xf32>
    %c31 = arith.constant 31 : index
    %532 = memref.load %arg1[%c31] : memref<288xf32, #tpu.memory_space<smem>>
    %533 = vector.broadcast %532 : f32 to vector<16x16xf32>
    %534 = arith.mulf %507, %533 : vector<16x16xf32>
    %535 = arith.addf %531, %534 : vector<16x16xf32>
    %c32 = arith.constant 32 : index
    %536 = memref.load %arg1[%c32] : memref<288xf32, #tpu.memory_space<smem>>
    %537 = vector.broadcast %536 : f32 to vector<16x16xf32>
    %538 = arith.mulf %509, %537 : vector<16x16xf32>
    %539 = arith.addf %535, %538 : vector<16x16xf32>
    %c33 = arith.constant 33 : index
    %540 = memref.load %arg1[%c33] : memref<288xf32, #tpu.memory_space<smem>>
    %541 = vector.broadcast %540 : f32 to vector<16x16xf32>
    %542 = arith.mulf %511, %541 : vector<16x16xf32>
    %543 = arith.addf %539, %542 : vector<16x16xf32>
    %c34 = arith.constant 34 : index
    %544 = memref.load %arg1[%c34] : memref<288xf32, #tpu.memory_space<smem>>
    %545 = vector.broadcast %544 : f32 to vector<16x16xf32>
    %546 = arith.mulf %513, %545 : vector<16x16xf32>
    %547 = arith.addf %543, %546 : vector<16x16xf32>
    %c35 = arith.constant 35 : index
    %548 = memref.load %arg1[%c35] : memref<288xf32, #tpu.memory_space<smem>>
    %549 = vector.broadcast %548 : f32 to vector<16x16xf32>
    %550 = arith.mulf %515, %549 : vector<16x16xf32>
    %551 = arith.addf %547, %550 : vector<16x16xf32>
    %c99 = arith.constant 99 : index
    %552 = memref.load %arg1[%c99] : memref<288xf32, #tpu.memory_space<smem>>
    %553 = vector.broadcast %552 : f32 to vector<16x16xf32>
    %554 = arith.mulf %499, %553 : vector<16x16xf32>
    %555 = arith.addf %425, %554 : vector<16x16xf32>
    %c100 = arith.constant 100 : index
    %556 = memref.load %arg1[%c100] : memref<288xf32, #tpu.memory_space<smem>>
    %557 = vector.broadcast %556 : f32 to vector<16x16xf32>
    %558 = arith.mulf %501, %557 : vector<16x16xf32>
    %559 = arith.addf %555, %558 : vector<16x16xf32>
    %c101 = arith.constant 101 : index
    %560 = memref.load %arg1[%c101] : memref<288xf32, #tpu.memory_space<smem>>
    %561 = vector.broadcast %560 : f32 to vector<16x16xf32>
    %562 = arith.mulf %503, %561 : vector<16x16xf32>
    %563 = arith.addf %559, %562 : vector<16x16xf32>
    %c102 = arith.constant 102 : index
    %564 = memref.load %arg1[%c102] : memref<288xf32, #tpu.memory_space<smem>>
    %565 = vector.broadcast %564 : f32 to vector<16x16xf32>
    %566 = arith.mulf %505, %565 : vector<16x16xf32>
    %567 = arith.addf %563, %566 : vector<16x16xf32>
    %c103 = arith.constant 103 : index
    %568 = memref.load %arg1[%c103] : memref<288xf32, #tpu.memory_space<smem>>
    %569 = vector.broadcast %568 : f32 to vector<16x16xf32>
    %570 = arith.mulf %507, %569 : vector<16x16xf32>
    %571 = arith.addf %567, %570 : vector<16x16xf32>
    %c104 = arith.constant 104 : index
    %572 = memref.load %arg1[%c104] : memref<288xf32, #tpu.memory_space<smem>>
    %573 = vector.broadcast %572 : f32 to vector<16x16xf32>
    %574 = arith.mulf %509, %573 : vector<16x16xf32>
    %575 = arith.addf %571, %574 : vector<16x16xf32>
    %c105 = arith.constant 105 : index
    %576 = memref.load %arg1[%c105] : memref<288xf32, #tpu.memory_space<smem>>
    %577 = vector.broadcast %576 : f32 to vector<16x16xf32>
    %578 = arith.mulf %511, %577 : vector<16x16xf32>
    %579 = arith.addf %575, %578 : vector<16x16xf32>
    %c106 = arith.constant 106 : index
    %580 = memref.load %arg1[%c106] : memref<288xf32, #tpu.memory_space<smem>>
    %581 = vector.broadcast %580 : f32 to vector<16x16xf32>
    %582 = arith.mulf %513, %581 : vector<16x16xf32>
    %583 = arith.addf %579, %582 : vector<16x16xf32>
    %c107 = arith.constant 107 : index
    %584 = memref.load %arg1[%c107] : memref<288xf32, #tpu.memory_space<smem>>
    %585 = vector.broadcast %584 : f32 to vector<16x16xf32>
    %586 = arith.mulf %515, %585 : vector<16x16xf32>
    %587 = arith.addf %583, %586 : vector<16x16xf32>
    %c171 = arith.constant 171 : index
    %588 = memref.load %arg1[%c171] : memref<288xf32, #tpu.memory_space<smem>>
    %589 = vector.broadcast %588 : f32 to vector<16x16xf32>
    %590 = arith.mulf %499, %589 : vector<16x16xf32>
    %591 = arith.addf %461, %590 : vector<16x16xf32>
    %c172 = arith.constant 172 : index
    %592 = memref.load %arg1[%c172] : memref<288xf32, #tpu.memory_space<smem>>
    %593 = vector.broadcast %592 : f32 to vector<16x16xf32>
    %594 = arith.mulf %501, %593 : vector<16x16xf32>
    %595 = arith.addf %591, %594 : vector<16x16xf32>
    %c173 = arith.constant 173 : index
    %596 = memref.load %arg1[%c173] : memref<288xf32, #tpu.memory_space<smem>>
    %597 = vector.broadcast %596 : f32 to vector<16x16xf32>
    %598 = arith.mulf %503, %597 : vector<16x16xf32>
    %599 = arith.addf %595, %598 : vector<16x16xf32>
    %c174 = arith.constant 174 : index
    %600 = memref.load %arg1[%c174] : memref<288xf32, #tpu.memory_space<smem>>
    %601 = vector.broadcast %600 : f32 to vector<16x16xf32>
    %602 = arith.mulf %505, %601 : vector<16x16xf32>
    %603 = arith.addf %599, %602 : vector<16x16xf32>
    %c175 = arith.constant 175 : index
    %604 = memref.load %arg1[%c175] : memref<288xf32, #tpu.memory_space<smem>>
    %605 = vector.broadcast %604 : f32 to vector<16x16xf32>
    %606 = arith.mulf %507, %605 : vector<16x16xf32>
    %607 = arith.addf %603, %606 : vector<16x16xf32>
    %c176 = arith.constant 176 : index
    %608 = memref.load %arg1[%c176] : memref<288xf32, #tpu.memory_space<smem>>
    %609 = vector.broadcast %608 : f32 to vector<16x16xf32>
    %610 = arith.mulf %509, %609 : vector<16x16xf32>
    %611 = arith.addf %607, %610 : vector<16x16xf32>
    %c177 = arith.constant 177 : index
    %612 = memref.load %arg1[%c177] : memref<288xf32, #tpu.memory_space<smem>>
    %613 = vector.broadcast %612 : f32 to vector<16x16xf32>
    %614 = arith.mulf %511, %613 : vector<16x16xf32>
    %615 = arith.addf %611, %614 : vector<16x16xf32>
    %c178 = arith.constant 178 : index
    %616 = memref.load %arg1[%c178] : memref<288xf32, #tpu.memory_space<smem>>
    %617 = vector.broadcast %616 : f32 to vector<16x16xf32>
    %618 = arith.mulf %513, %617 : vector<16x16xf32>
    %619 = arith.addf %615, %618 : vector<16x16xf32>
    %c179 = arith.constant 179 : index
    %620 = memref.load %arg1[%c179] : memref<288xf32, #tpu.memory_space<smem>>
    %621 = vector.broadcast %620 : f32 to vector<16x16xf32>
    %622 = arith.mulf %515, %621 : vector<16x16xf32>
    %623 = arith.addf %619, %622 : vector<16x16xf32>
    %c243 = arith.constant 243 : index
    %624 = memref.load %arg1[%c243] : memref<288xf32, #tpu.memory_space<smem>>
    %625 = vector.broadcast %624 : f32 to vector<16x16xf32>
    %626 = arith.mulf %499, %625 : vector<16x16xf32>
    %627 = arith.addf %497, %626 : vector<16x16xf32>
    %c244 = arith.constant 244 : index
    %628 = memref.load %arg1[%c244] : memref<288xf32, #tpu.memory_space<smem>>
    %629 = vector.broadcast %628 : f32 to vector<16x16xf32>
    %630 = arith.mulf %501, %629 : vector<16x16xf32>
    %631 = arith.addf %627, %630 : vector<16x16xf32>
    %c245 = arith.constant 245 : index
    %632 = memref.load %arg1[%c245] : memref<288xf32, #tpu.memory_space<smem>>
    %633 = vector.broadcast %632 : f32 to vector<16x16xf32>
    %634 = arith.mulf %503, %633 : vector<16x16xf32>
    %635 = arith.addf %631, %634 : vector<16x16xf32>
    %c246 = arith.constant 246 : index
    %636 = memref.load %arg1[%c246] : memref<288xf32, #tpu.memory_space<smem>>
    %637 = vector.broadcast %636 : f32 to vector<16x16xf32>
    %638 = arith.mulf %505, %637 : vector<16x16xf32>
    %639 = arith.addf %635, %638 : vector<16x16xf32>
    %c247 = arith.constant 247 : index
    %640 = memref.load %arg1[%c247] : memref<288xf32, #tpu.memory_space<smem>>
    %641 = vector.broadcast %640 : f32 to vector<16x16xf32>
    %642 = arith.mulf %507, %641 : vector<16x16xf32>
    %643 = arith.addf %639, %642 : vector<16x16xf32>
    %c248 = arith.constant 248 : index
    %644 = memref.load %arg1[%c248] : memref<288xf32, #tpu.memory_space<smem>>
    %645 = vector.broadcast %644 : f32 to vector<16x16xf32>
    %646 = arith.mulf %509, %645 : vector<16x16xf32>
    %647 = arith.addf %643, %646 : vector<16x16xf32>
    %c249 = arith.constant 249 : index
    %648 = memref.load %arg1[%c249] : memref<288xf32, #tpu.memory_space<smem>>
    %649 = vector.broadcast %648 : f32 to vector<16x16xf32>
    %650 = arith.mulf %511, %649 : vector<16x16xf32>
    %651 = arith.addf %647, %650 : vector<16x16xf32>
    %c250 = arith.constant 250 : index
    %652 = memref.load %arg1[%c250] : memref<288xf32, #tpu.memory_space<smem>>
    %653 = vector.broadcast %652 : f32 to vector<16x16xf32>
    %654 = arith.mulf %513, %653 : vector<16x16xf32>
    %655 = arith.addf %651, %654 : vector<16x16xf32>
    %c251 = arith.constant 251 : index
    %656 = memref.load %arg1[%c251] : memref<288xf32, #tpu.memory_space<smem>>
    %657 = vector.broadcast %656 : f32 to vector<16x16xf32>
    %658 = arith.mulf %515, %657 : vector<16x16xf32>
    %659 = arith.addf %655, %658 : vector<16x16xf32>
    %c4_129 = arith.constant 4 : index
    %c0_130 = arith.constant 0 : index
    %c0_131 = arith.constant 0 : index
    %660 = vector.load %arg6[%c4_129, %c0_130, %c0_131] : memref<8x18x18xf32, #tpu.memory_space<vmem>>, vector<1x16x16xf32>
    %661 = vector.shape_cast %660 : vector<1x16x16xf32> to vector<16x16xf32>
    %c4_132 = arith.constant 4 : index
    %c0_133 = arith.constant 0 : index
    %c1_134 = arith.constant 1 : index
    %662 = vector.load %arg6[%c4_132, %c0_133, %c1_134] : memref<8x18x18xf32, #tpu.memory_space<vmem>>, vector<1x16x16xf32>
    %663 = vector.shape_cast %662 : vector<1x16x16xf32> to vector<16x16xf32>
    %c4_135 = arith.constant 4 : index
    %c0_136 = arith.constant 0 : index
    %c2_137 = arith.constant 2 : index
    %664 = vector.load %arg6[%c4_135, %c0_136, %c2_137] : memref<8x18x18xf32, #tpu.memory_space<vmem>>, vector<1x16x16xf32>
    %665 = vector.shape_cast %664 : vector<1x16x16xf32> to vector<16x16xf32>
    %c4_138 = arith.constant 4 : index
    %c1_139 = arith.constant 1 : index
    %c0_140 = arith.constant 0 : index
    %666 = vector.load %arg6[%c4_138, %c1_139, %c0_140] : memref<8x18x18xf32, #tpu.memory_space<vmem>>, vector<1x16x16xf32>
    %667 = vector.shape_cast %666 : vector<1x16x16xf32> to vector<16x16xf32>
    %c4_141 = arith.constant 4 : index
    %c1_142 = arith.constant 1 : index
    %c1_143 = arith.constant 1 : index
    %668 = vector.load %arg6[%c4_141, %c1_142, %c1_143] : memref<8x18x18xf32, #tpu.memory_space<vmem>>, vector<1x16x16xf32>
    %669 = vector.shape_cast %668 : vector<1x16x16xf32> to vector<16x16xf32>
    %c4_144 = arith.constant 4 : index
    %c1_145 = arith.constant 1 : index
    %c2_146 = arith.constant 2 : index
    %670 = vector.load %arg6[%c4_144, %c1_145, %c2_146] : memref<8x18x18xf32, #tpu.memory_space<vmem>>, vector<1x16x16xf32>
    %671 = vector.shape_cast %670 : vector<1x16x16xf32> to vector<16x16xf32>
    %c4_147 = arith.constant 4 : index
    %c2_148 = arith.constant 2 : index
    %c0_149 = arith.constant 0 : index
    %672 = vector.load %arg6[%c4_147, %c2_148, %c0_149] : memref<8x18x18xf32, #tpu.memory_space<vmem>>, vector<1x16x16xf32>
    %673 = vector.shape_cast %672 : vector<1x16x16xf32> to vector<16x16xf32>
    %c4_150 = arith.constant 4 : index
    %c2_151 = arith.constant 2 : index
    %c1_152 = arith.constant 1 : index
    %674 = vector.load %arg6[%c4_150, %c2_151, %c1_152] : memref<8x18x18xf32, #tpu.memory_space<vmem>>, vector<1x16x16xf32>
    %675 = vector.shape_cast %674 : vector<1x16x16xf32> to vector<16x16xf32>
    %c4_153 = arith.constant 4 : index
    %c2_154 = arith.constant 2 : index
    %c2_155 = arith.constant 2 : index
    %676 = vector.load %arg6[%c4_153, %c2_154, %c2_155] : memref<8x18x18xf32, #tpu.memory_space<vmem>>, vector<1x16x16xf32>
    %677 = vector.shape_cast %676 : vector<1x16x16xf32> to vector<16x16xf32>
    %c36 = arith.constant 36 : index
    %678 = memref.load %arg1[%c36] : memref<288xf32, #tpu.memory_space<smem>>
    %679 = vector.broadcast %678 : f32 to vector<16x16xf32>
    %680 = arith.mulf %661, %679 : vector<16x16xf32>
    %681 = arith.addf %551, %680 : vector<16x16xf32>
    %c37 = arith.constant 37 : index
    %682 = memref.load %arg1[%c37] : memref<288xf32, #tpu.memory_space<smem>>
    %683 = vector.broadcast %682 : f32 to vector<16x16xf32>
    %684 = arith.mulf %663, %683 : vector<16x16xf32>
    %685 = arith.addf %681, %684 : vector<16x16xf32>
    %c38 = arith.constant 38 : index
    %686 = memref.load %arg1[%c38] : memref<288xf32, #tpu.memory_space<smem>>
    %687 = vector.broadcast %686 : f32 to vector<16x16xf32>
    %688 = arith.mulf %665, %687 : vector<16x16xf32>
    %689 = arith.addf %685, %688 : vector<16x16xf32>
    %c39 = arith.constant 39 : index
    %690 = memref.load %arg1[%c39] : memref<288xf32, #tpu.memory_space<smem>>
    %691 = vector.broadcast %690 : f32 to vector<16x16xf32>
    %692 = arith.mulf %667, %691 : vector<16x16xf32>
    %693 = arith.addf %689, %692 : vector<16x16xf32>
    %c40 = arith.constant 40 : index
    %694 = memref.load %arg1[%c40] : memref<288xf32, #tpu.memory_space<smem>>
    %695 = vector.broadcast %694 : f32 to vector<16x16xf32>
    %696 = arith.mulf %669, %695 : vector<16x16xf32>
    %697 = arith.addf %693, %696 : vector<16x16xf32>
    %c41 = arith.constant 41 : index
    %698 = memref.load %arg1[%c41] : memref<288xf32, #tpu.memory_space<smem>>
    %699 = vector.broadcast %698 : f32 to vector<16x16xf32>
    %700 = arith.mulf %671, %699 : vector<16x16xf32>
    %701 = arith.addf %697, %700 : vector<16x16xf32>
    %c42 = arith.constant 42 : index
    %702 = memref.load %arg1[%c42] : memref<288xf32, #tpu.memory_space<smem>>
    %703 = vector.broadcast %702 : f32 to vector<16x16xf32>
    %704 = arith.mulf %673, %703 : vector<16x16xf32>
    %705 = arith.addf %701, %704 : vector<16x16xf32>
    %c43 = arith.constant 43 : index
    %706 = memref.load %arg1[%c43] : memref<288xf32, #tpu.memory_space<smem>>
    %707 = vector.broadcast %706 : f32 to vector<16x16xf32>
    %708 = arith.mulf %675, %707 : vector<16x16xf32>
    %709 = arith.addf %705, %708 : vector<16x16xf32>
    %c44 = arith.constant 44 : index
    %710 = memref.load %arg1[%c44] : memref<288xf32, #tpu.memory_space<smem>>
    %711 = vector.broadcast %710 : f32 to vector<16x16xf32>
    %712 = arith.mulf %677, %711 : vector<16x16xf32>
    %713 = arith.addf %709, %712 : vector<16x16xf32>
    %c108 = arith.constant 108 : index
    %714 = memref.load %arg1[%c108] : memref<288xf32, #tpu.memory_space<smem>>
    %715 = vector.broadcast %714 : f32 to vector<16x16xf32>
    %716 = arith.mulf %661, %715 : vector<16x16xf32>
    %717 = arith.addf %587, %716 : vector<16x16xf32>
    %c109 = arith.constant 109 : index
    %718 = memref.load %arg1[%c109] : memref<288xf32, #tpu.memory_space<smem>>
    %719 = vector.broadcast %718 : f32 to vector<16x16xf32>
    %720 = arith.mulf %663, %719 : vector<16x16xf32>
    %721 = arith.addf %717, %720 : vector<16x16xf32>
    %c110 = arith.constant 110 : index
    %722 = memref.load %arg1[%c110] : memref<288xf32, #tpu.memory_space<smem>>
    %723 = vector.broadcast %722 : f32 to vector<16x16xf32>
    %724 = arith.mulf %665, %723 : vector<16x16xf32>
    %725 = arith.addf %721, %724 : vector<16x16xf32>
    %c111 = arith.constant 111 : index
    %726 = memref.load %arg1[%c111] : memref<288xf32, #tpu.memory_space<smem>>
    %727 = vector.broadcast %726 : f32 to vector<16x16xf32>
    %728 = arith.mulf %667, %727 : vector<16x16xf32>
    %729 = arith.addf %725, %728 : vector<16x16xf32>
    %c112 = arith.constant 112 : index
    %730 = memref.load %arg1[%c112] : memref<288xf32, #tpu.memory_space<smem>>
    %731 = vector.broadcast %730 : f32 to vector<16x16xf32>
    %732 = arith.mulf %669, %731 : vector<16x16xf32>
    %733 = arith.addf %729, %732 : vector<16x16xf32>
    %c113 = arith.constant 113 : index
    %734 = memref.load %arg1[%c113] : memref<288xf32, #tpu.memory_space<smem>>
    %735 = vector.broadcast %734 : f32 to vector<16x16xf32>
    %736 = arith.mulf %671, %735 : vector<16x16xf32>
    %737 = arith.addf %733, %736 : vector<16x16xf32>
    %c114 = arith.constant 114 : index
    %738 = memref.load %arg1[%c114] : memref<288xf32, #tpu.memory_space<smem>>
    %739 = vector.broadcast %738 : f32 to vector<16x16xf32>
    %740 = arith.mulf %673, %739 : vector<16x16xf32>
    %741 = arith.addf %737, %740 : vector<16x16xf32>
    %c115 = arith.constant 115 : index
    %742 = memref.load %arg1[%c115] : memref<288xf32, #tpu.memory_space<smem>>
    %743 = vector.broadcast %742 : f32 to vector<16x16xf32>
    %744 = arith.mulf %675, %743 : vector<16x16xf32>
    %745 = arith.addf %741, %744 : vector<16x16xf32>
    %c116 = arith.constant 116 : index
    %746 = memref.load %arg1[%c116] : memref<288xf32, #tpu.memory_space<smem>>
    %747 = vector.broadcast %746 : f32 to vector<16x16xf32>
    %748 = arith.mulf %677, %747 : vector<16x16xf32>
    %749 = arith.addf %745, %748 : vector<16x16xf32>
    %c180 = arith.constant 180 : index
    %750 = memref.load %arg1[%c180] : memref<288xf32, #tpu.memory_space<smem>>
    %751 = vector.broadcast %750 : f32 to vector<16x16xf32>
    %752 = arith.mulf %661, %751 : vector<16x16xf32>
    %753 = arith.addf %623, %752 : vector<16x16xf32>
    %c181 = arith.constant 181 : index
    %754 = memref.load %arg1[%c181] : memref<288xf32, #tpu.memory_space<smem>>
    %755 = vector.broadcast %754 : f32 to vector<16x16xf32>
    %756 = arith.mulf %663, %755 : vector<16x16xf32>
    %757 = arith.addf %753, %756 : vector<16x16xf32>
    %c182 = arith.constant 182 : index
    %758 = memref.load %arg1[%c182] : memref<288xf32, #tpu.memory_space<smem>>
    %759 = vector.broadcast %758 : f32 to vector<16x16xf32>
    %760 = arith.mulf %665, %759 : vector<16x16xf32>
    %761 = arith.addf %757, %760 : vector<16x16xf32>
    %c183 = arith.constant 183 : index
    %762 = memref.load %arg1[%c183] : memref<288xf32, #tpu.memory_space<smem>>
    %763 = vector.broadcast %762 : f32 to vector<16x16xf32>
    %764 = arith.mulf %667, %763 : vector<16x16xf32>
    %765 = arith.addf %761, %764 : vector<16x16xf32>
    %c184 = arith.constant 184 : index
    %766 = memref.load %arg1[%c184] : memref<288xf32, #tpu.memory_space<smem>>
    %767 = vector.broadcast %766 : f32 to vector<16x16xf32>
    %768 = arith.mulf %669, %767 : vector<16x16xf32>
    %769 = arith.addf %765, %768 : vector<16x16xf32>
    %c185 = arith.constant 185 : index
    %770 = memref.load %arg1[%c185] : memref<288xf32, #tpu.memory_space<smem>>
    %771 = vector.broadcast %770 : f32 to vector<16x16xf32>
    %772 = arith.mulf %671, %771 : vector<16x16xf32>
    %773 = arith.addf %769, %772 : vector<16x16xf32>
    %c186 = arith.constant 186 : index
    %774 = memref.load %arg1[%c186] : memref<288xf32, #tpu.memory_space<smem>>
    %775 = vector.broadcast %774 : f32 to vector<16x16xf32>
    %776 = arith.mulf %673, %775 : vector<16x16xf32>
    %777 = arith.addf %773, %776 : vector<16x16xf32>
    %c187 = arith.constant 187 : index
    %778 = memref.load %arg1[%c187] : memref<288xf32, #tpu.memory_space<smem>>
    %779 = vector.broadcast %778 : f32 to vector<16x16xf32>
    %780 = arith.mulf %675, %779 : vector<16x16xf32>
    %781 = arith.addf %777, %780 : vector<16x16xf32>
    %c188 = arith.constant 188 : index
    %782 = memref.load %arg1[%c188] : memref<288xf32, #tpu.memory_space<smem>>
    %783 = vector.broadcast %782 : f32 to vector<16x16xf32>
    %784 = arith.mulf %677, %783 : vector<16x16xf32>
    %785 = arith.addf %781, %784 : vector<16x16xf32>
    %c252 = arith.constant 252 : index
    %786 = memref.load %arg1[%c252] : memref<288xf32, #tpu.memory_space<smem>>
    %787 = vector.broadcast %786 : f32 to vector<16x16xf32>
    %788 = arith.mulf %661, %787 : vector<16x16xf32>
    %789 = arith.addf %659, %788 : vector<16x16xf32>
    %c253 = arith.constant 253 : index
    %790 = memref.load %arg1[%c253] : memref<288xf32, #tpu.memory_space<smem>>
    %791 = vector.broadcast %790 : f32 to vector<16x16xf32>
    %792 = arith.mulf %663, %791 : vector<16x16xf32>
    %793 = arith.addf %789, %792 : vector<16x16xf32>
    %c254 = arith.constant 254 : index
    %794 = memref.load %arg1[%c254] : memref<288xf32, #tpu.memory_space<smem>>
    %795 = vector.broadcast %794 : f32 to vector<16x16xf32>
    %796 = arith.mulf %665, %795 : vector<16x16xf32>
    %797 = arith.addf %793, %796 : vector<16x16xf32>
    %c255 = arith.constant 255 : index
    %798 = memref.load %arg1[%c255] : memref<288xf32, #tpu.memory_space<smem>>
    %799 = vector.broadcast %798 : f32 to vector<16x16xf32>
    %800 = arith.mulf %667, %799 : vector<16x16xf32>
    %801 = arith.addf %797, %800 : vector<16x16xf32>
    %c256 = arith.constant 256 : index
    %802 = memref.load %arg1[%c256] : memref<288xf32, #tpu.memory_space<smem>>
    %803 = vector.broadcast %802 : f32 to vector<16x16xf32>
    %804 = arith.mulf %669, %803 : vector<16x16xf32>
    %805 = arith.addf %801, %804 : vector<16x16xf32>
    %c257 = arith.constant 257 : index
    %806 = memref.load %arg1[%c257] : memref<288xf32, #tpu.memory_space<smem>>
    %807 = vector.broadcast %806 : f32 to vector<16x16xf32>
    %808 = arith.mulf %671, %807 : vector<16x16xf32>
    %809 = arith.addf %805, %808 : vector<16x16xf32>
    %c258 = arith.constant 258 : index
    %810 = memref.load %arg1[%c258] : memref<288xf32, #tpu.memory_space<smem>>
    %811 = vector.broadcast %810 : f32 to vector<16x16xf32>
    %812 = arith.mulf %673, %811 : vector<16x16xf32>
    %813 = arith.addf %809, %812 : vector<16x16xf32>
    %c259 = arith.constant 259 : index
    %814 = memref.load %arg1[%c259] : memref<288xf32, #tpu.memory_space<smem>>
    %815 = vector.broadcast %814 : f32 to vector<16x16xf32>
    %816 = arith.mulf %675, %815 : vector<16x16xf32>
    %817 = arith.addf %813, %816 : vector<16x16xf32>
    %c260 = arith.constant 260 : index
    %818 = memref.load %arg1[%c260] : memref<288xf32, #tpu.memory_space<smem>>
    %819 = vector.broadcast %818 : f32 to vector<16x16xf32>
    %820 = arith.mulf %677, %819 : vector<16x16xf32>
    %821 = arith.addf %817, %820 : vector<16x16xf32>
    %c5_156 = arith.constant 5 : index
    %c0_157 = arith.constant 0 : index
    %c0_158 = arith.constant 0 : index
    %822 = vector.load %arg6[%c5_156, %c0_157, %c0_158] : memref<8x18x18xf32, #tpu.memory_space<vmem>>, vector<1x16x16xf32>
    %823 = vector.shape_cast %822 : vector<1x16x16xf32> to vector<16x16xf32>
    %c5_159 = arith.constant 5 : index
    %c0_160 = arith.constant 0 : index
    %c1_161 = arith.constant 1 : index
    %824 = vector.load %arg6[%c5_159, %c0_160, %c1_161] : memref<8x18x18xf32, #tpu.memory_space<vmem>>, vector<1x16x16xf32>
    %825 = vector.shape_cast %824 : vector<1x16x16xf32> to vector<16x16xf32>
    %c5_162 = arith.constant 5 : index
    %c0_163 = arith.constant 0 : index
    %c2_164 = arith.constant 2 : index
    %826 = vector.load %arg6[%c5_162, %c0_163, %c2_164] : memref<8x18x18xf32, #tpu.memory_space<vmem>>, vector<1x16x16xf32>
    %827 = vector.shape_cast %826 : vector<1x16x16xf32> to vector<16x16xf32>
    %c5_165 = arith.constant 5 : index
    %c1_166 = arith.constant 1 : index
    %c0_167 = arith.constant 0 : index
    %828 = vector.load %arg6[%c5_165, %c1_166, %c0_167] : memref<8x18x18xf32, #tpu.memory_space<vmem>>, vector<1x16x16xf32>
    %829 = vector.shape_cast %828 : vector<1x16x16xf32> to vector<16x16xf32>
    %c5_168 = arith.constant 5 : index
    %c1_169 = arith.constant 1 : index
    %c1_170 = arith.constant 1 : index
    %830 = vector.load %arg6[%c5_168, %c1_169, %c1_170] : memref<8x18x18xf32, #tpu.memory_space<vmem>>, vector<1x16x16xf32>
    %831 = vector.shape_cast %830 : vector<1x16x16xf32> to vector<16x16xf32>
    %c5_171 = arith.constant 5 : index
    %c1_172 = arith.constant 1 : index
    %c2_173 = arith.constant 2 : index
    %832 = vector.load %arg6[%c5_171, %c1_172, %c2_173] : memref<8x18x18xf32, #tpu.memory_space<vmem>>, vector<1x16x16xf32>
    %833 = vector.shape_cast %832 : vector<1x16x16xf32> to vector<16x16xf32>
    %c5_174 = arith.constant 5 : index
    %c2_175 = arith.constant 2 : index
    %c0_176 = arith.constant 0 : index
    %834 = vector.load %arg6[%c5_174, %c2_175, %c0_176] : memref<8x18x18xf32, #tpu.memory_space<vmem>>, vector<1x16x16xf32>
    %835 = vector.shape_cast %834 : vector<1x16x16xf32> to vector<16x16xf32>
    %c5_177 = arith.constant 5 : index
    %c2_178 = arith.constant 2 : index
    %c1_179 = arith.constant 1 : index
    %836 = vector.load %arg6[%c5_177, %c2_178, %c1_179] : memref<8x18x18xf32, #tpu.memory_space<vmem>>, vector<1x16x16xf32>
    %837 = vector.shape_cast %836 : vector<1x16x16xf32> to vector<16x16xf32>
    %c5_180 = arith.constant 5 : index
    %c2_181 = arith.constant 2 : index
    %c2_182 = arith.constant 2 : index
    %838 = vector.load %arg6[%c5_180, %c2_181, %c2_182] : memref<8x18x18xf32, #tpu.memory_space<vmem>>, vector<1x16x16xf32>
    %839 = vector.shape_cast %838 : vector<1x16x16xf32> to vector<16x16xf32>
    %c45 = arith.constant 45 : index
    %840 = memref.load %arg1[%c45] : memref<288xf32, #tpu.memory_space<smem>>
    %841 = vector.broadcast %840 : f32 to vector<16x16xf32>
    %842 = arith.mulf %823, %841 : vector<16x16xf32>
    %843 = arith.addf %713, %842 : vector<16x16xf32>
    %c46 = arith.constant 46 : index
    %844 = memref.load %arg1[%c46] : memref<288xf32, #tpu.memory_space<smem>>
    %845 = vector.broadcast %844 : f32 to vector<16x16xf32>
    %846 = arith.mulf %825, %845 : vector<16x16xf32>
    %847 = arith.addf %843, %846 : vector<16x16xf32>
    %c47 = arith.constant 47 : index
    %848 = memref.load %arg1[%c47] : memref<288xf32, #tpu.memory_space<smem>>
    %849 = vector.broadcast %848 : f32 to vector<16x16xf32>
    %850 = arith.mulf %827, %849 : vector<16x16xf32>
    %851 = arith.addf %847, %850 : vector<16x16xf32>
    %c48 = arith.constant 48 : index
    %852 = memref.load %arg1[%c48] : memref<288xf32, #tpu.memory_space<smem>>
    %853 = vector.broadcast %852 : f32 to vector<16x16xf32>
    %854 = arith.mulf %829, %853 : vector<16x16xf32>
    %855 = arith.addf %851, %854 : vector<16x16xf32>
    %c49 = arith.constant 49 : index
    %856 = memref.load %arg1[%c49] : memref<288xf32, #tpu.memory_space<smem>>
    %857 = vector.broadcast %856 : f32 to vector<16x16xf32>
    %858 = arith.mulf %831, %857 : vector<16x16xf32>
    %859 = arith.addf %855, %858 : vector<16x16xf32>
    %c50 = arith.constant 50 : index
    %860 = memref.load %arg1[%c50] : memref<288xf32, #tpu.memory_space<smem>>
    %861 = vector.broadcast %860 : f32 to vector<16x16xf32>
    %862 = arith.mulf %833, %861 : vector<16x16xf32>
    %863 = arith.addf %859, %862 : vector<16x16xf32>
    %c51 = arith.constant 51 : index
    %864 = memref.load %arg1[%c51] : memref<288xf32, #tpu.memory_space<smem>>
    %865 = vector.broadcast %864 : f32 to vector<16x16xf32>
    %866 = arith.mulf %835, %865 : vector<16x16xf32>
    %867 = arith.addf %863, %866 : vector<16x16xf32>
    %c52 = arith.constant 52 : index
    %868 = memref.load %arg1[%c52] : memref<288xf32, #tpu.memory_space<smem>>
    %869 = vector.broadcast %868 : f32 to vector<16x16xf32>
    %870 = arith.mulf %837, %869 : vector<16x16xf32>
    %871 = arith.addf %867, %870 : vector<16x16xf32>
    %c53 = arith.constant 53 : index
    %872 = memref.load %arg1[%c53] : memref<288xf32, #tpu.memory_space<smem>>
    %873 = vector.broadcast %872 : f32 to vector<16x16xf32>
    %874 = arith.mulf %839, %873 : vector<16x16xf32>
    %875 = arith.addf %871, %874 : vector<16x16xf32>
    %c117 = arith.constant 117 : index
    %876 = memref.load %arg1[%c117] : memref<288xf32, #tpu.memory_space<smem>>
    %877 = vector.broadcast %876 : f32 to vector<16x16xf32>
    %878 = arith.mulf %823, %877 : vector<16x16xf32>
    %879 = arith.addf %749, %878 : vector<16x16xf32>
    %c118 = arith.constant 118 : index
    %880 = memref.load %arg1[%c118] : memref<288xf32, #tpu.memory_space<smem>>
    %881 = vector.broadcast %880 : f32 to vector<16x16xf32>
    %882 = arith.mulf %825, %881 : vector<16x16xf32>
    %883 = arith.addf %879, %882 : vector<16x16xf32>
    %c119 = arith.constant 119 : index
    %884 = memref.load %arg1[%c119] : memref<288xf32, #tpu.memory_space<smem>>
    %885 = vector.broadcast %884 : f32 to vector<16x16xf32>
    %886 = arith.mulf %827, %885 : vector<16x16xf32>
    %887 = arith.addf %883, %886 : vector<16x16xf32>
    %c120 = arith.constant 120 : index
    %888 = memref.load %arg1[%c120] : memref<288xf32, #tpu.memory_space<smem>>
    %889 = vector.broadcast %888 : f32 to vector<16x16xf32>
    %890 = arith.mulf %829, %889 : vector<16x16xf32>
    %891 = arith.addf %887, %890 : vector<16x16xf32>
    %c121 = arith.constant 121 : index
    %892 = memref.load %arg1[%c121] : memref<288xf32, #tpu.memory_space<smem>>
    %893 = vector.broadcast %892 : f32 to vector<16x16xf32>
    %894 = arith.mulf %831, %893 : vector<16x16xf32>
    %895 = arith.addf %891, %894 : vector<16x16xf32>
    %c122 = arith.constant 122 : index
    %896 = memref.load %arg1[%c122] : memref<288xf32, #tpu.memory_space<smem>>
    %897 = vector.broadcast %896 : f32 to vector<16x16xf32>
    %898 = arith.mulf %833, %897 : vector<16x16xf32>
    %899 = arith.addf %895, %898 : vector<16x16xf32>
    %c123 = arith.constant 123 : index
    %900 = memref.load %arg1[%c123] : memref<288xf32, #tpu.memory_space<smem>>
    %901 = vector.broadcast %900 : f32 to vector<16x16xf32>
    %902 = arith.mulf %835, %901 : vector<16x16xf32>
    %903 = arith.addf %899, %902 : vector<16x16xf32>
    %c124 = arith.constant 124 : index
    %904 = memref.load %arg1[%c124] : memref<288xf32, #tpu.memory_space<smem>>
    %905 = vector.broadcast %904 : f32 to vector<16x16xf32>
    %906 = arith.mulf %837, %905 : vector<16x16xf32>
    %907 = arith.addf %903, %906 : vector<16x16xf32>
    %c125 = arith.constant 125 : index
    %908 = memref.load %arg1[%c125] : memref<288xf32, #tpu.memory_space<smem>>
    %909 = vector.broadcast %908 : f32 to vector<16x16xf32>
    %910 = arith.mulf %839, %909 : vector<16x16xf32>
    %911 = arith.addf %907, %910 : vector<16x16xf32>
    %c189 = arith.constant 189 : index
    %912 = memref.load %arg1[%c189] : memref<288xf32, #tpu.memory_space<smem>>
    %913 = vector.broadcast %912 : f32 to vector<16x16xf32>
    %914 = arith.mulf %823, %913 : vector<16x16xf32>
    %915 = arith.addf %785, %914 : vector<16x16xf32>
    %c190 = arith.constant 190 : index
    %916 = memref.load %arg1[%c190] : memref<288xf32, #tpu.memory_space<smem>>
    %917 = vector.broadcast %916 : f32 to vector<16x16xf32>
    %918 = arith.mulf %825, %917 : vector<16x16xf32>
    %919 = arith.addf %915, %918 : vector<16x16xf32>
    %c191 = arith.constant 191 : index
    %920 = memref.load %arg1[%c191] : memref<288xf32, #tpu.memory_space<smem>>
    %921 = vector.broadcast %920 : f32 to vector<16x16xf32>
    %922 = arith.mulf %827, %921 : vector<16x16xf32>
    %923 = arith.addf %919, %922 : vector<16x16xf32>
    %c192 = arith.constant 192 : index
    %924 = memref.load %arg1[%c192] : memref<288xf32, #tpu.memory_space<smem>>
    %925 = vector.broadcast %924 : f32 to vector<16x16xf32>
    %926 = arith.mulf %829, %925 : vector<16x16xf32>
    %927 = arith.addf %923, %926 : vector<16x16xf32>
    %c193 = arith.constant 193 : index
    %928 = memref.load %arg1[%c193] : memref<288xf32, #tpu.memory_space<smem>>
    %929 = vector.broadcast %928 : f32 to vector<16x16xf32>
    %930 = arith.mulf %831, %929 : vector<16x16xf32>
    %931 = arith.addf %927, %930 : vector<16x16xf32>
    %c194 = arith.constant 194 : index
    %932 = memref.load %arg1[%c194] : memref<288xf32, #tpu.memory_space<smem>>
    %933 = vector.broadcast %932 : f32 to vector<16x16xf32>
    %934 = arith.mulf %833, %933 : vector<16x16xf32>
    %935 = arith.addf %931, %934 : vector<16x16xf32>
    %c195 = arith.constant 195 : index
    %936 = memref.load %arg1[%c195] : memref<288xf32, #tpu.memory_space<smem>>
    %937 = vector.broadcast %936 : f32 to vector<16x16xf32>
    %938 = arith.mulf %835, %937 : vector<16x16xf32>
    %939 = arith.addf %935, %938 : vector<16x16xf32>
    %c196 = arith.constant 196 : index
    %940 = memref.load %arg1[%c196] : memref<288xf32, #tpu.memory_space<smem>>
    %941 = vector.broadcast %940 : f32 to vector<16x16xf32>
    %942 = arith.mulf %837, %941 : vector<16x16xf32>
    %943 = arith.addf %939, %942 : vector<16x16xf32>
    %c197 = arith.constant 197 : index
    %944 = memref.load %arg1[%c197] : memref<288xf32, #tpu.memory_space<smem>>
    %945 = vector.broadcast %944 : f32 to vector<16x16xf32>
    %946 = arith.mulf %839, %945 : vector<16x16xf32>
    %947 = arith.addf %943, %946 : vector<16x16xf32>
    %c261 = arith.constant 261 : index
    %948 = memref.load %arg1[%c261] : memref<288xf32, #tpu.memory_space<smem>>
    %949 = vector.broadcast %948 : f32 to vector<16x16xf32>
    %950 = arith.mulf %823, %949 : vector<16x16xf32>
    %951 = arith.addf %821, %950 : vector<16x16xf32>
    %c262 = arith.constant 262 : index
    %952 = memref.load %arg1[%c262] : memref<288xf32, #tpu.memory_space<smem>>
    %953 = vector.broadcast %952 : f32 to vector<16x16xf32>
    %954 = arith.mulf %825, %953 : vector<16x16xf32>
    %955 = arith.addf %951, %954 : vector<16x16xf32>
    %c263 = arith.constant 263 : index
    %956 = memref.load %arg1[%c263] : memref<288xf32, #tpu.memory_space<smem>>
    %957 = vector.broadcast %956 : f32 to vector<16x16xf32>
    %958 = arith.mulf %827, %957 : vector<16x16xf32>
    %959 = arith.addf %955, %958 : vector<16x16xf32>
    %c264 = arith.constant 264 : index
    %960 = memref.load %arg1[%c264] : memref<288xf32, #tpu.memory_space<smem>>
    %961 = vector.broadcast %960 : f32 to vector<16x16xf32>
    %962 = arith.mulf %829, %961 : vector<16x16xf32>
    %963 = arith.addf %959, %962 : vector<16x16xf32>
    %c265 = arith.constant 265 : index
    %964 = memref.load %arg1[%c265] : memref<288xf32, #tpu.memory_space<smem>>
    %965 = vector.broadcast %964 : f32 to vector<16x16xf32>
    %966 = arith.mulf %831, %965 : vector<16x16xf32>
    %967 = arith.addf %963, %966 : vector<16x16xf32>
    %c266 = arith.constant 266 : index
    %968 = memref.load %arg1[%c266] : memref<288xf32, #tpu.memory_space<smem>>
    %969 = vector.broadcast %968 : f32 to vector<16x16xf32>
    %970 = arith.mulf %833, %969 : vector<16x16xf32>
    %971 = arith.addf %967, %970 : vector<16x16xf32>
    %c267 = arith.constant 267 : index
    %972 = memref.load %arg1[%c267] : memref<288xf32, #tpu.memory_space<smem>>
    %973 = vector.broadcast %972 : f32 to vector<16x16xf32>
    %974 = arith.mulf %835, %973 : vector<16x16xf32>
    %975 = arith.addf %971, %974 : vector<16x16xf32>
    %c268 = arith.constant 268 : index
    %976 = memref.load %arg1[%c268] : memref<288xf32, #tpu.memory_space<smem>>
    %977 = vector.broadcast %976 : f32 to vector<16x16xf32>
    %978 = arith.mulf %837, %977 : vector<16x16xf32>
    %979 = arith.addf %975, %978 : vector<16x16xf32>
    %c269 = arith.constant 269 : index
    %980 = memref.load %arg1[%c269] : memref<288xf32, #tpu.memory_space<smem>>
    %981 = vector.broadcast %980 : f32 to vector<16x16xf32>
    %982 = arith.mulf %839, %981 : vector<16x16xf32>
    %983 = arith.addf %979, %982 : vector<16x16xf32>
    %c6_183 = arith.constant 6 : index
    %c0_184 = arith.constant 0 : index
    %c0_185 = arith.constant 0 : index
    %984 = vector.load %arg6[%c6_183, %c0_184, %c0_185] : memref<8x18x18xf32, #tpu.memory_space<vmem>>, vector<1x16x16xf32>
    %985 = vector.shape_cast %984 : vector<1x16x16xf32> to vector<16x16xf32>
    %c6_186 = arith.constant 6 : index
    %c0_187 = arith.constant 0 : index
    %c1_188 = arith.constant 1 : index
    %986 = vector.load %arg6[%c6_186, %c0_187, %c1_188] : memref<8x18x18xf32, #tpu.memory_space<vmem>>, vector<1x16x16xf32>
    %987 = vector.shape_cast %986 : vector<1x16x16xf32> to vector<16x16xf32>
    %c6_189 = arith.constant 6 : index
    %c0_190 = arith.constant 0 : index
    %c2_191 = arith.constant 2 : index
    %988 = vector.load %arg6[%c6_189, %c0_190, %c2_191] : memref<8x18x18xf32, #tpu.memory_space<vmem>>, vector<1x16x16xf32>
    %989 = vector.shape_cast %988 : vector<1x16x16xf32> to vector<16x16xf32>
    %c6_192 = arith.constant 6 : index
    %c1_193 = arith.constant 1 : index
    %c0_194 = arith.constant 0 : index
    %990 = vector.load %arg6[%c6_192, %c1_193, %c0_194] : memref<8x18x18xf32, #tpu.memory_space<vmem>>, vector<1x16x16xf32>
    %991 = vector.shape_cast %990 : vector<1x16x16xf32> to vector<16x16xf32>
    %c6_195 = arith.constant 6 : index
    %c1_196 = arith.constant 1 : index
    %c1_197 = arith.constant 1 : index
    %992 = vector.load %arg6[%c6_195, %c1_196, %c1_197] : memref<8x18x18xf32, #tpu.memory_space<vmem>>, vector<1x16x16xf32>
    %993 = vector.shape_cast %992 : vector<1x16x16xf32> to vector<16x16xf32>
    %c6_198 = arith.constant 6 : index
    %c1_199 = arith.constant 1 : index
    %c2_200 = arith.constant 2 : index
    %994 = vector.load %arg6[%c6_198, %c1_199, %c2_200] : memref<8x18x18xf32, #tpu.memory_space<vmem>>, vector<1x16x16xf32>
    %995 = vector.shape_cast %994 : vector<1x16x16xf32> to vector<16x16xf32>
    %c6_201 = arith.constant 6 : index
    %c2_202 = arith.constant 2 : index
    %c0_203 = arith.constant 0 : index
    %996 = vector.load %arg6[%c6_201, %c2_202, %c0_203] : memref<8x18x18xf32, #tpu.memory_space<vmem>>, vector<1x16x16xf32>
    %997 = vector.shape_cast %996 : vector<1x16x16xf32> to vector<16x16xf32>
    %c6_204 = arith.constant 6 : index
    %c2_205 = arith.constant 2 : index
    %c1_206 = arith.constant 1 : index
    %998 = vector.load %arg6[%c6_204, %c2_205, %c1_206] : memref<8x18x18xf32, #tpu.memory_space<vmem>>, vector<1x16x16xf32>
    %999 = vector.shape_cast %998 : vector<1x16x16xf32> to vector<16x16xf32>
    %c6_207 = arith.constant 6 : index
    %c2_208 = arith.constant 2 : index
    %c2_209 = arith.constant 2 : index
    %1000 = vector.load %arg6[%c6_207, %c2_208, %c2_209] : memref<8x18x18xf32, #tpu.memory_space<vmem>>, vector<1x16x16xf32>
    %1001 = vector.shape_cast %1000 : vector<1x16x16xf32> to vector<16x16xf32>
    %c54 = arith.constant 54 : index
    %1002 = memref.load %arg1[%c54] : memref<288xf32, #tpu.memory_space<smem>>
    %1003 = vector.broadcast %1002 : f32 to vector<16x16xf32>
    %1004 = arith.mulf %985, %1003 : vector<16x16xf32>
    %1005 = arith.addf %875, %1004 : vector<16x16xf32>
    %c55 = arith.constant 55 : index
    %1006 = memref.load %arg1[%c55] : memref<288xf32, #tpu.memory_space<smem>>
    %1007 = vector.broadcast %1006 : f32 to vector<16x16xf32>
    %1008 = arith.mulf %987, %1007 : vector<16x16xf32>
    %1009 = arith.addf %1005, %1008 : vector<16x16xf32>
    %c56 = arith.constant 56 : index
    %1010 = memref.load %arg1[%c56] : memref<288xf32, #tpu.memory_space<smem>>
    %1011 = vector.broadcast %1010 : f32 to vector<16x16xf32>
    %1012 = arith.mulf %989, %1011 : vector<16x16xf32>
    %1013 = arith.addf %1009, %1012 : vector<16x16xf32>
    %c57 = arith.constant 57 : index
    %1014 = memref.load %arg1[%c57] : memref<288xf32, #tpu.memory_space<smem>>
    %1015 = vector.broadcast %1014 : f32 to vector<16x16xf32>
    %1016 = arith.mulf %991, %1015 : vector<16x16xf32>
    %1017 = arith.addf %1013, %1016 : vector<16x16xf32>
    %c58 = arith.constant 58 : index
    %1018 = memref.load %arg1[%c58] : memref<288xf32, #tpu.memory_space<smem>>
    %1019 = vector.broadcast %1018 : f32 to vector<16x16xf32>
    %1020 = arith.mulf %993, %1019 : vector<16x16xf32>
    %1021 = arith.addf %1017, %1020 : vector<16x16xf32>
    %c59 = arith.constant 59 : index
    %1022 = memref.load %arg1[%c59] : memref<288xf32, #tpu.memory_space<smem>>
    %1023 = vector.broadcast %1022 : f32 to vector<16x16xf32>
    %1024 = arith.mulf %995, %1023 : vector<16x16xf32>
    %1025 = arith.addf %1021, %1024 : vector<16x16xf32>
    %c60 = arith.constant 60 : index
    %1026 = memref.load %arg1[%c60] : memref<288xf32, #tpu.memory_space<smem>>
    %1027 = vector.broadcast %1026 : f32 to vector<16x16xf32>
    %1028 = arith.mulf %997, %1027 : vector<16x16xf32>
    %1029 = arith.addf %1025, %1028 : vector<16x16xf32>
    %c61 = arith.constant 61 : index
    %1030 = memref.load %arg1[%c61] : memref<288xf32, #tpu.memory_space<smem>>
    %1031 = vector.broadcast %1030 : f32 to vector<16x16xf32>
    %1032 = arith.mulf %999, %1031 : vector<16x16xf32>
    %1033 = arith.addf %1029, %1032 : vector<16x16xf32>
    %c62 = arith.constant 62 : index
    %1034 = memref.load %arg1[%c62] : memref<288xf32, #tpu.memory_space<smem>>
    %1035 = vector.broadcast %1034 : f32 to vector<16x16xf32>
    %1036 = arith.mulf %1001, %1035 : vector<16x16xf32>
    %1037 = arith.addf %1033, %1036 : vector<16x16xf32>
    %c126 = arith.constant 126 : index
    %1038 = memref.load %arg1[%c126] : memref<288xf32, #tpu.memory_space<smem>>
    %1039 = vector.broadcast %1038 : f32 to vector<16x16xf32>
    %1040 = arith.mulf %985, %1039 : vector<16x16xf32>
    %1041 = arith.addf %911, %1040 : vector<16x16xf32>
    %c127 = arith.constant 127 : index
    %1042 = memref.load %arg1[%c127] : memref<288xf32, #tpu.memory_space<smem>>
    %1043 = vector.broadcast %1042 : f32 to vector<16x16xf32>
    %1044 = arith.mulf %987, %1043 : vector<16x16xf32>
    %1045 = arith.addf %1041, %1044 : vector<16x16xf32>
    %c128 = arith.constant 128 : index
    %1046 = memref.load %arg1[%c128] : memref<288xf32, #tpu.memory_space<smem>>
    %1047 = vector.broadcast %1046 : f32 to vector<16x16xf32>
    %1048 = arith.mulf %989, %1047 : vector<16x16xf32>
    %1049 = arith.addf %1045, %1048 : vector<16x16xf32>
    %c129 = arith.constant 129 : index
    %1050 = memref.load %arg1[%c129] : memref<288xf32, #tpu.memory_space<smem>>
    %1051 = vector.broadcast %1050 : f32 to vector<16x16xf32>
    %1052 = arith.mulf %991, %1051 : vector<16x16xf32>
    %1053 = arith.addf %1049, %1052 : vector<16x16xf32>
    %c130 = arith.constant 130 : index
    %1054 = memref.load %arg1[%c130] : memref<288xf32, #tpu.memory_space<smem>>
    %1055 = vector.broadcast %1054 : f32 to vector<16x16xf32>
    %1056 = arith.mulf %993, %1055 : vector<16x16xf32>
    %1057 = arith.addf %1053, %1056 : vector<16x16xf32>
    %c131 = arith.constant 131 : index
    %1058 = memref.load %arg1[%c131] : memref<288xf32, #tpu.memory_space<smem>>
    %1059 = vector.broadcast %1058 : f32 to vector<16x16xf32>
    %1060 = arith.mulf %995, %1059 : vector<16x16xf32>
    %1061 = arith.addf %1057, %1060 : vector<16x16xf32>
    %c132 = arith.constant 132 : index
    %1062 = memref.load %arg1[%c132] : memref<288xf32, #tpu.memory_space<smem>>
    %1063 = vector.broadcast %1062 : f32 to vector<16x16xf32>
    %1064 = arith.mulf %997, %1063 : vector<16x16xf32>
    %1065 = arith.addf %1061, %1064 : vector<16x16xf32>
    %c133 = arith.constant 133 : index
    %1066 = memref.load %arg1[%c133] : memref<288xf32, #tpu.memory_space<smem>>
    %1067 = vector.broadcast %1066 : f32 to vector<16x16xf32>
    %1068 = arith.mulf %999, %1067 : vector<16x16xf32>
    %1069 = arith.addf %1065, %1068 : vector<16x16xf32>
    %c134 = arith.constant 134 : index
    %1070 = memref.load %arg1[%c134] : memref<288xf32, #tpu.memory_space<smem>>
    %1071 = vector.broadcast %1070 : f32 to vector<16x16xf32>
    %1072 = arith.mulf %1001, %1071 : vector<16x16xf32>
    %1073 = arith.addf %1069, %1072 : vector<16x16xf32>
    %c198 = arith.constant 198 : index
    %1074 = memref.load %arg1[%c198] : memref<288xf32, #tpu.memory_space<smem>>
    %1075 = vector.broadcast %1074 : f32 to vector<16x16xf32>
    %1076 = arith.mulf %985, %1075 : vector<16x16xf32>
    %1077 = arith.addf %947, %1076 : vector<16x16xf32>
    %c199 = arith.constant 199 : index
    %1078 = memref.load %arg1[%c199] : memref<288xf32, #tpu.memory_space<smem>>
    %1079 = vector.broadcast %1078 : f32 to vector<16x16xf32>
    %1080 = arith.mulf %987, %1079 : vector<16x16xf32>
    %1081 = arith.addf %1077, %1080 : vector<16x16xf32>
    %c200 = arith.constant 200 : index
    %1082 = memref.load %arg1[%c200] : memref<288xf32, #tpu.memory_space<smem>>
    %1083 = vector.broadcast %1082 : f32 to vector<16x16xf32>
    %1084 = arith.mulf %989, %1083 : vector<16x16xf32>
    %1085 = arith.addf %1081, %1084 : vector<16x16xf32>
    %c201 = arith.constant 201 : index
    %1086 = memref.load %arg1[%c201] : memref<288xf32, #tpu.memory_space<smem>>
    %1087 = vector.broadcast %1086 : f32 to vector<16x16xf32>
    %1088 = arith.mulf %991, %1087 : vector<16x16xf32>
    %1089 = arith.addf %1085, %1088 : vector<16x16xf32>
    %c202 = arith.constant 202 : index
    %1090 = memref.load %arg1[%c202] : memref<288xf32, #tpu.memory_space<smem>>
    %1091 = vector.broadcast %1090 : f32 to vector<16x16xf32>
    %1092 = arith.mulf %993, %1091 : vector<16x16xf32>
    %1093 = arith.addf %1089, %1092 : vector<16x16xf32>
    %c203 = arith.constant 203 : index
    %1094 = memref.load %arg1[%c203] : memref<288xf32, #tpu.memory_space<smem>>
    %1095 = vector.broadcast %1094 : f32 to vector<16x16xf32>
    %1096 = arith.mulf %995, %1095 : vector<16x16xf32>
    %1097 = arith.addf %1093, %1096 : vector<16x16xf32>
    %c204 = arith.constant 204 : index
    %1098 = memref.load %arg1[%c204] : memref<288xf32, #tpu.memory_space<smem>>
    %1099 = vector.broadcast %1098 : f32 to vector<16x16xf32>
    %1100 = arith.mulf %997, %1099 : vector<16x16xf32>
    %1101 = arith.addf %1097, %1100 : vector<16x16xf32>
    %c205 = arith.constant 205 : index
    %1102 = memref.load %arg1[%c205] : memref<288xf32, #tpu.memory_space<smem>>
    %1103 = vector.broadcast %1102 : f32 to vector<16x16xf32>
    %1104 = arith.mulf %999, %1103 : vector<16x16xf32>
    %1105 = arith.addf %1101, %1104 : vector<16x16xf32>
    %c206 = arith.constant 206 : index
    %1106 = memref.load %arg1[%c206] : memref<288xf32, #tpu.memory_space<smem>>
    %1107 = vector.broadcast %1106 : f32 to vector<16x16xf32>
    %1108 = arith.mulf %1001, %1107 : vector<16x16xf32>
    %1109 = arith.addf %1105, %1108 : vector<16x16xf32>
    %c270 = arith.constant 270 : index
    %1110 = memref.load %arg1[%c270] : memref<288xf32, #tpu.memory_space<smem>>
    %1111 = vector.broadcast %1110 : f32 to vector<16x16xf32>
    %1112 = arith.mulf %985, %1111 : vector<16x16xf32>
    %1113 = arith.addf %983, %1112 : vector<16x16xf32>
    %c271 = arith.constant 271 : index
    %1114 = memref.load %arg1[%c271] : memref<288xf32, #tpu.memory_space<smem>>
    %1115 = vector.broadcast %1114 : f32 to vector<16x16xf32>
    %1116 = arith.mulf %987, %1115 : vector<16x16xf32>
    %1117 = arith.addf %1113, %1116 : vector<16x16xf32>
    %c272 = arith.constant 272 : index
    %1118 = memref.load %arg1[%c272] : memref<288xf32, #tpu.memory_space<smem>>
    %1119 = vector.broadcast %1118 : f32 to vector<16x16xf32>
    %1120 = arith.mulf %989, %1119 : vector<16x16xf32>
    %1121 = arith.addf %1117, %1120 : vector<16x16xf32>
    %c273 = arith.constant 273 : index
    %1122 = memref.load %arg1[%c273] : memref<288xf32, #tpu.memory_space<smem>>
    %1123 = vector.broadcast %1122 : f32 to vector<16x16xf32>
    %1124 = arith.mulf %991, %1123 : vector<16x16xf32>
    %1125 = arith.addf %1121, %1124 : vector<16x16xf32>
    %c274 = arith.constant 274 : index
    %1126 = memref.load %arg1[%c274] : memref<288xf32, #tpu.memory_space<smem>>
    %1127 = vector.broadcast %1126 : f32 to vector<16x16xf32>
    %1128 = arith.mulf %993, %1127 : vector<16x16xf32>
    %1129 = arith.addf %1125, %1128 : vector<16x16xf32>
    %c275 = arith.constant 275 : index
    %1130 = memref.load %arg1[%c275] : memref<288xf32, #tpu.memory_space<smem>>
    %1131 = vector.broadcast %1130 : f32 to vector<16x16xf32>
    %1132 = arith.mulf %995, %1131 : vector<16x16xf32>
    %1133 = arith.addf %1129, %1132 : vector<16x16xf32>
    %c276 = arith.constant 276 : index
    %1134 = memref.load %arg1[%c276] : memref<288xf32, #tpu.memory_space<smem>>
    %1135 = vector.broadcast %1134 : f32 to vector<16x16xf32>
    %1136 = arith.mulf %997, %1135 : vector<16x16xf32>
    %1137 = arith.addf %1133, %1136 : vector<16x16xf32>
    %c277 = arith.constant 277 : index
    %1138 = memref.load %arg1[%c277] : memref<288xf32, #tpu.memory_space<smem>>
    %1139 = vector.broadcast %1138 : f32 to vector<16x16xf32>
    %1140 = arith.mulf %999, %1139 : vector<16x16xf32>
    %1141 = arith.addf %1137, %1140 : vector<16x16xf32>
    %c278 = arith.constant 278 : index
    %1142 = memref.load %arg1[%c278] : memref<288xf32, #tpu.memory_space<smem>>
    %1143 = vector.broadcast %1142 : f32 to vector<16x16xf32>
    %1144 = arith.mulf %1001, %1143 : vector<16x16xf32>
    %1145 = arith.addf %1141, %1144 : vector<16x16xf32>
    %c7_210 = arith.constant 7 : index
    %c0_211 = arith.constant 0 : index
    %c0_212 = arith.constant 0 : index
    %1146 = vector.load %arg6[%c7_210, %c0_211, %c0_212] : memref<8x18x18xf32, #tpu.memory_space<vmem>>, vector<1x16x16xf32>
    %1147 = vector.shape_cast %1146 : vector<1x16x16xf32> to vector<16x16xf32>
    %c7_213 = arith.constant 7 : index
    %c0_214 = arith.constant 0 : index
    %c1_215 = arith.constant 1 : index
    %1148 = vector.load %arg6[%c7_213, %c0_214, %c1_215] : memref<8x18x18xf32, #tpu.memory_space<vmem>>, vector<1x16x16xf32>
    %1149 = vector.shape_cast %1148 : vector<1x16x16xf32> to vector<16x16xf32>
    %c7_216 = arith.constant 7 : index
    %c0_217 = arith.constant 0 : index
    %c2_218 = arith.constant 2 : index
    %1150 = vector.load %arg6[%c7_216, %c0_217, %c2_218] : memref<8x18x18xf32, #tpu.memory_space<vmem>>, vector<1x16x16xf32>
    %1151 = vector.shape_cast %1150 : vector<1x16x16xf32> to vector<16x16xf32>
    %c7_219 = arith.constant 7 : index
    %c1_220 = arith.constant 1 : index
    %c0_221 = arith.constant 0 : index
    %1152 = vector.load %arg6[%c7_219, %c1_220, %c0_221] : memref<8x18x18xf32, #tpu.memory_space<vmem>>, vector<1x16x16xf32>
    %1153 = vector.shape_cast %1152 : vector<1x16x16xf32> to vector<16x16xf32>
    %c7_222 = arith.constant 7 : index
    %c1_223 = arith.constant 1 : index
    %c1_224 = arith.constant 1 : index
    %1154 = vector.load %arg6[%c7_222, %c1_223, %c1_224] : memref<8x18x18xf32, #tpu.memory_space<vmem>>, vector<1x16x16xf32>
    %1155 = vector.shape_cast %1154 : vector<1x16x16xf32> to vector<16x16xf32>
    %c7_225 = arith.constant 7 : index
    %c1_226 = arith.constant 1 : index
    %c2_227 = arith.constant 2 : index
    %1156 = vector.load %arg6[%c7_225, %c1_226, %c2_227] : memref<8x18x18xf32, #tpu.memory_space<vmem>>, vector<1x16x16xf32>
    %1157 = vector.shape_cast %1156 : vector<1x16x16xf32> to vector<16x16xf32>
    %c7_228 = arith.constant 7 : index
    %c2_229 = arith.constant 2 : index
    %c0_230 = arith.constant 0 : index
    %1158 = vector.load %arg6[%c7_228, %c2_229, %c0_230] : memref<8x18x18xf32, #tpu.memory_space<vmem>>, vector<1x16x16xf32>
    %1159 = vector.shape_cast %1158 : vector<1x16x16xf32> to vector<16x16xf32>
    %c7_231 = arith.constant 7 : index
    %c2_232 = arith.constant 2 : index
    %c1_233 = arith.constant 1 : index
    %1160 = vector.load %arg6[%c7_231, %c2_232, %c1_233] : memref<8x18x18xf32, #tpu.memory_space<vmem>>, vector<1x16x16xf32>
    %1161 = vector.shape_cast %1160 : vector<1x16x16xf32> to vector<16x16xf32>
    %c7_234 = arith.constant 7 : index
    %c2_235 = arith.constant 2 : index
    %c2_236 = arith.constant 2 : index
    %1162 = vector.load %arg6[%c7_234, %c2_235, %c2_236] : memref<8x18x18xf32, #tpu.memory_space<vmem>>, vector<1x16x16xf32>
    %1163 = vector.shape_cast %1162 : vector<1x16x16xf32> to vector<16x16xf32>
    %c63 = arith.constant 63 : index
    %1164 = memref.load %arg1[%c63] : memref<288xf32, #tpu.memory_space<smem>>
    %1165 = vector.broadcast %1164 : f32 to vector<16x16xf32>
    %1166 = arith.mulf %1147, %1165 : vector<16x16xf32>
    %1167 = arith.addf %1037, %1166 : vector<16x16xf32>
    %c64 = arith.constant 64 : index
    %1168 = memref.load %arg1[%c64] : memref<288xf32, #tpu.memory_space<smem>>
    %1169 = vector.broadcast %1168 : f32 to vector<16x16xf32>
    %1170 = arith.mulf %1149, %1169 : vector<16x16xf32>
    %1171 = arith.addf %1167, %1170 : vector<16x16xf32>
    %c65 = arith.constant 65 : index
    %1172 = memref.load %arg1[%c65] : memref<288xf32, #tpu.memory_space<smem>>
    %1173 = vector.broadcast %1172 : f32 to vector<16x16xf32>
    %1174 = arith.mulf %1151, %1173 : vector<16x16xf32>
    %1175 = arith.addf %1171, %1174 : vector<16x16xf32>
    %c66 = arith.constant 66 : index
    %1176 = memref.load %arg1[%c66] : memref<288xf32, #tpu.memory_space<smem>>
    %1177 = vector.broadcast %1176 : f32 to vector<16x16xf32>
    %1178 = arith.mulf %1153, %1177 : vector<16x16xf32>
    %1179 = arith.addf %1175, %1178 : vector<16x16xf32>
    %c67 = arith.constant 67 : index
    %1180 = memref.load %arg1[%c67] : memref<288xf32, #tpu.memory_space<smem>>
    %1181 = vector.broadcast %1180 : f32 to vector<16x16xf32>
    %1182 = arith.mulf %1155, %1181 : vector<16x16xf32>
    %1183 = arith.addf %1179, %1182 : vector<16x16xf32>
    %c68 = arith.constant 68 : index
    %1184 = memref.load %arg1[%c68] : memref<288xf32, #tpu.memory_space<smem>>
    %1185 = vector.broadcast %1184 : f32 to vector<16x16xf32>
    %1186 = arith.mulf %1157, %1185 : vector<16x16xf32>
    %1187 = arith.addf %1183, %1186 : vector<16x16xf32>
    %c69 = arith.constant 69 : index
    %1188 = memref.load %arg1[%c69] : memref<288xf32, #tpu.memory_space<smem>>
    %1189 = vector.broadcast %1188 : f32 to vector<16x16xf32>
    %1190 = arith.mulf %1159, %1189 : vector<16x16xf32>
    %1191 = arith.addf %1187, %1190 : vector<16x16xf32>
    %c70 = arith.constant 70 : index
    %1192 = memref.load %arg1[%c70] : memref<288xf32, #tpu.memory_space<smem>>
    %1193 = vector.broadcast %1192 : f32 to vector<16x16xf32>
    %1194 = arith.mulf %1161, %1193 : vector<16x16xf32>
    %1195 = arith.addf %1191, %1194 : vector<16x16xf32>
    %c71 = arith.constant 71 : index
    %1196 = memref.load %arg1[%c71] : memref<288xf32, #tpu.memory_space<smem>>
    %1197 = vector.broadcast %1196 : f32 to vector<16x16xf32>
    %1198 = arith.mulf %1163, %1197 : vector<16x16xf32>
    %1199 = arith.addf %1195, %1198 : vector<16x16xf32>
    %c135 = arith.constant 135 : index
    %1200 = memref.load %arg1[%c135] : memref<288xf32, #tpu.memory_space<smem>>
    %1201 = vector.broadcast %1200 : f32 to vector<16x16xf32>
    %1202 = arith.mulf %1147, %1201 : vector<16x16xf32>
    %1203 = arith.addf %1073, %1202 : vector<16x16xf32>
    %c136 = arith.constant 136 : index
    %1204 = memref.load %arg1[%c136] : memref<288xf32, #tpu.memory_space<smem>>
    %1205 = vector.broadcast %1204 : f32 to vector<16x16xf32>
    %1206 = arith.mulf %1149, %1205 : vector<16x16xf32>
    %1207 = arith.addf %1203, %1206 : vector<16x16xf32>
    %c137 = arith.constant 137 : index
    %1208 = memref.load %arg1[%c137] : memref<288xf32, #tpu.memory_space<smem>>
    %1209 = vector.broadcast %1208 : f32 to vector<16x16xf32>
    %1210 = arith.mulf %1151, %1209 : vector<16x16xf32>
    %1211 = arith.addf %1207, %1210 : vector<16x16xf32>
    %c138 = arith.constant 138 : index
    %1212 = memref.load %arg1[%c138] : memref<288xf32, #tpu.memory_space<smem>>
    %1213 = vector.broadcast %1212 : f32 to vector<16x16xf32>
    %1214 = arith.mulf %1153, %1213 : vector<16x16xf32>
    %1215 = arith.addf %1211, %1214 : vector<16x16xf32>
    %c139 = arith.constant 139 : index
    %1216 = memref.load %arg1[%c139] : memref<288xf32, #tpu.memory_space<smem>>
    %1217 = vector.broadcast %1216 : f32 to vector<16x16xf32>
    %1218 = arith.mulf %1155, %1217 : vector<16x16xf32>
    %1219 = arith.addf %1215, %1218 : vector<16x16xf32>
    %c140 = arith.constant 140 : index
    %1220 = memref.load %arg1[%c140] : memref<288xf32, #tpu.memory_space<smem>>
    %1221 = vector.broadcast %1220 : f32 to vector<16x16xf32>
    %1222 = arith.mulf %1157, %1221 : vector<16x16xf32>
    %1223 = arith.addf %1219, %1222 : vector<16x16xf32>
    %c141 = arith.constant 141 : index
    %1224 = memref.load %arg1[%c141] : memref<288xf32, #tpu.memory_space<smem>>
    %1225 = vector.broadcast %1224 : f32 to vector<16x16xf32>
    %1226 = arith.mulf %1159, %1225 : vector<16x16xf32>
    %1227 = arith.addf %1223, %1226 : vector<16x16xf32>
    %c142 = arith.constant 142 : index
    %1228 = memref.load %arg1[%c142] : memref<288xf32, #tpu.memory_space<smem>>
    %1229 = vector.broadcast %1228 : f32 to vector<16x16xf32>
    %1230 = arith.mulf %1161, %1229 : vector<16x16xf32>
    %1231 = arith.addf %1227, %1230 : vector<16x16xf32>
    %c143 = arith.constant 143 : index
    %1232 = memref.load %arg1[%c143] : memref<288xf32, #tpu.memory_space<smem>>
    %1233 = vector.broadcast %1232 : f32 to vector<16x16xf32>
    %1234 = arith.mulf %1163, %1233 : vector<16x16xf32>
    %1235 = arith.addf %1231, %1234 : vector<16x16xf32>
    %c207 = arith.constant 207 : index
    %1236 = memref.load %arg1[%c207] : memref<288xf32, #tpu.memory_space<smem>>
    %1237 = vector.broadcast %1236 : f32 to vector<16x16xf32>
    %1238 = arith.mulf %1147, %1237 : vector<16x16xf32>
    %1239 = arith.addf %1109, %1238 : vector<16x16xf32>
    %c208 = arith.constant 208 : index
    %1240 = memref.load %arg1[%c208] : memref<288xf32, #tpu.memory_space<smem>>
    %1241 = vector.broadcast %1240 : f32 to vector<16x16xf32>
    %1242 = arith.mulf %1149, %1241 : vector<16x16xf32>
    %1243 = arith.addf %1239, %1242 : vector<16x16xf32>
    %c209 = arith.constant 209 : index
    %1244 = memref.load %arg1[%c209] : memref<288xf32, #tpu.memory_space<smem>>
    %1245 = vector.broadcast %1244 : f32 to vector<16x16xf32>
    %1246 = arith.mulf %1151, %1245 : vector<16x16xf32>
    %1247 = arith.addf %1243, %1246 : vector<16x16xf32>
    %c210 = arith.constant 210 : index
    %1248 = memref.load %arg1[%c210] : memref<288xf32, #tpu.memory_space<smem>>
    %1249 = vector.broadcast %1248 : f32 to vector<16x16xf32>
    %1250 = arith.mulf %1153, %1249 : vector<16x16xf32>
    %1251 = arith.addf %1247, %1250 : vector<16x16xf32>
    %c211 = arith.constant 211 : index
    %1252 = memref.load %arg1[%c211] : memref<288xf32, #tpu.memory_space<smem>>
    %1253 = vector.broadcast %1252 : f32 to vector<16x16xf32>
    %1254 = arith.mulf %1155, %1253 : vector<16x16xf32>
    %1255 = arith.addf %1251, %1254 : vector<16x16xf32>
    %c212 = arith.constant 212 : index
    %1256 = memref.load %arg1[%c212] : memref<288xf32, #tpu.memory_space<smem>>
    %1257 = vector.broadcast %1256 : f32 to vector<16x16xf32>
    %1258 = arith.mulf %1157, %1257 : vector<16x16xf32>
    %1259 = arith.addf %1255, %1258 : vector<16x16xf32>
    %c213 = arith.constant 213 : index
    %1260 = memref.load %arg1[%c213] : memref<288xf32, #tpu.memory_space<smem>>
    %1261 = vector.broadcast %1260 : f32 to vector<16x16xf32>
    %1262 = arith.mulf %1159, %1261 : vector<16x16xf32>
    %1263 = arith.addf %1259, %1262 : vector<16x16xf32>
    %c214 = arith.constant 214 : index
    %1264 = memref.load %arg1[%c214] : memref<288xf32, #tpu.memory_space<smem>>
    %1265 = vector.broadcast %1264 : f32 to vector<16x16xf32>
    %1266 = arith.mulf %1161, %1265 : vector<16x16xf32>
    %1267 = arith.addf %1263, %1266 : vector<16x16xf32>
    %c215 = arith.constant 215 : index
    %1268 = memref.load %arg1[%c215] : memref<288xf32, #tpu.memory_space<smem>>
    %1269 = vector.broadcast %1268 : f32 to vector<16x16xf32>
    %1270 = arith.mulf %1163, %1269 : vector<16x16xf32>
    %1271 = arith.addf %1267, %1270 : vector<16x16xf32>
    %c279 = arith.constant 279 : index
    %1272 = memref.load %arg1[%c279] : memref<288xf32, #tpu.memory_space<smem>>
    %1273 = vector.broadcast %1272 : f32 to vector<16x16xf32>
    %1274 = arith.mulf %1147, %1273 : vector<16x16xf32>
    %1275 = arith.addf %1145, %1274 : vector<16x16xf32>
    %c280 = arith.constant 280 : index
    %1276 = memref.load %arg1[%c280] : memref<288xf32, #tpu.memory_space<smem>>
    %1277 = vector.broadcast %1276 : f32 to vector<16x16xf32>
    %1278 = arith.mulf %1149, %1277 : vector<16x16xf32>
    %1279 = arith.addf %1275, %1278 : vector<16x16xf32>
    %c281 = arith.constant 281 : index
    %1280 = memref.load %arg1[%c281] : memref<288xf32, #tpu.memory_space<smem>>
    %1281 = vector.broadcast %1280 : f32 to vector<16x16xf32>
    %1282 = arith.mulf %1151, %1281 : vector<16x16xf32>
    %1283 = arith.addf %1279, %1282 : vector<16x16xf32>
    %c282 = arith.constant 282 : index
    %1284 = memref.load %arg1[%c282] : memref<288xf32, #tpu.memory_space<smem>>
    %1285 = vector.broadcast %1284 : f32 to vector<16x16xf32>
    %1286 = arith.mulf %1153, %1285 : vector<16x16xf32>
    %1287 = arith.addf %1283, %1286 : vector<16x16xf32>
    %c283 = arith.constant 283 : index
    %1288 = memref.load %arg1[%c283] : memref<288xf32, #tpu.memory_space<smem>>
    %1289 = vector.broadcast %1288 : f32 to vector<16x16xf32>
    %1290 = arith.mulf %1155, %1289 : vector<16x16xf32>
    %1291 = arith.addf %1287, %1290 : vector<16x16xf32>
    %c284 = arith.constant 284 : index
    %1292 = memref.load %arg1[%c284] : memref<288xf32, #tpu.memory_space<smem>>
    %1293 = vector.broadcast %1292 : f32 to vector<16x16xf32>
    %1294 = arith.mulf %1157, %1293 : vector<16x16xf32>
    %1295 = arith.addf %1291, %1294 : vector<16x16xf32>
    %c285 = arith.constant 285 : index
    %1296 = memref.load %arg1[%c285] : memref<288xf32, #tpu.memory_space<smem>>
    %1297 = vector.broadcast %1296 : f32 to vector<16x16xf32>
    %1298 = arith.mulf %1159, %1297 : vector<16x16xf32>
    %1299 = arith.addf %1295, %1298 : vector<16x16xf32>
    %c286 = arith.constant 286 : index
    %1300 = memref.load %arg1[%c286] : memref<288xf32, #tpu.memory_space<smem>>
    %1301 = vector.broadcast %1300 : f32 to vector<16x16xf32>
    %1302 = arith.mulf %1161, %1301 : vector<16x16xf32>
    %1303 = arith.addf %1299, %1302 : vector<16x16xf32>
    %c287 = arith.constant 287 : index
    %1304 = memref.load %arg1[%c287] : memref<288xf32, #tpu.memory_space<smem>>
    %1305 = vector.broadcast %1304 : f32 to vector<16x16xf32>
    %1306 = arith.mulf %1163, %1305 : vector<16x16xf32>
    %1307 = arith.addf %1303, %1306 : vector<16x16xf32>
    %c0_237 = arith.constant 0 : index
    %1308 = memref.load %arg2[%c0_237] : memref<4xf32, #tpu.memory_space<smem>>
    %1309 = vector.broadcast %1308 : f32 to vector<16x16xf32>
    %1310 = arith.addf %1199, %1309 : vector<16x16xf32>
    %c0_238 = arith.constant 0 : index
    %c0_239 = arith.constant 0 : index
    %c0_240 = arith.constant 0 : index
    %c0_241 = arith.constant 0 : index
    %1311 = vector.load %arg5[%c0_238, %c0_239, %c0_240, %c0_241] : memref<1x4x16x16xf32, #tpu.memory_space<vmem>>, vector<1x1x16x16xf32>
    %1312 = vector.shape_cast %1311 : vector<1x1x16x16xf32> to vector<16x16xf32>
    %1313 = vector.shape_cast %1310 : vector<16x16xf32> to vector<1x1x16x16xf32>
    tpu.vector_store %arg5[%c0_238, %c0_239, %c0_240, %c0_241], %1313 {strides = array<i32>} : memref<1x4x16x16xf32, #tpu.memory_space<vmem>>, vector<1x1x16x16xf32>,
    %c1_242 = arith.constant 1 : index
    %1314 = memref.load %arg2[%c1_242] : memref<4xf32, #tpu.memory_space<smem>>
    %1315 = vector.broadcast %1314 : f32 to vector<16x16xf32>
    %1316 = arith.addf %1235, %1315 : vector<16x16xf32>
    %c0_243 = arith.constant 0 : index
    %c1_244 = arith.constant 1 : index
    %c0_245 = arith.constant 0 : index
    %c0_246 = arith.constant 0 : index
    %1317 = vector.load %arg5[%c0_243, %c1_244, %c0_245, %c0_246] : memref<1x4x16x16xf32, #tpu.memory_space<vmem>>, vector<1x1x16x16xf32>
    %1318 = vector.shape_cast %1317 : vector<1x1x16x16xf32> to vector<16x16xf32>
    %1319 = vector.shape_cast %1316 : vector<16x16xf32> to vector<1x1x16x16xf32>
    tpu.vector_store %arg5[%c0_243, %c1_244, %c0_245, %c0_246], %1319 {strides = array<i32>} : memref<1x4x16x16xf32, #tpu.memory_space<vmem>>, vector<1x1x16x16xf32>,
    %c2_247 = arith.constant 2 : index
    %1320 = memref.load %arg2[%c2_247] : memref<4xf32, #tpu.memory_space<smem>>
    %1321 = vector.broadcast %1320 : f32 to vector<16x16xf32>
    %1322 = arith.addf %1271, %1321 : vector<16x16xf32>
    %c0_248 = arith.constant 0 : index
    %c2_249 = arith.constant 2 : index
    %c0_250 = arith.constant 0 : index
    %c0_251 = arith.constant 0 : index
    %1323 = vector.load %arg5[%c0_248, %c2_249, %c0_250, %c0_251] : memref<1x4x16x16xf32, #tpu.memory_space<vmem>>, vector<1x1x16x16xf32>
    %1324 = vector.shape_cast %1323 : vector<1x1x16x16xf32> to vector<16x16xf32>
    %1325 = vector.shape_cast %1322 : vector<16x16xf32> to vector<1x1x16x16xf32>
    tpu.vector_store %arg5[%c0_248, %c2_249, %c0_250, %c0_251], %1325 {strides = array<i32>} : memref<1x4x16x16xf32, #tpu.memory_space<vmem>>, vector<1x1x16x16xf32>,
    %c3_252 = arith.constant 3 : index
    %1326 = memref.load %arg2[%c3_252] : memref<4xf32, #tpu.memory_space<smem>>
    %1327 = vector.broadcast %1326 : f32 to vector<16x16xf32>
    %1328 = arith.addf %1307, %1327 : vector<16x16xf32>
    %c0_253 = arith.constant 0 : index
    %c3_254 = arith.constant 3 : index
    %c0_255 = arith.constant 0 : index
    %c0_256 = arith.constant 0 : index
    %1329 = vector.load %arg5[%c0_253, %c3_254, %c0_255, %c0_256] : memref<1x4x16x16xf32, #tpu.memory_space<vmem>>, vector<1x1x16x16xf32>
    %1330 = vector.shape_cast %1329 : vector<1x1x16x16xf32> to vector<16x16xf32>
    %1331 = vector.shape_cast %1328 : vector<16x16xf32> to vector<1x1x16x16xf32>
    tpu.vector_store %arg5[%c0_253, %c3_254, %c0_255, %c0_256], %1331 {strides = array<i32>} : memref<1x4x16x16xf32, #tpu.memory_space<vmem>>, vector<1x1x16x16xf32>,
    return
  }
  func.func @transform_0(%arg0: i32) -> i32 {
    %c0_i32 = arith.constant 0 : i32
    %c0_i32_0 = arith.constant 0 : i32
    return %c0_i32 : i32
  }
  func.func @transform_1(%arg0: i32) -> i32 {
    %c0_i32 = arith.constant 0 : i32
    %c0_i32_0 = arith.constant 0 : i32
    return %c0_i32 : i32
  }
  func.func @transform_2(%arg0: i32) -> (i32, i32, i32, i32) {
    %c0_i32 = arith.constant 0 : i32
    %c0_i32_0 = arith.constant 0 : i32
    %c0_i32_1 = arith.constant 0 : i32
    %c0_i32_2 = arith.constant 0 : i32
    return %arg0, %c0_i32, %c0_i32_0, %c0_i32_1 : i32, i32, i32, i32
  }
  func.func @transform_3(%arg0: i32) -> (i32, i32, i32, i32) {
    %c0_i32 = arith.constant 0 : i32
    %c0_i32_0 = arith.constant 0 : i32
    %c0_i32_1 = arith.constant 0 : i32
    %c0_i32_2 = arith.constant 0 : i32
    return %arg0, %c0_i32, %c0_i32_0, %c0_i32_1 : i32, i32, i32, i32
  }
  func.func @transform_4(%arg0: i32) -> (i32, i32, i32, i32) {
    %c0_i32 = arith.constant 0 : i32
    %c0_i32_0 = arith.constant 0 : i32
    %c0_i32_1 = arith.constant 0 : i32
    %c0_i32_2 = arith.constant 0 : i32
    return %arg0, %c0_i32, %c0_i32_0, %c0_i32_1 : i32, i32, i32, i32
  }
}

</mosaic_0001>

<bundles_post_ra>
// kernel: tpu_custom_call.1
= control target key start
LH: loop header
LB: loop body
LE: loop exit
PB: predicated region body
PF: predicated region fallthrough
CT: control target
= control target key end

     0   :  { %s6991_s0 = inlined_call_operand.hbm [shape: f32[288], index: 0, kind: input, shape index: {}]   ;;  %s6992_s1 = inlined_call_operand.hbm [shape: f32[4], index: 1, kind: input, shape index: {}]   ;;  %s6993_s2 = inlined_call_operand.hbm [shape: f32[2,4,16,16], index: 2, kind: input, shape index: {}]   ;;  %s6994_s3 = inlined_call_operand.hbm [shape: f32[2,4,16,16], index: 3, kind: input, shape index: {}]   ;;  %s6995_s4 = inlined_call_operand.hbm [shape: f32[2,4,16,16], index: 4, kind: output, shape index: {}]  }
   0x1   :  { %6997 = sst [smem:[#allocation19_spill]] %s6991_s0 }
   0x2   :  { %6998 = sst [smem:[#allocation20_spill]] %s6992_s1 }
   0x3   :  { %9 = vsyncpa [#allocation6], 0 }
   0x4   :  { %10 = vsyncpa [#allocation8], 0 }
   0x5   :  { %11 = vsyncpa [#allocation4], 0 }
   0x6   :  { %13 = vsyncpa [#allocation4 + $0x1], 0 }
   0x7   :  { %14 = vsyncpa [#allocation11], 0 }
   0x8   :  { %16 = vsyncpa [#allocation11 + $0x1], 0 }
   0x9   :  { %17 = vsyncpa [#allocation5], 0 }
   0xa   :  { %19 = vsyncpa [#allocation5 + $0x1], 0  ;;  %s4513_s15 = smov 0   ;;  %s4515_s16 = smov 0  }
   0xb   :  { %s4517_s17 = smov 0   ;;  %s4519_s18 = smov 0  }
   0xc LB: > { %s4534_s19 = sadd.s32 4294967295, %s4476_s18   ;;  %s3891_s20 = sadd.s32 4294967294, %s4476_s18   ;;  %s4476_s18 = sphi %s4519_s18, %s7014_s18   ;;  %s4472_s17 = sphi %s4517_s17, %s7013_s17   ;;  %s4468_s16 = sphi %s4515_s16, %s7012_s16   ;;  %s4464_s15 = sphi %s4513_s15, %s7011_s15  }
   0xd   : > { %s4538_s21 = sadd.s32 1, %s4476_s18   ;;  %s74_s22 = sadd.s32 1, %s4472_s17 }
   0xe   : > { %s71_s23 = ssub.s32 %s4476_s18, %s4538_s21  ;;  %p81_p0 = scmp.ne.s32.totalorder %s4472_s17, %s4468_s16 }
   0xf   : > { %p72_p1 = scmp.eq.s32.totalorder %s71_s23, 0  ;;  %p82_p2 = scmp.eq.s32.totalorder %s4476_s18, 0 }
  0x10   : > { %p87_p3 = scmp.ne.s32.totalorder %s4468_s16, %s4464_s15  ;;  %p88_p4 = scmp.eq.s32.totalorder %s4534_s19, 0 }
  0x11   : > { %s4550_s24 = scalar_select %p72_p1, %s4472_s17, %s74_s22  }
  0x12   : > { %p4552_p5 = por %p82_p2, %p81_p0  ;;  %p4558_p6 = por %p88_p4, %p87_p3 }
  0x13   : > { %6999 = sst [smem:[#allocation18_spill]] %s4550_s24  ;;  %p137_p7 = scmp.eq.s32.totalorder %s4534_s19, 1 }
  0x14   : > { %p143_p8 = scmp.eq.s32.totalorder %s3891_s20, 1  ;;  %p3892_p9 = scmp.ge.s32.totalorder %s4476_s18, 1 }
  0x15   : > { %p150_p10 = scmp.lt.s32.totalorder %s4476_s18, 3  ;;  %p4565_p11 = por %p137_p7, %p81_p0 }
  0x16   : > { %p4569_p12 = por %p143_p8, %p87_p3  ;;  %s7005_s0 = sld [smem:[#allocation19_spill]] }
  0x17   : > { %p4573_p13 = pnand %p3892_p9, %p150_p10  ;;  %p4246_p2 = scmp.lt.s32.totalorder %s4476_s18, 2 }
  0x18   : > { %s7006_s1 = sld [smem:[#allocation20_spill]]  ;;  %s4478_s11 = smov [#allocation3]  }
  0x19   : > { %p4226_p1 = pneg %p4573_p13  ;;  %p4591_p7 = pnand %p4246_p2, %p4552_p5 }
  0x1a   : > { %s4596_s12 = sand.u32 1, %s4472_s17   ;;  %s4479_s13 = smov [#allocation7]  }
  0x1b   : > { %p4227_p3 = pnand %p4226_p1, %p88_p4  ;;  %s6996_s14 = sshll.u32 %s4596_s12, 6 }
  0x1c   : > { %s162_s6 = sshll.u32 %s7005_s0, 4  ;;  %s4209_s20 = sshll.u32 %s4476_s18, 6  ;;  %s163_s6 = int_to_ptr.hbm [resolvable:$true] %s162_s6 }
  0x1d   : > { %4229 = dma.hbm_to_smem (!%p4227_p3), %s163_s6, 48, %s4478_s11, [#allocation6]  }
  0x1e   : > { %s172_s9 = sshll.u32 %s7006_s1, 4  ;;  %s192_s25 = scalar_lea.hbm %s6993_s2, %s4209_s20  ;;  %s173_s9 = int_to_ptr.hbm [resolvable:$true] %s172_s9 }
  0x1f   : > { %4232 = dma.hbm_to_smem (!%p4227_p3), %s173_s9, 16, %s4479_s13, [#allocation8]  }
  0x20   : > { %s187_s30 = scalar_lea.vmem [#allocation9], %s6996_s14  ;;  %s193_s7 = sshll.u32 %s192_s25, 4  ;;  %s194_s7 = int_to_ptr.hbm [resolvable:$true] %s193_s7 }
  0x21   : > { %s195_s5 = sshll.u32 %s187_s30, 4  ;;  %s184_s6 = scalar_lea.sflag [#allocation4], %s4596_s12  ;;  %s196_s5 = int_to_ptr.vmem [resolvable:$true] %s195_s5 }
  0x22   : > { %s4338_s8 = sshra.s32 %s194_s7, 4  ;;  %p4342_p8 = pneg %p4591_p7  ;;  %s4339_s8 = int_to_ptr.hbm [resolvable:$true] %s4338_s8 }
  0x23   : > { %s4340_s11 = scalar_lea.hbm %s4339_s8, 64  ;;  %s4345_s22 = scalar_lea.hbm %s6993_s2, 128 }
  0x24   : > { %p4341_p5 = scmp.ne.s32.totalorder %s4339_s8, %s4340_s11  ;;  %p4346_p1 = scmp.lt.s32.totalorder %s4339_s8, %s6993_s2 }
  0x25   : > { %p4347_p2 = scmp.lt.s32.totalorder %s4345_s22, %s4340_s11 }
  0x26   : > { %p4343_p9 = pnand %p4342_p8, %p4341_p5 }
  0x27   : > { %p4348_p3 = por %p4347_p2, %p4346_p1 }
  0x28   : > { %p4344_p10 = pneg %p4343_p9 }
  0x2a   : > { %p4349_p0 = pnand %p4348_p3, %p4344_p10 }
  0x2c   : > { %4352 = shalt.err (!%p4349_p0)
}
  0x2d   : > { %s4480_s25 = smov 128   ;;  %s4481_s14 = smov 8  }
  0x2e   : > { %4236 = dma.hbm_to_vmem [thread:$0]  (!%p4591_p7), %s194_s7, 1024, %s196_s5, %s184_s6, %s4480_s25, %s4480_s25, %s4481_s14  }
  0x2f   : > { %s214_s9 = scalar_lea.hbm %s6994_s3, %s4209_s20  ;;  %s7008_s24 = sshll.u32 %s4596_s12, 6 }
  0x30   : > { %s215_s13 = sshll.u32 %s214_s9, 4  ;;  %s209_s23 = scalar_lea.vmem [#allocation10], %s7008_s24  ;;  %s216_s13 = int_to_ptr.hbm [resolvable:$true] %s215_s13 }
  0x31   : > { %s217_s8 = sshll.u32 %s209_s23, 4  ;;  %s206_s11 = scalar_lea.sflag [#allocation11], %s4596_s12  ;;  %s218_s8 = int_to_ptr.vmem [resolvable:$true] %s217_s8 }
  0x32   : > { %s4368_s22 = sshra.s32 %s216_s13, 4  ;;  %s4375_s0 = scalar_lea.hbm %s6994_s3, 128  ;;  %s4369_s22 = int_to_ptr.hbm [resolvable:$true] %s4368_s22 }
  0x33   : > { %s4370_s30 = scalar_lea.hbm %s4369_s22, 64  ;;  %p4376_p10 = scmp.lt.s32.totalorder %s4369_s22, %s6994_s3 }
  0x34   : > { %p4371_p0 = scmp.ne.s32.totalorder %s4369_s22, %s4370_s30  ;;  %p4377_p1 = scmp.lt.s32.totalorder %s4375_s0, %s4370_s30 }
  0x36   : > { %p4373_p5 = pnand %p4371_p0, %p4342_p8  ;;  %p4378_p2 = por %p4377_p1, %p4376_p10 }
  0x38   : > { %p4374_p9 = pneg %p4373_p5 }
  0x3a   : > { %p4379_p3 = pnand %p4378_p2, %p4374_p9 }
  0x3c   : > { %4382 = shalt.err (!%p4379_p3)
}
  0x3d   : > { %4239 = dma.hbm_to_vmem [thread:$0]  (!%p4591_p7), %s216_s13, 1024, %s218_s8, %s206_s11, %s4480_s25, %s4480_s25, %s4481_s14  }
  0x3e   : > { %229 = sbr.rel (%p4573_p13) target bundleno = 1345 (0x541), region = 36 }
  0x43   : > { %4443 = dma.done.wait (%p88_p4), [#allocation6], 48  }
  0x44   : > { %4445 = vsyncadd (%p88_p4), [#allocation6], 4294967248 }
  0x45   : > { %4447 = dma.done.wait (%p88_p4), [#allocation8], 16  }
  0x46   : > { %4449 = vsyncadd (%p88_p4), [#allocation8], 4294967280  ;;  %s4647_s24 = sand.u32 1, %s4468_s16  }
  0x47   : > { %s4650_s29 = sshll.u32 %s4647_s24, 6  ;;  %s242_s10 = scalar_lea.sflag [#allocation4], %s4647_s24 }
  0x48   : > { %s245_s12 = scalar_lea.vmem [#allocation9], %s4650_s29 }
  0x49   : > { %4451 = dma.done.wait (%p4558_p6), %s242_s10, 1024  }
  0x4a   : > { %4453 = vsyncadd (%p4558_p6), %s242_s10, 4294966272  ;;  %s252_s14 = scalar_lea.sflag [#allocation11], %s4647_s24  ;;  %s4660_s6 = scalar_lea.vmem [#allocation10], %s4650_s29 }
  0x4b   : > { %4455 = dma.done.wait (%p4558_p6), %s252_s14, 1024  }
  0x4c   : > { %4457 = vsyncadd (%p4558_p6), %s252_s14, 4294966272 }
  0x4d   : > { %261 = sfence }
  0x4e   : > { %v313_v0 = vld [vmem:[%s245_s12] sm:$0xff]  ;;  %v315_v1 = vld [vmem:[%s245_s12 + $0x10] sm:$0xff]  ;;  %s4482_s25 = smov 1   ;;  %v314_v3 = vld [vmem:[%s245_s12 + $0x8] sm:$0xff]  ;;  %vm287_vm0 = vcmask 146432   ;;  %v4483_v13 = vmov 0.0  }
  0x4f   : > { %329 = vrot.lane.b32.xlu0 %v313_v0, %s4482_s25  ;;  %333 = vrot.lane.b32.xlu1 %v315_v1, %s4482_s25  ;;  %v317_v2 = vld [vmem:[%s245_s12 + $0x20] sm:$0xff]  ;;  %v316_v4 = vld [vmem:[%s245_s12 + $0x18] sm:$0xff]  ;;  %288 = vst.msk [vmem:[#allocation2] sm:$0xff] %vm287_vm0, %v4483_v13  ;;  %vm290_vm1 = vcmask 140288   ;;  %s3909_s26 = sld [smem:[#allocation3 + $0x2]]  ;;  %vm353_vm2 = vcmask 138248  }
  0x50   : > { %337 = vrot.lane.b32.xlu2 %v317_v2, %s4482_s25  ;;  %v318_v5 = vld [vmem:[%s245_s12 + $0x28] sm:$0xff]  ;;  %v320_v6 = vld [vmem:[%s245_s12 + $0x38] sm:$0xff]  ;;  %v319_v7 = vld [vmem:[%s245_s12 + $0x30] sm:$0xff]  ;;  %289 = vst.msk [vmem:[#allocation2 + $0x8] sm:$0xff] %vm287_vm0, %v4483_v13  ;;  %s3908_s9 = sld [smem:[#allocation3 + $0x1]]  ;;  %s4484_s23 = smov 126  }
  0x51   : > { %v362_v8 = vld [vmem:[%s4660_s6] sm:$0xff]  ;;  %v364_v9 = vld [vmem:[%s4660_s6 + $0x10] sm:$0xff]  ;;  %v363_v10 = vld [vmem:[%s4660_s6 + $0x8] sm:$0xff]  ;;  %292 = vst.msk [vmem:[#allocation2 + $0x18] sm:$0xff] %vm287_vm0, %v4483_v13  ;;  %s3911_s13 = sld [smem:[#allocation3 + $0x4]]  ;;  %s4485_s8 = smov 127  }
  0x52   : > { %v367_v11 = vld [vmem:[%s4660_s6 + $0x28] sm:$0xff]  ;;  %v366_v12 = vld [vmem:[%s4660_s6 + $0x20] sm:$0xff]  ;;  %v365_v14 = vld [vmem:[%s4660_s6 + $0x18] sm:$0xff]  ;;  %293 = vst.msk [vmem:[#allocation2 + $0x20] sm:$0xff] %vm287_vm0, %v4483_v13  ;;  %s3914_s11 = sld [smem:[#allocation3 + $0x7]]  ;;  %vm3733_vm3 = vcmask 130048  }
  0x53   : > { %v369_v15 = vld [vmem:[%s4660_s6 + $0x38] sm:$0xff]  ;;  %295 = vst.msk [vmem:[#allocation2 + $0x30] sm:$0xff] %vm287_vm0, %v4483_v13  ;;  %v368_v16 = vld [vmem:[%s4660_s6 + $0x30] sm:$0xff]  ;;  %s3912_s22 = sld [smem:[#allocation3 + $0x5]] }
  0x54   : > { %296 = vst.msk [vmem:[#allocation2 + $0x38] sm:$0xff] %vm287_vm0, %v4483_v13  ;;  %s3915_s30 = sld [smem:[#allocation3 + $0x8]] }
  0x55   : > { %298 = vst.msk [vmem:[#allocation2 + $0x48] sm:$0xff] %vm287_vm0, %v4483_v13  ;;  %v438_v18 = vstv %s3909_s26  ;;  %s3918_s5 = sld [smem:[#allocation3 + $0x4a]] }
  0x56   : > { %299 = vst.msk [vmem:[#allocation2 + $0x50] sm:$0xff] %vm287_vm0, %v4483_v13  ;;  %v424_v19 = vstv %s3908_s9  ;;  %s3917_s7 = sld [smem:[#allocation3 + $0x49]] }
  0x57   : > { %331 = vrot.lane.b32.xlu0 %v314_v3, %s4482_s25  ;;  %335 = vrot.lane.b32.xlu1 %v316_v4, %s4482_s25  ;;  %301 = vst.msk [vmem:[#allocation2 + $0x60] sm:$0xff] %vm287_vm0, %v4483_v13  ;;  %v458_v26 = vstv %s3911_s13  ;;  %s3920_s0 = sld [smem:[#allocation3 + $0x4c]] }
  0x58   : > { %339 = vrot.lane.b32.xlu2 %v318_v5, %s4482_s25  ;;  %302 = vst.msk [vmem:[#allocation2 + $0x68] sm:$0xff] %vm287_vm0, %v4483_v13  ;;  %v492_v32 = vstv %s3914_s11  ;;  %s4750_s1 = sld [smem:[#allocation3 + $0x4f]] }
  0x59   : > { %304 = vst.msk [vmem:[#allocation2 + $0x78] sm:$0xff] %vm287_vm0, %v4483_v13  ;;  %v472_v33 = vstv %s3912_s22  ;;  %s3921_s20 = sld [smem:[#allocation3 + $0x4d]] }
  0x5a   : > { %305 = vst.msk [vmem:[#allocation2 + $0x80] sm:$0xff] %vm287_vm0, %v4483_v13  ;;  %v506_v38 = vstv %s3915_s30  ;;  %s4761_s10 = sld [smem:[#allocation3 + $0x50]] }
  0x5b   : > { %307 = vst.msk [vmem:[#allocation2 + $0x90] sm:$0xff] %vm287_vm0, %v4483_v13  ;;  %v540_v43 = vstv %s3918_s5  ;;  %s4772_s12 = sld [smem:[#allocation3 + $0x92]] }
  0x5c   : > { %308 = vst.msk [vmem:[#allocation2 + $0x98] sm:$0xff] %vm287_vm0, %v4483_v13  ;;  %v526_v44 = vstv %s3917_s7  ;;  %s4775_s14 = sld [smem:[#allocation3 + $0x91]] }
  0x5d   : > { %310 = vst.msk [vmem:[#allocation2 + $0xa8] sm:$0xff] %vm287_vm0, %v4483_v13  ;;  %v560_v50 = vstv %s3920_s0  ;;  %s3929_s6 = sld [smem:[#allocation3 + $0x94]] }
  0x5e   : > { %311 = vst.msk [vmem:[#allocation2 + $0xb0] sm:$0xff] %vm287_vm0, %v4483_v13  ;;  %v594_v56 = vstv %s4750_s1  ;;  %s3930_s26 = sld [smem:[#allocation3 + $0x95]] }
  0x5f   : > { %343 = vrot.lane.b32.xlu1 %v320_v6, %s4482_s25  ;;  %341 = vrot.lane.b32.xlu0 %v319_v7, %s4482_s25  ;;  %291 = vst.msk [vmem:[#allocation2 + $0x10] sm:$0x3] %vm290_vm1, %v4483_v13  ;;  %v574_v57 = vstv %s3921_s20  ;;  %s3933_s9 = sld [smem:[#allocation3 + $0x98]] }
  0x60   : > { %378 = vrot.lane.b32.xlu2 %v362_v8, %s4482_s25  ;;  %294 = vst.msk [vmem:[#allocation2 + $0x28] sm:$0x3] %vm290_vm1, %v4483_v13  ;;  %v608_v0 = vstv %s4761_s10  ;;  %s3936_s13 = sld [smem:[#allocation3 + $0xda]] }
  0x61   : > { %297 = vst.msk [vmem:[#allocation2 + $0x40] sm:$0x3] %vm290_vm1, %v4483_v13  ;;  %v642_v6 = vstv %s4772_s12  ;;  %s3935_s11 = sld [smem:[#allocation3 + $0xd9]] }
  0x62   : > { %300 = vst.msk [vmem:[#allocation2 + $0x58] sm:$0x3] %vm290_vm1, %v4483_v13  ;;  %v628_v8 = vstv %s4775_s14  ;;  %s3938_s22 = sld [smem:[#allocation3 + $0xdc]] }
  0x63   : > { %303 = vst.msk [vmem:[#allocation2 + $0x70] sm:$0x3] %vm290_vm1, %v4483_v13  ;;  %s4822_s30 = sld [smem:[#allocation3 + $0xdf]] }
  0x64   : > { %306 = vst.msk [vmem:[#allocation2 + $0x88] sm:$0x3] %vm290_vm1, %v4483_v13  ;;  %s4824_s5 = sld [smem:[#allocation3 + $0xdd]] }
  0x65   : > { %309 = vst.msk [vmem:[#allocation2 + $0xa0] sm:$0x3] %vm290_vm1, %v4483_v13  ;;  %s4828_s7 = sld [smem:[#allocation3]] }
  0x66   : > { %312 = vst.msk [vmem:[#allocation2 + $0xb8] sm:$0x3] %vm290_vm1, %v4483_v13  ;;  %s4834_s0 = sld [smem:[#allocation3 + $0xe0]] }
  0x67   : > { %382 = vrot.lane.b32.xlu1 %v364_v9, %s4482_s25  ;;  %380 = vrot.lane.b32.xlu0 %v363_v10, %s4482_s25  ;;  %s4837_s1 = sld [smem:[#allocation3 + $0x3]] }
  0x68   : > { %384 = vrot.lane.b32.xlu2 %v365_v14, %s4482_s25  ;;  %v662_v14 = vstv %s3929_s6  ;;  %s4850_s20 = sld [smem:[#allocation3 + $0xb]] }
  0x69   : > { %s4852_s10 = sld [smem:[#allocation3 + $0xa]] }
  0x6a   : > { %s4858_s12 = sld [smem:[#allocation3 + $0x6]] }
  0x6b   : > { %s4869_s14 = sld [smem:[#allocation3 + $0xd]] }
  0x6c   : > { %s4875_s6 = sld [smem:[#allocation3 + $0x9]] }
  0x6f   : > { %388 = vrot.lane.b32.xlu1 %v367_v11, %s4482_s25  ;;  %386 = vrot.lane.b32.xlu0 %v366_v12, %s4482_s25 }
  0x70   : > { %390 = vrot.lane.b32.xlu2 %v368_v16, %s4482_s25 }
  0x77   : > { %392 = vrot.lane.b32.xlu0 %v369_v15, %s4482_s25  ;;  %s3932_s25 = sld [smem:[#allocation3 + $0x97]] }
  0xaa   : > { %v338_v42 = vpop.permute.xlu2 %337 }
  0xab   : > { %358 = vst.msk [vmem:[#allocation2 + $0x31] sm:$0xff] %vm353_vm2, %v338_v42 }
  0xb2   : > { %v340_v48 = vpop.permute.xlu2 %339 }
  0xb3   : > { %359 = vst.msk [vmem:[#allocation2 + $0x39] sm:$0xff] %vm353_vm2, %v340_v48 }
  0xba   : > { %v379_v54 = vpop.permute.xlu2 %378 }
  0xbb   : > { %403 = vst.msk [vmem:[#allocation2 + $0x61] sm:$0xff] %vm353_vm2, %v379_v54 }
  0xc1   : > { %v330_v17 = vpop.permute.xlu0 %329  ;;  %v334_v49 = vpop.permute.xlu1 %333 }
  0xc2   : > { %354 = vst.msk [vmem:[#allocation2 + $0x1] sm:$0xff] %vm353_vm2, %v330_v17  ;;  %v385_v63 = vpop.permute.xlu2 %384 }
  0xc3   : > { %356 = vst.msk [vmem:[#allocation2 + $0x19] sm:$0xff] %vm353_vm2, %v334_v49  ;;  %v418_v49 = vstv %s4828_s7  ;;  %s4950_s7 = sld [smem:[#allocation3 + $0x55]] }
  0xc4   : > { %406 = vst.msk [vmem:[#allocation2 + $0x81] sm:$0xff] %vm353_vm2, %v385_v63 }
  0xc9   : > { %v4707_v20 = vld [vmem:[#allocation2] sm:$0xff]  ;;  %v332_v21 = vpop.permute.xlu0 %331  ;;  %v336_v55 = vpop.permute.xlu1 %335 }
  0xca   : > { %355 = vst.msk [vmem:[#allocation2 + $0x9] sm:$0xff] %vm353_vm2, %v332_v21  ;;  %v439_v22 = vmul.f32 %v438_v18, %v4707_v20  ;;  %v425_v23 = vmul.f32 %v424_v19, %v4707_v20  ;;  %v4724_v30 = vld [vmem:[#allocation2 + $0x1] sm:$0xff]  ;;  %v541_v46 = vmul.f32 %v540_v43, %v4707_v20  ;;  %v527_v47 = vmul.f32 %v526_v44, %v4707_v20  ;;  %v391_v7 = vpop.permute.xlu2 %390 }
  0xcb   : > { %v459_v34 = vmul.f32 %v458_v26, %v4724_v30  ;;  %v473_v36 = vmul.f32 %v472_v33, %v4724_v30  ;;  %357 = vst.msk [vmem:[#allocation2 + $0x21] sm:$0xff] %vm353_vm2, %v336_v55  ;;  %v561_v58 = vmul.f32 %v560_v50, %v4724_v30  ;;  %v575_v60 = vmul.f32 %v574_v57, %v4724_v30 }
  0xcc   : > { %443 = vrot.lane.b32.xlu0 %v439_v22, %s4484_s23  ;;  %429 = vrot.lane.b32.xlu1 %v425_v23, %s4485_s8  ;;  %409 = vst.msk [vmem:[#allocation2 + $0xa9] sm:$0xff] %vm353_vm2, %v391_v7  ;;  %v643_v10 = vmul.f32 %v642_v6, %v4707_v20  ;;  %v629_v11 = vmul.f32 %v628_v8, %v4707_v20  ;;  %v676_v21 = vstv %s3930_s26  ;;  %v812_v55 = vstv %s4834_s0  ;;  %s4890_s26 = sld [smem:[#allocation3 + $0xe]] }
  0xcd   : > { %v663_v22 = vmul.f32 %v662_v14, %v4724_v30  ;;  %s4956_s0 = sld [smem:[#allocation3 + $0x51]] }
  0xd1   : > { %v4714_v24 = vld [vmem:[#allocation2 + $0x8] sm:$0xff]  ;;  %v344_v61 = vpop.permute.xlu1 %343  ;;  %v342_v62 = vpop.permute.xlu0 %341 }
  0xd2   : > { %v4716_v25 = vld [vmem:[#allocation2 + $0x9] sm:$0xff]  ;;  %v426_v27 = vmul.f32 %v424_v19, %v4714_v24  ;;  %v440_v29 = vmul.f32 %v438_v18, %v4714_v24  ;;  %v528_v51 = vmul.f32 %v526_v44, %v4714_v24  ;;  %v542_v53 = vmul.f32 %v540_v43, %v4714_v24  ;;  %361 = vst.msk [vmem:[#allocation2 + $0x51] sm:$0xff] %vm353_vm2, %v344_v61 }
  0xd3   : > { %v460_v28 = vmul.f32 %v458_v26, %v4716_v25  ;;  %v4726_v31 = vld [vmem:[#allocation2 + $0x2] sm:$0xff]  ;;  %v4734_v37 = vld [vmem:[#allocation2 + $0xa] sm:$0xff]  ;;  %v474_v39 = vmul.f32 %v472_v33, %v4716_v25  ;;  %v562_v52 = vmul.f32 %v560_v50, %v4716_v25  ;;  %360 = vst.msk [vmem:[#allocation2 + $0x49] sm:$0xff] %vm353_vm2, %v342_v62  ;;  %v576_v1 = vmul.f32 %v574_v57, %v4716_v25 }
  0xd4   : > { %431 = vrot.lane.b32.xlu2 %v426_v27, %s4485_s8  ;;  %445 = vrot.lane.b32.xlu1 %v440_v29, %s4484_s23  ;;  %v493_v35 = vmul.f32 %v492_v32, %v4726_v31  ;;  %v508_v40 = vmul.f32 %v506_v38, %v4734_v37  ;;  %v494_v41 = vmul.f32 %v492_v32, %v4734_v37  ;;  %v696_v19 = vstv %s3932_s25  ;;  %s4887_s25 = sld [smem:[#allocation3 + $0x10]] }
  0xd5   : > { %465 = vrot.lane.b32.xlu0 %v460_v28, %s4485_s8  ;;  %v507_v45 = vmul.f32 %v506_v38, %v4726_v31  ;;  %v595_v59 = vmul.f32 %v594_v56, %v4726_v31  ;;  %v610_v2 = vmul.f32 %v608_v0, %v4734_v37  ;;  %v596_v3 = vmul.f32 %v594_v56, %v4734_v37 }
  0xd6   : > { %v609_v9 = vmul.f32 %v608_v0, %v4726_v31  ;;  %v630_v15 = vmul.f32 %v628_v8, %v4714_v24  ;;  %v664_v16 = vmul.f32 %v662_v14, %v4716_v25  ;;  %v644_v17 = vmul.f32 %v642_v6, %v4714_v24 }
  0xd7   : > { %v697_v23 = vmul.f32 %v696_v19, %v4726_v31  ;;  %v677_v26 = vmul.f32 %v676_v21, %v4724_v30  ;;  %v710_v27 = vstv %s3933_s9  ;;  %v678_v28 = vmul.f32 %v676_v21, %v4716_v25  ;;  %s4895_s9 = sld [smem:[#allocation3 + $0x48]] }
  0xd8   : > { %v712_v29 = vmul.f32 %v710_v27, %v4734_v37  ;;  %v698_v32 = vmul.f32 %v696_v19, %v4734_v37  ;;  %v744_v33 = vstv %s3936_s13  ;;  %v452_v56 = vstv %s4837_s1  ;;  %s4910_s13 = sld [smem:[#allocation3 + $0x4b]] }
  0xd9   : > { %v383_v4 = vpop.permute.xlu1 %382  ;;  %v381_v5 = vpop.permute.xlu0 %380  ;;  %v746_v43 = vmul.f32 %v744_v33, %v4714_v24  ;;  %v453_v61 = vmul.f32 %v452_v56, %v4724_v30  ;;  %v420_v63 = vmul.f32 %v418_v49, %v4714_v24  ;;  %v853_v6 = vstv %s4850_s20  ;;  %s4965_s1 = sld [smem:[#allocation3 + $0x58]] }
  0xda   : > { %405 = vst.msk [vmem:[#allocation2 + $0x79] sm:$0xff] %vm353_vm2, %v383_v4  ;;  %v4864_v4 = vld [vmem:[#allocation2 + $0x18] sm:$0xff]  ;;  %v454_v7 = vmul.f32 %v452_v56, %v4716_v25  ;;  %v486_v14 = vstv %s4858_s12  ;;  %s4968_s20 = sld [smem:[#allocation3 + $0x56]] }
  0xdb   : > { %404 = vst.msk [vmem:[#allocation2 + $0x69] sm:$0xff] %vm353_vm2, %v381_v5  ;;  %v488_v21 = vmul.f32 %v486_v14, %v4734_v37  ;;  %s4982_s12 = sld [smem:[#allocation3 + $0x93]] }
  0xdc   : > { %463 = vrot.lane.b32.xlu2 %v459_v34, %s4485_s8  ;;  %477 = vrot.lane.b32.xlu1 %v473_v36, %s4484_s23  ;;  %v730_v34 = vstv %s3935_s11  ;;  %v745_v36 = vmul.f32 %v744_v33, %v4707_v20  ;;  %s4915_s11 = sld [smem:[#allocation3 + $0x11]] }
  0xdd   : > { %497 = vrot.lane.b32.xlu0 %v493_v35, %s4485_s8  ;;  %v711_v35 = vmul.f32 %v710_v27, %v4726_v31  ;;  %v731_v38 = vmul.f32 %v730_v34, %v4707_v20  ;;  %v487_v27 = vmul.f32 %v486_v14, %v4726_v31 }
  0xe1   : > { %v389_v12 = vpop.permute.xlu1 %388  ;;  %v387_v13 = vpop.permute.xlu0 %386 }
  0xe2   : > { %408 = vst.msk [vmem:[#allocation2 + $0x99] sm:$0xff] %vm353_vm2, %v389_v12  ;;  %v854_v12 = vmul.f32 %v853_v6, %v4864_v4 }
  0xe3   : > { %407 = vst.msk [vmem:[#allocation2 + $0x91] sm:$0xff] %vm353_vm2, %v387_v13 }
  0xe4   : > { %479 = vrot.lane.b32.xlu2 %v474_v39, %s4484_s23  ;;  %499 = vrot.lane.b32.xlu1 %v494_v41, %s4485_s8  ;;  %v732_v41 = vmul.f32 %v730_v34, %v4714_v24 }
  0xe5   : > { %513 = vrot.lane.b32.xlu0 %v508_v40, %s4484_s23  ;;  %v764_v40 = vstv %s3938_s22  ;;  %s4931_s22 = sld [smem:[#allocation3 + $0x53]] }
  0xe6   : > { %v766_v42 = vmul.f32 %v764_v40, %v4716_v25 }
  0xe9   : > { %v393_v18 = vpop.permute.xlu0 %392 }
  0xea   : > { %410 = vst.msk [vmem:[#allocation2 + $0xb1] sm:$0xff] %vm353_vm2, %v393_v18 }
  0xeb   : > { %v955_v14 = vstv %s4931_s22  ;;  %s5037_s22 = sld [smem:[#allocation3 + $0x9e]] }
  0xec   : > { %511 = vrot.lane.b32.xlu2 %v507_v45, %s4484_s23  ;;  %531 = vrot.lane.b32.xlu1 %v527_v47, %s4485_s8  ;;  %v798_v45 = vstv %s4822_s30  ;;  %v765_v47 = vmul.f32 %v764_v40, %v4724_v30  ;;  %s4933_s30 = sld [smem:[#allocation3 + $0x52]] }
  0xed   : > { %545 = vrot.lane.b32.xlu0 %v541_v46, %s4484_s23  ;;  %v778_v46 = vstv %s4824_s5  ;;  %v799_v48 = vmul.f32 %v798_v45, %v4726_v31  ;;  %v800_v62 = vmul.f32 %v798_v45, %v4734_v37  ;;  %v4907_v45 = vld [vmem:[#allocation2 + $0x1a] sm:$0xff]  ;;  %s4940_s5 = sld [smem:[#allocation3 + $0x4e]] }
  0xee   : > { %v779_v50 = vmul.f32 %v778_v46, %v4724_v30 }
  0xf4   : > { %533 = vrot.lane.b32.xlu2 %v528_v51, %s4485_s8  ;;  %547 = vrot.lane.b32.xlu1 %v542_v53, %s4484_s23  ;;  %v419_v53 = vmul.f32 %v418_v49, %v4707_v20  ;;  %v887_v49 = vstv %s4890_s26  ;;  %s5010_s26 = sld [smem:[#allocation3 + $0x96]] }
  0xf5   : > { %567 = vrot.lane.b32.xlu0 %v562_v52, %s4485_s8 }
  0xfc   : > { %565 = vrot.lane.b32.xlu2 %v561_v58, %s4485_s8  ;;  %579 = vrot.lane.b32.xlu1 %v575_v60, %s4484_s23  ;;  %v814_v60 = vmul.f32 %v812_v55, %v4734_v37 }
  0xfd   : > { %599 = vrot.lane.b32.xlu0 %v595_v59, %s4485_s8  ;;  %v780_v59 = vmul.f32 %v778_v46, %v4716_v25 }
 0x104   : > { %581 = vrot.lane.b32.xlu2 %v576_v1, %s4484_s23  ;;  %601 = vrot.lane.b32.xlu1 %v596_v3, %s4485_s8 }
 0x105   : > { %615 = vrot.lane.b32.xlu0 %v610_v2, %s4484_s23 }
 0x10c   : > { %613 = vrot.lane.b32.xlu2 %v609_v9, %s4484_s23  ;;  %633 = vrot.lane.b32.xlu1 %v629_v11, %s4485_s8  ;;  %v839_v9 = vstv %s4852_s10  ;;  %v813_v11 = vmul.f32 %v812_v55, %v4726_v31  ;;  %v520_v55 = vstv %s4895_s9  ;;  %s4973_s10 = sld [smem:[#allocation3 + $0x90]] }
 0x10d   : > { %647 = vrot.lane.b32.xlu0 %v643_v10, %s4484_s23  ;;  %v840_v13 = vmul.f32 %v839_v9, %v4864_v4  ;;  %s5020_s9 = sld [smem:[#allocation3 + $0x9d]] }
 0x114   : > { %635 = vrot.lane.b32.xlu2 %v630_v15, %s4485_s8  ;;  %649 = vrot.lane.b32.xlu1 %v644_v17, %s4484_s23 }
 0x115   : > { %669 = vrot.lane.b32.xlu0 %v664_v16, %s4485_s8 }
 0x11c   : > { %667 = vrot.lane.b32.xlu2 %v663_v22, %s4485_s8  ;;  %681 = vrot.lane.b32.xlu1 %v677_v26, %s4484_s23  ;;  %v4883_v22 = vld [vmem:[#allocation2 + $0x20] sm:$0xff] }
 0x11d   : > { %701 = vrot.lane.b32.xlu0 %v697_v23, %s4485_s8  ;;  %v4885_v23 = vld [vmem:[#allocation2 + $0x21] sm:$0xff]  ;;  %v841_v34 = vmul.f32 %v839_v9, %v4883_v22 }
 0x124   : > { %683 = vrot.lane.b32.xlu2 %v678_v28, %s4484_s23  ;;  %703 = vrot.lane.b32.xlu1 %v698_v32, %s4485_s8  ;;  %v873_v32 = vstv %s4869_s14  ;;  %s4987_s14 = sld [smem:[#allocation3 + $0x59]] }
 0x125   : > { %717 = vrot.lane.b32.xlu0 %v712_v29, %s4484_s23 }
 0x12c   : > { %715 = vrot.lane.b32.xlu2 %v711_v35, %s4484_s23  ;;  %735 = vrot.lane.b32.xlu1 %v731_v38, %s4485_s8  ;;  %v875_v35 = vmul.f32 %v873_v32, %v4885_v23  ;;  %v833_v38 = vstv %s4875_s6  ;;  %s5001_s6 = sld [smem:[#allocation3 + $0x9b]] }
 0x12d   : > { %749 = vrot.lane.b32.xlu0 %v745_v36, %s4484_s23  ;;  %v855_v36 = vmul.f32 %v853_v6, %v4883_v22 }
 0x12e   : > { %v432_v39 = vpop.permute.xlu2 %431 }
 0x12f   : > { %v436_v1 = vadd.f32 %v432_v39, %v420_v63  ;;  %v554_v63 = vstv %s4910_s13  ;;  %s5026_s13 = sld [smem:[#allocation3 + $0x99]] }
 0x130   : > { %v555_v6 = vmul.f32 %v554_v63, %v4724_v30 }
 0x134   : > { %737 = vrot.lane.b32.xlu2 %v732_v41, %s4485_s8  ;;  %751 = vrot.lane.b32.xlu1 %v746_v43, %s4484_s23 }
 0x135   : > { %771 = vrot.lane.b32.xlu0 %v766_v42, %s4485_s8  ;;  %v834_v42 = vmul.f32 %v833_v38, %v4864_v4 }
 0x136   : > { %v464_v44 = vpop.permute.xlu2 %463 }
 0x13c   : > { %769 = vrot.lane.b32.xlu2 %v765_v47, %s4485_s8  ;;  %783 = vrot.lane.b32.xlu1 %v779_v50, %s4484_s23  ;;  %v907_v47 = vstv %s4887_s25  ;;  %s5003_s25 = sld [smem:[#allocation3 + $0x9a]] }
 0x13d   : > { %803 = vrot.lane.b32.xlu0 %v799_v48, %s4485_s8 }
 0x13e   : > { %v480_v51 = vpop.permute.xlu2 %479  ;;  %v444_v52 = vpop.permute.xlu0 %443 }
 0x13f   : > { %v430_v54 = vpop.permute.xlu1 %429 }
 0x140   : > { %v435_v57 = vadd.f32 %v430_v54, %v419_v53  ;;  %v908_v53 = vmul.f32 %v907_v47, %v4907_v45  ;;  %v835_v54 = vmul.f32 %v833_v38, %v4883_v22 }
 0x142   : > { %v449_v58 = vadd.f32 %v444_v52, %v435_v57 }
 0x144   : > { %785 = vrot.lane.b32.xlu2 %v780_v59, %s4484_s23  ;;  %v455_v0 = vadd.f32 %v453_v61, %v449_v58  ;;  %805 = vrot.lane.b32.xlu1 %v800_v62, %s4485_s8  ;;  %v4928_v61 = vld [vmem:[#allocation2 + $0x22] sm:$0xff] }
 0x145   : > { %819 = vrot.lane.b32.xlu0 %v814_v60, %s4484_s23  ;;  %v521_v60 = vmul.f32 %v520_v55, %v4707_v20 }
 0x146   : > { %v512_v2 = vpop.permute.xlu2 %511  ;;  %v469_v18 = vadd.f32 %v464_v44, %v455_v0  ;;  %v4905_v44 = vld [vmem:[#allocation2 + $0x19] sm:$0xff] }
 0x147   : > { %v466_v3 = vpop.permute.xlu0 %465  ;;  %v446_v5 = vpop.permute.xlu1 %445  ;;  %v874_v52 = vmul.f32 %v873_v32, %v4905_v44  ;;  %v888_v56 = vmul.f32 %v887_v49, %v4905_v44 }
 0x148   : > { %v450_v8 = vadd.f32 %v446_v5, %v436_v1  ;;  %v921_v1 = vstv %s4915_s11  ;;  %s5034_s11 = sld [smem:[#allocation3 + $0xa0]] }
 0x149   : > { %v923_v5 = vmul.f32 %v921_v1, %v4928_v61 }
 0x14a   : > { %v456_v10 = vadd.f32 %v454_v7, %v450_v8  ;;  %v909_v7 = vmul.f32 %v907_v47, %v4928_v61  ;;  %v522_v8 = vmul.f32 %v520_v55, %v4714_v24 }
 0x14c   : > { %v470_v15 = vadd.f32 %v466_v3, %v456_v10  ;;  %817 = vrot.lane.b32.xlu2 %v813_v11, %s4484_s23  ;;  %844 = vrot.lane.b32.xlu1 %v840_v13, %s4485_s8  ;;  %v889_v3 = vmul.f32 %v887_v49, %v4885_v23 }
 0x14d   : > { %858 = vrot.lane.b32.xlu0 %v854_v12, %s4484_s23 }
 0x14e   : > { %v4880_v16 = vpop.permute.xlu2 %533  ;;  %v484_v19 = vadd.f32 %v480_v51, %v470_v15  ;;  %v556_v15 = vmul.f32 %v554_v63, %v4716_v25 }
 0x14f   : > { %v498_v17 = vpop.permute.xlu0 %497  ;;  %v478_v26 = vpop.permute.xlu1 %477  ;;  %v538_v10 = vadd.f32 %v4880_v16, %v522_v8 }
 0x150   : > { %v483_v28 = vadd.f32 %v478_v26, %v469_v18  ;;  %v490_v29 = vadd.f32 %v488_v21, %v484_v19  ;;  %v941_v18 = vstv %s4933_s30  ;;  %v922_v21 = vmul.f32 %v921_v1, %v4907_v45  ;;  %s5042_s30 = sld [smem:[#allocation3 + $0xd8]] }
 0x151   : > { %v956_v26 = vmul.f32 %v955_v14, %v4864_v4 }
 0x152   : > { %v489_v33 = vadd.f32 %v487_v27, %v483_v28  ;;  %v942_v27 = vmul.f32 %v941_v18, %v4864_v4  ;;  %v588_v28 = vstv %s4940_s5  ;;  %s5051_s5 = sld [smem:[#allocation3 + $0xdb]] }
 0x153   : > { %v589_v38 = vmul.f32 %v588_v28, %v4726_v31 }
 0x154   : > { %v503_v39 = vadd.f32 %v498_v17, %v489_v33  ;;  %846 = vrot.lane.b32.xlu2 %v841_v34, %s4485_s8  ;;  %860 = vrot.lane.b32.xlu1 %v855_v36, %s4484_s23 }
 0x155   : > { %880 = vrot.lane.b32.xlu0 %v875_v35, %s4485_s8  ;;  %v590_v35 = vmul.f32 %v588_v28, %v4734_v37 }
 0x156   : > { %v4902_v40 = vpop.permute.xlu2 %565  ;;  %v517_v43 = vadd.f32 %v512_v2, %v503_v39 }
 0x157   : > { %v514_v41 = vpop.permute.xlu0 %513  ;;  %v500_v46 = vpop.permute.xlu1 %499 }
 0x158   : > { %v504_v48 = vadd.f32 %v500_v46, %v490_v29  ;;  %v4913_v50 = vadd.f32 %v834_v42, %v517_v43  ;;  %v975_v42 = vstv %s4950_s7  ;;  %v943_v46 = vmul.f32 %v941_v18, %v4883_v22  ;;  %s5056_s7 = sld [smem:[#allocation3 + $0xa1]] }
 0x159   : > { %v977_v47 = vmul.f32 %v975_v42, %v4885_v23  ;;  %v976_v63 = vmul.f32 %v975_v42, %v4905_v44  ;;  %v690_v42 = vstv %s5010_s26  ;;  %s5121_s26 = sld [smem:[#allocation3 + $0xe9]] }
 0x15a   : > { %v518_v51 = vadd.f32 %v514_v41, %v504_v48  ;;  %v935_v48 = vstv %s4956_s0  ;;  %s5070_s0 = sld [smem:[#allocation3 + $0xe3]] }
 0x15b   : > { %v937_v1 = vmul.f32 %v935_v48, %v4883_v22 }
 0x15c   : > { %878 = vrot.lane.b32.xlu2 %v874_v52, %s4485_s8  ;;  %v4924_v57 = vadd.f32 %v835_v54, %v518_v51  ;;  %892 = vrot.lane.b32.xlu1 %v888_v56, %s4484_s23  ;;  %v936_v54 = vmul.f32 %v935_v48, %v4864_v4  ;;  %v1009_v56 = vstv %s4965_s1  ;;  %v692_v48 = vmul.f32 %v690_v42, %v4734_v37  ;;  %s5072_s1 = sld [smem:[#allocation3 + $0xe2]] }
 0x15d   : > { %912 = vrot.lane.b32.xlu0 %v908_v53, %s4485_s8  ;;  %v1011_v18 = vmul.f32 %v1009_v56, %v4928_v61 }
 0x15e   : > { %v582_v58 = vpop.permute.xlu2 %581 }
 0x15f   : > { %v546_v59 = vpop.permute.xlu0 %545  ;;  %v532_v62 = vpop.permute.xlu1 %531 }
 0x160   : > { %v537_v0 = vadd.f32 %v532_v62, %v521_v60 }
 0x162   : > { %v551_v2 = vadd.f32 %v546_v59, %v537_v0  ;;  %v989_v59 = vstv %s4968_s20  ;;  %v1010_v0 = vmul.f32 %v1009_v56, %v4907_v45  ;;  %s5079_s20 = sld [smem:[#allocation3 + $0xde]] }
 0x164   : > { %894 = vrot.lane.b32.xlu2 %v889_v3, %s4484_s23  ;;  %v557_v9 = vadd.f32 %v555_v6, %v551_v2  ;;  %914 = vrot.lane.b32.xlu1 %v909_v7, %s4485_s8  ;;  %v622_v2 = vstv %s4973_s10  ;;  %v990_v3 = vmul.f32 %v989_v59, %v4905_v44  ;;  %s5089_s10 = sld [smem:[#allocation3 + $0xe5]] }
 0x165   : > { %928 = vrot.lane.b32.xlu0 %v923_v5, %s4484_s23  ;;  %v623_v8 = vmul.f32 %v622_v2, %v4707_v20 }
 0x166   : > { %v614_v11 = vpop.permute.xlu2 %613  ;;  %v571_v33 = vadd.f32 %v4902_v40, %v557_v9  ;;  %v957_v40 = vmul.f32 %v955_v14, %v4883_v22  ;;  %v991_v14 = vmul.f32 %v989_v59, %v4885_v23 }
 0x167   : > { %v568_v12 = vpop.permute.xlu0 %567  ;;  %v548_v13 = vpop.permute.xlu1 %547 }
 0x168   : > { %v552_v17 = vadd.f32 %v548_v13, %v538_v10  ;;  %v656_v10 = vstv %s4982_s12  ;;  %s5095_s12 = sld [smem:[#allocation3 + $0xe1]] }
 0x16a   : > { %v558_v19 = vadd.f32 %v556_v15, %v552_v17  ;;  %v657_v17 = vmul.f32 %v656_v10, %v4724_v30 }
 0x16c   : > { %v572_v16 = vadd.f32 %v568_v12, %v558_v19  ;;  %926 = vrot.lane.b32.xlu2 %v922_v21, %s4484_s23  ;;  %946 = vrot.lane.b32.xlu1 %v942_v27, %s4485_s8  ;;  %v1023_v12 = vstv %s4987_s14  ;;  %v624_v19 = vmul.f32 %v622_v2, %v4714_v24  ;;  %s5101_s14 = sld [smem:[#allocation3 + $0xe8]] }
 0x16d   : > { %960 = vrot.lane.b32.xlu0 %v956_v26, %s4484_s23  ;;  %v1025_v15 = vmul.f32 %v1023_v12, %v4928_v61 }
 0x16e   : > { %v4961_v29 = vpop.permute.xlu2 %635  ;;  %v586_v34 = vadd.f32 %v582_v58, %v572_v16 }
 0x16f   : > { %v600_v32 = vpop.permute.xlu0 %599  ;;  %v580_v36 = vpop.permute.xlu1 %579  ;;  %v640_v26 = vadd.f32 %v4961_v29, %v624_v19 }
 0x170   : > { %v585_v39 = vadd.f32 %v580_v36, %v571_v33  ;;  %v592_v41 = vadd.f32 %v590_v35, %v586_v34  ;;  %v658_v33 = vmul.f32 %v656_v10, %v4716_v25  ;;  %v1043_v35 = vstv %s5003_s25  ;;  %s5116_s25 = sld [smem:[#allocation3 + $0xc]] }
 0x172   : > { %v591_v43 = vadd.f32 %v589_v38, %v585_v39  ;;  %v1024_v38 = vmul.f32 %v1023_v12, %v4907_v45 }
 0x174   : > { %v605_v49 = vadd.f32 %v600_v32, %v591_v43  ;;  %948 = vrot.lane.b32.xlu2 %v943_v46, %s4485_s8  ;;  %962 = vrot.lane.b32.xlu1 %v957_v40, %s4484_s23  ;;  %v1057_v32 = vstv %s5001_s6  ;;  %s5104_s6 = sld [smem:[#allocation3 + $0xe6]] }
 0x175   : > { %982 = vrot.lane.b32.xlu0 %v977_v47, %s4485_s8  ;;  %v1058_v39 = vmul.f32 %v1057_v32, %v4864_v4 }
 0x176   : > { %v668_v51 = vpop.permute.xlu2 %667  ;;  %v619_v53 = vadd.f32 %v614_v11, %v605_v49 }
 0x177   : > { %v616_v52 = vpop.permute.xlu0 %615  ;;  %v602_v55 = vpop.permute.xlu1 %601 }
 0x178   : > { %v606_v58 = vadd.f32 %v602_v55, %v592_v41  ;;  %v4985_v60 = vadd.f32 %v936_v54, %v619_v53  ;;  %v1044_v41 = vmul.f32 %v1043_v35, %v4864_v4  ;;  %v1077_v55 = vstv %s5020_s9  ;;  %s5133_s9 = sld [smem:[#allocation3 + $0x14]] }
 0x179   : > { %v1079_v59 = vmul.f32 %v1077_v55, %v4885_v23  ;;  %v1078_v12 = vmul.f32 %v1077_v55, %v4905_v44 }
 0x17a   : > { %v620_v62 = vadd.f32 %v616_v52, %v606_v58  ;;  %v691_v52 = vmul.f32 %v690_v42, %v4726_v31  ;;  %v1045_v58 = vmul.f32 %v1043_v35, %v4883_v22 }
 0x17c   : > { %980 = vrot.lane.b32.xlu2 %v976_v63, %s4485_s8  ;;  %v4996_v5 = vadd.f32 %v937_v1, %v620_v62  ;;  %994 = vrot.lane.b32.xlu1 %v990_v3, %s4484_s23  ;;  %v1037_v62 = vstv %s5026_s13  ;;  %s5136_s13 = sld [smem:[#allocation3 + $0x13]] }
 0x17d   : > { %1014 = vrot.lane.b32.xlu0 %v1010_v0, %s4485_s8  ;;  %v1038_v3 = vmul.f32 %v1037_v62, %v4864_v4 }
 0x17e   : > { %v684_v6 = vpop.permute.xlu2 %683 }
 0x17f   : > { %v648_v7 = vpop.permute.xlu0 %647  ;;  %v634_v9 = vpop.permute.xlu1 %633 }
 0x180   : > { %v639_v11 = vadd.f32 %v634_v9, %v623_v8  ;;  %v1091_v9 = vstv %s5037_s22  ;;  %s5152_s22 = sld [smem:[#allocation3 + $0x16]] }
 0x182   : > { %v653_v13 = vadd.f32 %v648_v7, %v639_v11  ;;  %v1111_v7 = vstv %s5034_s11  ;;  %s3949_s11 = sld [smem:[#allocation3 + $0xf]] }
 0x184   : > { %996 = vrot.lane.b32.xlu2 %v991_v14, %s4484_s23  ;;  %v659_v21 = vadd.f32 %v657_v17, %v653_v13  ;;  %1016 = vrot.lane.b32.xlu1 %v1011_v18, %s4485_s8  ;;  %v1112_v13 = vmul.f32 %v1111_v7, %v4907_v45  ;;  %v1039_v14 = vmul.f32 %v1037_v62, %v4883_v22 }
 0x185   : > { %1030 = vrot.lane.b32.xlu0 %v1025_v15, %s4484_s23  ;;  %v724_v15 = vstv %s5042_s30  ;;  %v1092_v17 = vmul.f32 %v1091_v9, %v4905_v44  ;;  %s5157_s30 = sld [smem:[#allocation3 + $0x12]] }
 0x186   : > { %v716_v27 = vpop.permute.xlu2 %715  ;;  %v673_v47 = vadd.f32 %v668_v51, %v659_v21  ;;  %v1059_v51 = vmul.f32 %v1057_v32, %v4883_v22  ;;  %v1125_v32 = vstv %s5056_s7  ;;  %s5172_s7 = sld [smem:[#allocation3 + $0x17]] }
 0x187   : > { %v670_v28 = vpop.permute.xlu0 %669  ;;  %v650_v16 = vpop.permute.xlu1 %649  ;;  %v1127_v35 = vmul.f32 %v1125_v32, %v4928_v61 }
 0x188   : > { %v654_v34 = vadd.f32 %v650_v16, %v640_v26  ;;  %v725_v26 = vmul.f32 %v724_v15, %v4707_v20  ;;  %v726_v20 = vmul.f32 %v724_v15, %v4714_v24 }
 0x18a   : > { %v660_v36 = vadd.f32 %v658_v33, %v654_v34  ;;  %v1093_v34 = vmul.f32 %v1091_v9, %v4885_v23 }
 0x18c   : > { %v674_v29 = vadd.f32 %v670_v28, %v660_v36  ;;  %1028 = vrot.lane.b32.xlu2 %v1024_v38, %s4484_s23  ;;  %1048 = vrot.lane.b32.xlu1 %v1044_v41, %s4485_s8  ;;  %v758_v28 = vstv %s5051_s5  ;;  %v1113_v38 = vmul.f32 %v1111_v7, %v4928_v61  ;;  %s5169_s5 = sld [smem:[#allocation3 + $0x19]] }
 0x18d   : > { %1062 = vrot.lane.b32.xlu0 %v1058_v39, %s4484_s23  ;;  %v759_v36 = vmul.f32 %v758_v28, %v4724_v30  ;;  %v1159_v30 = vstv %s5070_s0  ;;  %s5188_s0 = sld [smem:[#allocation3 + $0x54]] }
 0x18e   : > { %v5031_v43 = vpop.permute.xlu2 %737  ;;  %v688_v40 = vadd.f32 %v684_v6, %v674_v29  ;;  %v1161_v7 = vmul.f32 %v1159_v30, %v4883_v22 }
 0x18f   : > { %v702_v46 = vpop.permute.xlu0 %701  ;;  %v682_v49 = vpop.permute.xlu1 %681  ;;  %v742_v41 = vadd.f32 %v5031_v43, %v726_v20 }
 0x190   : > { %v687_v53 = vadd.f32 %v682_v49, %v673_v47  ;;  %v694_v54 = vadd.f32 %v692_v48, %v688_v40  ;;  %v760_v47 = vmul.f32 %v758_v28, %v4716_v25  ;;  %v1145_v48 = vstv %s5072_s1  ;;  %s5193_s1 = sld [smem:[#allocation3 + $0x1a]] }
 0x191   : > { %v1126_v49 = vmul.f32 %v1125_v32, %v4907_v45 }
 0x192   : > { %v693_v56 = vadd.f32 %v691_v52, %v687_v53  ;;  %v1160_v52 = vmul.f32 %v1159_v30, %v4864_v4  ;;  %v1146_v53 = vmul.f32 %v1145_v48, %v4864_v4 }
 0x194   : > { %v707_v63 = vadd.f32 %v702_v46, %v693_v56  ;;  %1050 = vrot.lane.b32.xlu2 %v1045_v58, %s4485_s8  ;;  %1064 = vrot.lane.b32.xlu1 %v1059_v51, %s4484_s23 }
 0x195   : > { %1084 = vrot.lane.b32.xlu0 %v1079_v59, %s4485_s8 }
 0x196   : > { %v770_v0 = vpop.permute.xlu2 %769  ;;  %v721_v2 = vadd.f32 %v716_v27, %v707_v63 }
 0x197   : > { %v718_v1 = vpop.permute.xlu0 %717  ;;  %v704_v6 = vpop.permute.xlu1 %703 }
 0x198   : > { %v708_v8 = vadd.f32 %v704_v6, %v694_v54  ;;  %v5054_v10 = vadd.f32 %v1038_v3, %v721_v2  ;;  %v792_v54 = vstv %s5079_s20  ;;  %v1179_v2 = vstv %s5089_s10  ;;  %s5207_s20 = sld [smem:[#allocation3 + $0x5c]] }
 0x199   : > { %v794_v59 = vmul.f32 %v792_v54, %v4734_v37  ;;  %v793_v62 = vmul.f32 %v792_v54, %v4726_v31  ;;  %v1147_v6 = vmul.f32 %v1145_v48, %v4883_v22  ;;  %v1139_v37 = vstv %s5095_s12  ;;  %s5210_s10 = sld [smem:[#allocation3 + $0x5b]] }
 0x19a   : > { %v722_v11 = vadd.f32 %v718_v1, %v708_v8  ;;  %v1141_v28 = vmul.f32 %v1139_v37, %v4883_v22  ;;  %v1227_v22 = vstv %s5121_s26  ;;  %v1268_v48 = vstv %s5133_s9  ;;  %s3958_s12 = sld [smem:[#allocation3 + $0x57]] }
 0x19b   : > { %v1228_v54 = vmul.f32 %v1227_v22, %v4907_v45  ;;  %s5239_s26 = sld [smem:[#allocation3 + $0x5f]] }
 0x19c   : > { %1082 = vrot.lane.b32.xlu2 %v1078_v12, %s4485_s8  ;;  %v5065_v18 = vadd.f32 %v1039_v14, %v722_v11  ;;  %1096 = vrot.lane.b32.xlu1 %v1092_v17, %s4484_s23  ;;  %v1140_v12 = vmul.f32 %v1139_v37, %v4864_v4  ;;  %v1213_v14 = vstv %s5101_s14  ;;  %v1193_v17 = vstv %s5104_s6  ;;  %s5225_s14 = sld [smem:[#allocation3 + $0x5e]] }
 0x19d   : > { %1116 = vrot.lane.b32.xlu0 %v1112_v13, %s4485_s8  ;;  %v1194_v4 = vmul.f32 %v1193_v17, %v4905_v44  ;;  %v1195_v20 = vmul.f32 %v1193_v17, %v4885_v23  ;;  %s5230_s6 = sld [smem:[#allocation3 + $0x5a]] }
 0x19e   : > { %v786_v19 = vpop.permute.xlu2 %785  ;;  %s5251_s9 = sld [smem:[#allocation3 + $0x9c]] }
 0x19f   : > { %v750_v21 = vpop.permute.xlu0 %749  ;;  %v736_v27 = vpop.permute.xlu1 %735 }
 0x1a0   : > { %v741_v16 = vadd.f32 %v736_v27, %v725_v26  ;;  %v1180_v26 = vmul.f32 %v1179_v2, %v4905_v44  ;;  %v1214_v27 = vmul.f32 %v1213_v14, %v4907_v45 }
 0x1a2   : > { %v755_v33 = vadd.f32 %v750_v21, %v741_v16 }
 0x1a4   : > { %1098 = vrot.lane.b32.xlu2 %v1093_v34, %s4484_s23  ;;  %v761_v39 = vadd.f32 %v759_v36, %v755_v33  ;;  %1118 = vrot.lane.b32.xlu1 %v1113_v38, %s4485_s8 }
 0x1a5   : > { %1132 = vrot.lane.b32.xlu0 %v1127_v35, %s4484_s23  ;;  %v867_v35 = vstv %s5116_s25  ;;  %s5236_s25 = sld [smem:[#allocation3 + $0x61]] }
 0x1a6   : > { %v818_v42 = vpop.permute.xlu2 %817  ;;  %v775_v56 = vadd.f32 %v770_v0, %v761_v39  ;;  %v1181_v0 = vmul.f32 %v1179_v2, %v4885_v23  ;;  %v1229_v39 = vmul.f32 %v1227_v22, %v4928_v61 }
 0x1a7   : > { %v772_v29 = vpop.permute.xlu0 %771  ;;  %v752_v46 = vpop.permute.xlu1 %751 }
 0x1a8   : > { %v756_v40 = vadd.f32 %v752_v46, %v742_v41  ;;  %v868_v41 = vmul.f32 %v867_v35, %v4905_v44 }
 0x1aa   : > { %v762_v24 = vadd.f32 %v760_v47, %v756_v40  ;;  %v5147_v47 = vld [vmem:[#allocation2 + $0x30] sm:$0xff] }
 0x1ac   : > { %v776_v43 = vadd.f32 %v772_v29, %v762_v24  ;;  %1130 = vrot.lane.b32.xlu2 %v1126_v49, %s4484_s23  ;;  %1150 = vrot.lane.b32.xlu1 %v1146_v53, %s4485_s8  ;;  %v869_v24 = vmul.f32 %v867_v35, %v4885_v23 }
 0x1ad   : > { %1164 = vrot.lane.b32.xlu0 %v1160_v52, %s4484_s23  ;;  %v1254_v52 = vstv %s5136_s13  ;;  %s5256_s13 = sld [smem:[#allocation3 + $0x62]] }
 0x1ae   : > { %v847_v25 = vpop.permute.xlu2 %846  ;;  %v790_v58 = vadd.f32 %v786_v19, %v776_v43  ;;  %v1269_v43 = vmul.f32 %v1268_v48, %v5147_v47 }
 0x1af   : > { %v804_v55 = vpop.permute.xlu0 %803  ;;  %v784_v51 = vpop.permute.xlu1 %783 }
 0x1b0   : > { %v789_v63 = vadd.f32 %v784_v51, %v775_v56  ;;  %v796_v1 = vadd.f32 %v794_v59, %v790_v58 }
 0x1b2   : > { %v795_v3 = vadd.f32 %v793_v62, %v789_v63  ;;  %v5165_v63 = vld [vmem:[#allocation2 + $0x38] sm:$0xff] }
 0x1b4   : > { %v809_v8 = vadd.f32 %v804_v55, %v795_v3  ;;  %1152 = vrot.lane.b32.xlu2 %v1147_v6, %s4485_s8  ;;  %1166 = vrot.lane.b32.xlu1 %v1161_v7, %s4484_s23  ;;  %v1255_v55 = vmul.f32 %v1254_v52, %v5147_v47  ;;  %v1288_v7 = vstv %s5152_s22  ;;  %s5271_s22 = sld [smem:[#allocation3 + $0xa3]] }
 0x1b5   : > { %1186 = vrot.lane.b32.xlu0 %v1181_v0, %s4485_s8 }
 0x1b6   : > { %v879_v31 = vpop.permute.xlu2 %878  ;;  %v823_v11 = vadd.f32 %v818_v42, %v809_v8  ;;  %v1215_v42 = vmul.f32 %v1213_v14, %v4928_v61  ;;  %v1256_v8 = vmul.f32 %v1254_v52, %v5165_v63 }
 0x1b7   : > { %v820_v9 = vpop.permute.xlu0 %819  ;;  %v806_v13 = vpop.permute.xlu1 %805 }
 0x1b8   : > { %v810_v15 = vadd.f32 %v806_v13, %v796_v1  ;;  %v5119_v19 = vadd.f32 %v1140_v12, %v823_v11  ;;  %v5167_v1 = vld [vmem:[#allocation2 + $0x39] sm:$0xff]  ;;  %v1248_v11 = vstv %s5157_s30  ;;  %s3967_s30 = sld [smem:[#allocation3 + $0x9f]] }
 0x1b9   : > { %v1250_v22 = vmul.f32 %v1248_v11, %v5165_v63 }
 0x1ba   : > { %v824_v21 = vadd.f32 %v820_v9, %v810_v15  ;;  %v1270_v9 = vmul.f32 %v1268_v48, %v5165_v63  ;;  %v1249_v15 = vmul.f32 %v1248_v11, %v5147_v47 }
 0x1bc   : > { %1184 = vrot.lane.b32.xlu2 %v1180_v26, %s4485_s8  ;;  %v5129_v16 = vadd.f32 %v1141_v28, %v824_v21  ;;  %1198 = vrot.lane.b32.xlu1 %v1194_v4, %s4484_s23  ;;  %v5183_v21 = vld [vmem:[#allocation2 + $0x31] sm:$0xff]  ;;  %v1322_v28 = vstv %s5169_s5  ;;  %s5285_s5 = sld [smem:[#allocation3 + $0xa6]] }
 0x1bd   : > { %1218 = vrot.lane.b32.xlu0 %v1214_v27, %s4485_s8  ;;  %v5185_v26 = vld [vmem:[#allocation2 + $0x32] sm:$0xff]  ;;  %v1289_v35 = vmul.f32 %v1288_v7, %v5183_v21 }
 0x1be   : > { %v895_v32 = vpop.permute.xlu2 %894 }
 0x1bf   : > { %v859_v33 = vpop.permute.xlu0 %858  ;;  %v845_v34 = vpop.permute.xlu1 %844 }
 0x1c0   : > { %v850_v36 = vadd.f32 %v845_v34, %v4913_v50  ;;  %v851_v50 = vadd.f32 %v847_v25, %v4924_v57  ;;  %v901_v25 = vstv %s3949_s11  ;;  %s5268_s11 = sld [smem:[#allocation3 + $0xa4]] }
 0x1c1   : > { %v903_v62 = vmul.f32 %v901_v25, %v4928_v61  ;;  %v902_v3 = vmul.f32 %v901_v25, %v4907_v45 }
 0x1c2   : > { %v864_v38 = vadd.f32 %v859_v33, %v850_v36  ;;  %v1323_v36 = vmul.f32 %v1322_v28, %v5185_v26 }
 0x1c4   : > { %1200 = vrot.lane.b32.xlu2 %v1195_v20, %s4484_s23  ;;  %v870_v29 = vadd.f32 %v868_v41, %v864_v38  ;;  %1220 = vrot.lane.b32.xlu1 %v1215_v42, %s4485_s8  ;;  %v5204_v42 = vld [vmem:[#allocation2 + $0x3a] sm:$0xff] }
 0x1c5   : > { %1234 = vrot.lane.b32.xlu0 %v1229_v39, %s4484_s23  ;;  %v1324_v52 = vmul.f32 %v1322_v28, %v5204_v42  ;;  %v1350_v28 = vstv %s5230_s6  ;;  %s3976_s6 = sld [smem:[#allocation3 + $0xe7]] }
 0x1c6   : > { %v927_v46 = vpop.permute.xlu2 %926  ;;  %v884_v59 = vadd.f32 %v879_v31, %v870_v29  ;;  %v1290_v31 = vmul.f32 %v1288_v7, %v5167_v1 }
 0x1c7   : > { %v881_v30 = vpop.permute.xlu0 %880  ;;  %v861_v40 = vpop.permute.xlu1 %860 }
 0x1c8   : > { %v865_v49 = vadd.f32 %v861_v40, %v851_v50  ;;  %v969_v50 = vstv %s5188_s0  ;;  %s5296_s0 = sld [smem:[#allocation3 + $0xa9]] }
 0x1c9   : > { %v971_v25 = vmul.f32 %v969_v50, %v4885_v23 }
 0x1ca   : > { %v871_v53 = vadd.f32 %v869_v24, %v865_v49  ;;  %v970_v49 = vmul.f32 %v969_v50, %v4905_v44 }
 0x1cc   : > { %v885_v57 = vadd.f32 %v881_v30, %v871_v53  ;;  %1232 = vrot.lane.b32.xlu2 %v1228_v54, %s4484_s23  ;;  %1259 = vrot.lane.b32.xlu1 %v1255_v55, %s4485_s8  ;;  %v1336_v30 = vstv %s5193_s1  ;;  %s5299_s1 = sld [smem:[#allocation3 + $0xa7]] }
 0x1cd   : > { %1273 = vrot.lane.b32.xlu0 %v1269_v43, %s4484_s23  ;;  %v1338_v24 = vmul.f32 %v1336_v30, %v5204_v42 }
 0x1ce   : > { %v5162_v56 = vpop.permute.xlu2 %948  ;;  %v899_v51 = vadd.f32 %v895_v32, %v885_v57  ;;  %v1302_v32 = vstv %s5172_s7  ;;  %v1370_v57 = vstv %s5207_s20  ;;  %s5290_s7 = sld [smem:[#allocation3 + $0xa2]] }
 0x1cf   : > { %v913_v58 = vpop.permute.xlu0 %912  ;;  %v893_v2 = vpop.permute.xlu1 %892  ;;  %v1303_v38 = vmul.f32 %v1302_v32, %v5183_v21  ;;  %v1304_v48 = vmul.f32 %v1302_v32, %v5167_v1  ;;  %s5311_s20 = sld [smem:[#allocation3 + $0xe4]] }
 0x1d0   : > { %v898_v6 = vadd.f32 %v893_v2, %v884_v59  ;;  %v905_v0 = vadd.f32 %v903_v62, %v899_v51  ;;  %v1356_v59 = vstv %s5210_s10  ;;  %v1337_v62 = vmul.f32 %v1336_v30, %v5185_v26  ;;  %s5316_s10 = sld [smem:[#allocation3 + $0xaa]] }
 0x1d1   : > { %v1371_v2 = vmul.f32 %v1370_v57, %v5147_v47 }
 0x1d2   : > { %v904_v37 = vadd.f32 %v902_v3, %v898_v6  ;;  %v1357_v3 = vmul.f32 %v1356_v59, %v5147_v47 }
 0x1d4   : > { %v918_v12 = vadd.f32 %v913_v58, %v904_v37  ;;  %1261 = vrot.lane.b32.xlu2 %v1256_v8, %s4485_s8  ;;  %1275 = vrot.lane.b32.xlu1 %v1270_v9, %s4484_s23 }
 0x1d5   : > { %1295 = vrot.lane.b32.xlu0 %v1290_v31, %s4485_s8 }
 0x1d6   : > { %v981_v13 = vpop.permute.xlu2 %980  ;;  %v932_v17 = vadd.f32 %v927_v46, %v918_v12 }
 0x1d7   : > { %v929_v14 = vpop.permute.xlu0 %928  ;;  %v915_v27 = vpop.permute.xlu1 %914 }
 0x1d8   : > { %v919_v4 = vadd.f32 %v915_v27, %v905_v0  ;;  %v5191_v33 = vadd.f32 %v1249_v15, %v932_v17  ;;  %v1358_v17 = vmul.f32 %v1356_v59, %v5165_v63  ;;  %v1372_v27 = vmul.f32 %v1370_v57, %v5165_v63 }
 0x1da   : > { %v933_v34 = vadd.f32 %v929_v14, %v919_v4  ;;  %v1390_v14 = vstv %s5225_s14  ;;  %s5331_s14 = sld [smem:[#allocation3 + $0xeb]] }
 0x1dc   : > { %1293 = vrot.lane.b32.xlu2 %v1289_v35, %s4485_s8  ;;  %v5201_v20 = vadd.f32 %v1250_v22, %v933_v34  ;;  %1307 = vrot.lane.b32.xlu1 %v1303_v38, %s4484_s23  ;;  %v1424_v38 = vstv %s5236_s25  ;;  %s5343_s25 = sld [smem:[#allocation3 + $0xee]] }
 0x1dd   : > { %1327 = vrot.lane.b32.xlu0 %v1323_v36, %s4485_s8  ;;  %v1351_v36 = vmul.f32 %v1350_v28, %v5147_v47  ;;  %v1425_v30 = vmul.f32 %v1424_v38, %v5185_v26  ;;  %v1426_v59 = vmul.f32 %v1424_v38, %v5204_v42 }
 0x1de   : > { %v997_v39 = vpop.permute.xlu2 %996 }
 0x1df   : > { %v961_v41 = vpop.permute.xlu0 %960  ;;  %v947_v29 = vpop.permute.xlu1 %946 }
 0x1e0   : > { %v952_v46 = vadd.f32 %v947_v29, %v4985_v60  ;;  %v953_v60 = vadd.f32 %v5162_v56, %v4996_v5  ;;  %v1003_v56 = vstv %s3958_s12  ;;  %s5328_s12 = sld [smem:[#allocation3 + $0xec]] }
 0x1e1   : > { %v1005_v8 = vmul.f32 %v1003_v56, %v4928_v61  ;;  %v1004_v9 = vmul.f32 %v1003_v56, %v4907_v45 }
 0x1e2   : > { %v966_v40 = vadd.f32 %v961_v41, %v952_v46  ;;  %v1404_v41 = vstv %s5239_s26  ;;  %v1391_v46 = vmul.f32 %v1390_v14, %v5183_v21  ;;  %s5351_s26 = sld [smem:[#allocation3 + $0xf1]] }
 0x1e3   : > { %v1406_v57 = vmul.f32 %v1404_v41, %v5167_v1 }
 0x1e4   : > { %1309 = vrot.lane.b32.xlu2 %v1304_v48, %s4484_s23  ;;  %v972_v53 = vadd.f32 %v970_v49, %v966_v40  ;;  %1329 = vrot.lane.b32.xlu1 %v1324_v52, %s4485_s8  ;;  %v1352_v40 = vmul.f32 %v1350_v28, %v5165_v63  ;;  %v1405_v48 = vmul.f32 %v1404_v41, %v5183_v21  ;;  %v1492_v28 = vstv %s5285_s5  ;;  %s5382_s5 = sld [smem:[#allocation3 + $0x1c]] }
 0x1e5   : > { %1343 = vrot.lane.b32.xlu0 %v1338_v24, %s4484_s23 }
 0x1e6   : > { %v1029_v54 = vpop.permute.xlu2 %1028  ;;  %v986_v7 = vadd.f32 %v981_v13, %v972_v53  ;;  %v1392_v13 = vmul.f32 %v1390_v14, %v5167_v1 }
 0x1e7   : > { %v983_v43 = vpop.permute.xlu0 %982  ;;  %v963_v55 = vpop.permute.xlu1 %962 }
 0x1e8   : > { %v967_v58 = vadd.f32 %v963_v55, %v953_v60  ;;  %v1071_v60 = vstv %s5251_s9  ;;  %s5353_s9 = sld [smem:[#allocation3 + $0xef]] }
 0x1e9   : > { %v1073_v56 = vmul.f32 %v1071_v60, %v4885_v23  ;;  %v1105_v23 = vstv %s3967_s30  ;;  %s5376_s30 = sld [smem:[#allocation3 + $0x1d]] }
 0x1ea   : > { %v973_v51 = vadd.f32 %v971_v25, %v967_v58  ;;  %v1072_v58 = vmul.f32 %v1071_v60, %v4905_v44  ;;  %v1458_v44 = vstv %s5271_s22  ;;  %v1107_v14 = vmul.f32 %v1105_v23, %v4928_v61  ;;  %s5366_s22 = sld [smem:[#allocation3 + $0xf2]] }
 0x1eb   : > { %v1452_v61 = vstv %s5290_s7  ;;  %s3985_s7 = sld [smem:[#allocation3 + $0x18]] }
 0x1ec   : > { %v987_v5 = vadd.f32 %v983_v43, %v973_v51  ;;  %1341 = vrot.lane.b32.xlu2 %v1337_v62, %s4484_s23  ;;  %1361 = vrot.lane.b32.xlu1 %v1357_v3, %s4485_s8  ;;  %v1438_v43 = vstv %s5256_s13  ;;  %s4006_s13 = sld [smem:[#allocation3 + $0xea]] }
 0x1ed   : > { %1375 = vrot.lane.b32.xlu0 %v1371_v2, %s4484_s23  ;;  %v1440_v25 = vmul.f32 %v1438_v43, %v5204_v42 }
 0x1ee   : > { %v1051_v6 = vpop.permute.xlu2 %1050  ;;  %v1001_v37 = vadd.f32 %v997_v39, %v987_v5  ;;  %v1472_v5 = vstv %s5268_s11  ;;  %s5363_s11 = sld [smem:[#allocation3 + $0x15]] }
 0x1ef   : > { %v1015_v0 = vpop.permute.xlu0 %1014  ;;  %v995_v31 = vpop.permute.xlu1 %994 }
 0x1f0   : > { %v1000_v11 = vadd.f32 %v995_v31, %v986_v7  ;;  %v1007_v12 = vadd.f32 %v1005_v8, %v1001_v37  ;;  %v1439_v37 = vmul.f32 %v1438_v43, %v5185_v26  ;;  %v1473_v8 = vmul.f32 %v1472_v5, %v5147_v47 }
 0x1f1   : > { %v1459_v31 = vmul.f32 %v1458_v44, %v5147_v47 }
 0x1f2   : > { %v1006_v15 = vadd.f32 %v1004_v9, %v1000_v11 }
 0x1f4   : > { %v1020_v4 = vadd.f32 %v1015_v0, %v1006_v15  ;;  %1363 = vrot.lane.b32.xlu2 %v1358_v17, %s4485_s8  ;;  %1377 = vrot.lane.b32.xlu1 %v1372_v27, %s4484_s23  ;;  %v1106_v17 = vmul.f32 %v1105_v23, %v4907_v45  ;;  %v1560_v23 = vstv %s5331_s14  ;;  %s5441_s14 = sld [smem:[#allocation3 + $0x23]] }
 0x1f5   : > { %1397 = vrot.lane.b32.xlu0 %v1392_v13, %s4485_s8 }
 0x1f6   : > { %v1083_v32 = vpop.permute.xlu2 %1082  ;;  %v1034_v35 = vadd.f32 %v1029_v54, %v1020_v4 }
 0x1f7   : > { %v1031_v34 = vpop.permute.xlu0 %1030  ;;  %v1017_v22 = vpop.permute.xlu1 %1016 }
 0x1f8   : > { %v1021_v39 = vadd.f32 %v1017_v22, %v1007_v12  ;;  %v5254_v29 = vadd.f32 %v1351_v36, %v1034_v35  ;;  %v1474_v35 = vmul.f32 %v1472_v5, %v5165_v63 }
 0x1fa   : > { %v1035_v50 = vadd.f32 %v1031_v34, %v1021_v39  ;;  %v1460_v34 = vmul.f32 %v1458_v44, %v5165_v63  ;;  %v1453_v39 = vmul.f32 %v1452_v61, %v5147_v47 }
 0x1fc   : > { %1395 = vrot.lane.b32.xlu2 %v1391_v46, %s4485_s8  ;;  %v5264_v24 = vadd.f32 %v1352_v40, %v1035_v50  ;;  %1409 = vrot.lane.b32.xlu1 %v1405_v48, %s4484_s23  ;;  %v1526_v50 = vstv %s5296_s0  ;;  %s5402_s0 = sld [smem:[#allocation3 + $0x1f]] }
 0x1fd   : > { %1429 = vrot.lane.b32.xlu0 %v1425_v30, %s4485_s8  ;;  %v1506_v30 = vstv %s5299_s1  ;;  %v1528_v5 = vmul.f32 %v1526_v50, %v5204_v42  ;;  %s5417_s1 = sld [smem:[#allocation3 + $0x22]] }
 0x1fe   : > { %v1099_v49 = vpop.permute.xlu2 %1098  ;;  %v1507_v60 = vmul.f32 %v1506_v30, %v5183_v21 }
 0x1ff   : > { %v1063_v52 = vpop.permute.xlu0 %1062  ;;  %v1049_v53 = vpop.permute.xlu1 %1048 }
 0x200   : > { %v1054_v54 = vadd.f32 %v1049_v53, %v5054_v10  ;;  %v1055_v10 = vadd.f32 %v1051_v6, %v5065_v18  ;;  %v1454_v53 = vmul.f32 %v1452_v61, %v5165_v63 }
 0x202   : > { %v1068_v55 = vadd.f32 %v1063_v52, %v1054_v54  ;;  %v1527_v52 = vmul.f32 %v1526_v50, %v5185_v26 }
 0x204   : > { %1411 = vrot.lane.b32.xlu2 %v1406_v57, %s4484_s23  ;;  %v1074_v51 = vadd.f32 %v1072_v58, %v1068_v55  ;;  %1431 = vrot.lane.b32.xlu1 %v1426_v59, %s4485_s8  ;;  %v1540_v59 = vstv %s5316_s10  ;;  %s5436_s10 = sld [smem:[#allocation3 + $0x5d]] }
 0x205   : > { %1445 = vrot.lane.b32.xlu0 %v1440_v25, %s4484_s23  ;;  %v1173_v25 = vstv %s5311_s20  ;;  %s5420_s20 = sld [smem:[#allocation3 + $0x20]] }
 0x206   : > { %v1131_v62 = vpop.permute.xlu2 %1130  ;;  %v1088_v11 = vadd.f32 %v1083_v32, %v1074_v51  ;;  %v1494_v32 = vmul.f32 %v1492_v28, %v5167_v1 }
 0x207   : > { %v1085_v2 = vpop.permute.xlu0 %1084  ;;  %v1065_v3 = vpop.permute.xlu1 %1064 }
 0x208   : > { %v1069_v0 = vadd.f32 %v1065_v3, %v1055_v10  ;;  %v1508_v10 = vmul.f32 %v1506_v30, %v5167_v1 }
 0x20a   : > { %v1075_v7 = vadd.f32 %v1073_v56, %v1069_v0 }
 0x20c   : > { %v1089_v18 = vadd.f32 %v1085_v2, %v1075_v7  ;;  %1443 = vrot.lane.b32.xlu2 %v1439_v37, %s4484_s23  ;;  %1463 = vrot.lane.b32.xlu1 %v1459_v31, %s4485_s8  ;;  %v4292_v2 = vld [vmem:[#allocation2 + $0x19] sm:$0xff]  ;;  %v1574_v37 = vstv %s5328_s12  ;;  %s5439_s12 = sld [smem:[#allocation3 + $0x1b]] }
 0x20d   : > { %1477 = vrot.lane.b32.xlu0 %v1473_v8, %s4484_s23  ;;  %v1174_v3 = vmul.f32 %v4292_v2, %v1173_v25  ;;  %v4293_v8 = vld [vmem:[#allocation2 + $0x21] sm:$0xff]  ;;  %v1282_v2 = vstv %s5363_s11  ;;  %s5493_s11 = sld [smem:[#allocation3 + $0x68]] }
 0x20e   : > { %v1153_v6 = vpop.permute.xlu2 %1152  ;;  %v1103_v12 = vadd.f32 %v1099_v49, %v1089_v18  ;;  %v1493_v49 = vmul.f32 %v1492_v28, %v5183_v21  ;;  %v1175_v31 = vmul.f32 %v4293_v8, %v1173_v25  ;;  %v4294_v28 = vld [vmem:[#allocation2 + $0x22] sm:$0xff] }
 0x20f   : > { %v1117_v9 = vpop.permute.xlu0 %1116  ;;  %v1097_v15 = vpop.permute.xlu1 %1096 }
 0x210   : > { %v1102_v13 = vadd.f32 %v1097_v15, %v1088_v11  ;;  %v1109_v27 = vadd.f32 %v1107_v14, %v1103_v12  ;;  %v1541_v11 = vmul.f32 %v1540_v59, %v5185_v26  ;;  %v1575_v12 = vmul.f32 %v1574_v37, %v5147_v47 }
 0x211   : > { %v1561_v14 = vmul.f32 %v1560_v23, %v5147_v47 }
 0x212   : > { %v1108_v4 = vadd.f32 %v1106_v17, %v1102_v13 }
 0x214   : > { %v1122_v36 = vadd.f32 %v1117_v9, %v1108_v4  ;;  %1465 = vrot.lane.b32.xlu2 %v1460_v34, %s4485_s8  ;;  %1479 = vrot.lane.b32.xlu1 %v1474_v35, %s4484_s23 }
 0x215   : > { %1499 = vrot.lane.b32.xlu0 %v1494_v32, %s4485_s8  ;;  %v4295_v32 = vld [vmem:[#allocation2 + $0x1a] sm:$0xff] }
 0x216   : > { %v1185_v45 = vpop.permute.xlu2 %1184  ;;  %v1136_v38 = vadd.f32 %v1131_v62, %v1122_v36  ;;  %v1542_v62 = vmul.f32 %v1540_v59, %v5204_v42 }
 0x217   : > { %v1133_v22 = vpop.permute.xlu0 %1132  ;;  %v1119_v41 = vpop.permute.xlu1 %1118 }
 0x218   : > { %v1123_v46 = vadd.f32 %v1119_v41, %v1109_v27  ;;  %v5314_v40 = vadd.f32 %v1453_v39, %v1136_v38  ;;  %v1562_v39 = vmul.f32 %v1560_v23, %v5165_v63  ;;  %v1576_v41 = vmul.f32 %v1574_v37, %v5165_v63  ;;  %v5397_v23 = vld [vmem:[#allocation2 + $0x48] sm:$0xff] }
 0x219   : > { %v1283_v37 = vmul.f32 %v1282_v2, %v5183_v21 }
 0x21a   : > { %v1137_v48 = vadd.f32 %v1133_v22, %v1123_v46  ;;  %v1594_v22 = vstv %s5343_s25  ;;  %s5455_s25 = sld [smem:[#allocation3 + $0x64]] }
 0x21c   : > { %1497 = vrot.lane.b32.xlu2 %v1493_v49, %s4485_s8  ;;  %v5324_v54 = vadd.f32 %v1454_v53, %v1137_v48  ;;  %1511 = vrot.lane.b32.xlu1 %v1507_v60, %s4484_s23  ;;  %v1628_v49 = vstv %s5351_s26  ;;  %v1595_v60 = vmul.f32 %v1594_v22, %v5183_v21  ;;  %s3994_s26 = sld [smem:[#allocation3 + $0x60]] }
 0x21d   : > { %1531 = vrot.lane.b32.xlu0 %v1527_v52, %s4485_s8  ;;  %v1608_v52 = vstv %s5353_s9  ;;  %s5480_s9 = sld [smem:[#allocation3 + $0x67]] }
 0x21e   : > { %v1201_v43 = vpop.permute.xlu2 %1200 }
 0x21f   : > { %v1165_v55 = vpop.permute.xlu0 %1164  ;;  %v1151_v57 = vpop.permute.xlu1 %1150 }
 0x220   : > { %v1156_v58 = vadd.f32 %v1151_v57, %v5119_v19  ;;  %v1157_v19 = vadd.f32 %v1153_v6, %v5129_v16  ;;  %v1207_v16 = vstv %s3976_s6  ;;  %v1609_v57 = vmul.f32 %v1608_v52, %v5183_v21  ;;  %s5452_s6 = sld [smem:[#allocation3 + $0x65]] }
 0x221   : > { %v1209_v4 = vmul.f32 %v4294_v28, %v1207_v16  ;;  %v1208_v35 = vmul.f32 %v4295_v32, %v1207_v16 }
 0x222   : > { %v1170_v51 = vadd.f32 %v1165_v55, %v1156_v58  ;;  %v1554_v55 = vstv %s4006_s13  ;;  %s5490_s13 = sld [smem:[#allocation3 + $0x6a]] }
 0x223   : > { %v1555_v59 = vmul.f32 %v1554_v55, %v5147_v47  ;;  %v1610_v47 = vmul.f32 %v1608_v52, %v5167_v1 }
 0x224   : > { %1513 = vrot.lane.b32.xlu2 %v1508_v10, %s4484_s23  ;;  %v1176_v56 = vadd.f32 %v1174_v3, %v1170_v51  ;;  %1533 = vrot.lane.b32.xlu1 %v1528_v5, %s4485_s8  ;;  %v1556_v3 = vmul.f32 %v1554_v55, %v5165_v63  ;;  %v1630_v63 = vmul.f32 %v1628_v49, %v5204_v42  ;;  %v1737_v55 = vstv %s5417_s1  ;;  %s4003_s1 = sld [smem:[#allocation3 + $0xa8]] }
 0x225   : > { %1547 = vrot.lane.b32.xlu0 %v1542_v62, %s4484_s23 }
 0x226   : > { %v1233_v0 = vpop.permute.xlu2 %1232  ;;  %v1190_v13 = vadd.f32 %v1185_v45, %v1176_v56  ;;  %v1596_v45 = vmul.f32 %v1594_v22, %v5167_v1 }
 0x227   : > { %v1187_v44 = vpop.permute.xlu0 %1186  ;;  %v1167_v7 = vpop.permute.xlu1 %1166 }
 0x228   : > { %v1171_v18 = vadd.f32 %v1167_v7, %v1157_v19  ;;  %v1642_v19 = vstv %s5366_s22  ;;  %s5503_s22 = sld [smem:[#allocation3 + $0xa5]] }
 0x229   : > { %v1644_v7 = vmul.f32 %v1642_v19, %v5204_v42 }
 0x22a   : > { %v1177_v9 = vadd.f32 %v1175_v31, %v1171_v18 }
 0x22c   : > { %v1191_v15 = vadd.f32 %v1187_v44, %v1177_v9  ;;  %1545 = vrot.lane.b32.xlu2 %v1541_v11, %s4484_s23  ;;  %1565 = vrot.lane.b32.xlu1 %v1561_v14, %s4485_s8  ;;  %v1683_v11 = vstv %s5376_s30  ;;  %s5506_s30 = sld [smem:[#allocation3 + $0x6b]] }
 0x22d   : > { %1579 = vrot.lane.b32.xlu0 %v1575_v12, %s4484_s23  ;;  %v1284_v12 = vmul.f32 %v1282_v2, %v5167_v1  ;;  %v5449_v2 = vld [vmem:[#allocation2 + $0x52] sm:$0xff] }
 0x22e   : > { %v1262_v6 = vpop.permute.xlu2 %1261  ;;  %v1205_v27 = vadd.f32 %v1201_v43, %v1191_v15  ;;  %v1629_v43 = vmul.f32 %v1628_v49, %v5185_v26  ;;  %v1669_v15 = vstv %s5382_s5  ;;  %s5510_s5 = sld [smem:[#allocation3 + $0x63]] }
 0x22f   : > { %v1219_v17 = vpop.permute.xlu0 %1218  ;;  %v1199_v34 = vpop.permute.xlu1 %1198  ;;  %v1266_v8 = vadd.f32 %v1262_v6, %v5201_v20  ;;  %v1670_v20 = vmul.f32 %v1669_v15, %v5397_v23 }
 0x230   : > { %v1204_v61 = vadd.f32 %v1199_v34, %v1190_v13  ;;  %v1211_v36 = vadd.f32 %v1209_v4, %v1205_v27  ;;  %v1684_v13 = vmul.f32 %v1683_v11, %v5397_v23  ;;  %v1316_v27 = vstv %s3985_s7  ;;  %s5517_s7 = sld [smem:[#allocation3 + $0xad]] }
 0x232   : > { %v1210_v38 = vadd.f32 %v1208_v35, %v1204_v61  ;;  %v1318_v35 = vmul.f32 %v1316_v27, %v5204_v42  ;;  %v5413_v61 = vld [vmem:[#allocation2 + $0x51] sm:$0xff] }
 0x234   : > { %1567 = vrot.lane.b32.xlu2 %v1562_v39, %s4485_s8  ;;  %1581 = vrot.lane.b32.xlu1 %v1576_v41, %s4484_s23  ;;  %v1224_v30 = vadd.f32 %v1219_v17, %v1210_v38  ;;  %v1643_v17 = vmul.f32 %v1642_v19, %v5185_v26  ;;  %v1317_v38 = vmul.f32 %v1316_v27, %v5185_v26  ;;  %v1703_v41 = vstv %s5402_s0  ;;  %s5520_s0 = sld [smem:[#allocation3 + $0xac]] }
 0x235   : > { %1601 = vrot.lane.b32.xlu0 %v1596_v45, %s4485_s8  ;;  %v1384_v19 = vstv %s5436_s10  ;;  %s5553_s10 = sld [smem:[#allocation3 + $0xb2]] }
 0x236   : > { %v1294_v50 = vpop.permute.xlu2 %1293  ;;  %v1238_v25 = vadd.f32 %v1233_v0, %v1224_v30  ;;  %v1705_v30 = vmul.f32 %v1703_v41, %v5413_v61  ;;  %v1386_v27 = vmul.f32 %v1384_v19, %v5167_v1 }
 0x237   : > { %v1235_v46 = vpop.permute.xlu0 %1234  ;;  %v1221_v48 = vpop.permute.xlu1 %1220 }
 0x238   : > { %v1225_v53 = vadd.f32 %v1221_v48, %v1211_v36  ;;  %v5379_v5 = vadd.f32 %v1555_v59, %v1238_v25  ;;  %v5415_v36 = vld [vmem:[#allocation2 + $0x50] sm:$0xff] }
 0x239   : > { %v1685_v48 = vmul.f32 %v1683_v11, %v5415_v36 }
 0x23a   : > { %v1239_v58 = vadd.f32 %v1235_v46, %v1225_v53  ;;  %v1671_v46 = vmul.f32 %v1669_v15, %v5415_v36  ;;  %v5431_v53 = vld [vmem:[#allocation2 + $0x49] sm:$0xff] }
 0x23b   : > { %v1704_v25 = vmul.f32 %v1703_v41, %v5431_v53 }
 0x23c   : > { %1599 = vrot.lane.b32.xlu2 %v1595_v60, %s4485_s8  ;;  %1613 = vrot.lane.b32.xlu1 %v1609_v57, %s4484_s23  ;;  %v5385_v0 = vadd.f32 %v1556_v3, %v1239_v58  ;;  %v5433_v60 = vld [vmem:[#allocation2 + $0x4a] sm:$0xff]  ;;  %v1717_v57 = vstv %s5420_s20  ;;  %s5542_s20 = sld [smem:[#allocation3 + $0xaf]] }
 0x23d   : > { %1633 = vrot.lane.b32.xlu0 %v1629_v43, %s4485_s8  ;;  %v1738_v58 = vmul.f32 %v1737_v55, %v5433_v60  ;;  %v1718_v59 = vmul.f32 %v1717_v57, %v5431_v53 }
 0x23e   : > { %v1310_v51 = vpop.permute.xlu2 %1309 }
 0x23f   : > { %v1274_v10 = vpop.permute.xlu0 %1273  ;;  %v1260_v62 = vpop.permute.xlu1 %1259 }
 0x240   : > { %v1265_v56 = vadd.f32 %v1260_v62, %v5191_v33 }
 0x242   : > { %v1279_v44 = vadd.f32 %v1274_v10, %v1265_v56 }
 0x244   : > { %1615 = vrot.lane.b32.xlu2 %v1610_v47, %s4484_s23  ;;  %v1285_v33 = vadd.f32 %v1283_v37, %v1279_v44  ;;  %1635 = vrot.lane.b32.xlu1 %v1630_v63, %s4485_s8  ;;  %v1663_v47 = vstv %s5439_s12  ;;  %v1751_v37 = vstv %s5441_s14  ;;  %s5556_s12 = sld [smem:[#allocation3 + $0xb0]] }
 0x245   : > { %1649 = vrot.lane.b32.xlu0 %v1644_v7, %s4484_s23  ;;  %v1719_v7 = vmul.f32 %v1717_v57, %v5413_v61  ;;  %v1664_v11 = vmul.f32 %v1663_v47, %v5397_v23  ;;  %s5566_s14 = sld [smem:[#allocation3 + $0xed]] }
 0x246   : > { %v5395_v31 = vpop.permute.xlu2 %1341  ;;  %v1299_v34 = vadd.f32 %v1294_v50, %v1285_v33 }
 0x247   : > { %v1296_v18 = vpop.permute.xlu0 %1295  ;;  %v1276_v9 = vpop.permute.xlu1 %1275 }
 0x248   : > { %v1280_v14 = vadd.f32 %v1276_v9, %v1266_v8  ;;  %v1753_v8 = vmul.f32 %v1751_v37, %v5449_v2  ;;  %v1739_v9 = vmul.f32 %v1737_v55, %v5449_v2  ;;  %v1805_v55 = vstv %s5480_s9  ;;  %s5587_s9 = sld [smem:[#allocation3 + $0xab]] }
 0x24a   : > { %v1286_v16 = vadd.f32 %v1284_v12, %v1280_v14  ;;  %v1665_v14 = vmul.f32 %v1663_v47, %v5415_v36 }
 0x24c   : > { %v1300_v6 = vadd.f32 %v1296_v18, %v1286_v16  ;;  %1647 = vrot.lane.b32.xlu2 %v1643_v17, %s4484_s23  ;;  %1674 = vrot.lane.b32.xlu1 %v1670_v20, %s4485_s8  ;;  %v1385_v18 = vmul.f32 %v1384_v19, %v5183_v21 }
 0x24d   : > { %1688 = vrot.lane.b32.xlu0 %v1684_v13, %s4484_s23 }
 0x24e   : > { %v5410_v28 = vpop.permute.xlu2 %1363  ;;  %v1314_v32 = vadd.f32 %v1310_v51, %v1300_v6  ;;  %v1785_v6 = vstv %s5452_s6  ;;  %s5569_s6 = sld [smem:[#allocation3 + $0xb3]] }
 0x24f   : > { %v1328_v4 = vpop.permute.xlu0 %1327  ;;  %v1308_v22 = vpop.permute.xlu1 %1307  ;;  %v1368_v16 = vadd.f32 %v5410_v28, %v5264_v24 }
 0x250   : > { %v1313_v39 = vadd.f32 %v1308_v22, %v1299_v34  ;;  %v1320_v45 = vadd.f32 %v1318_v35, %v1314_v32  ;;  %v1771_v34 = vstv %s5455_s25  ;;  %v1752_v35 = vmul.f32 %v1751_v37, %v5433_v60  ;;  %s5578_s25 = sld [smem:[#allocation3 + $0xf5]] }
 0x251   : > { %v1786_v22 = vmul.f32 %v1785_v6, %v5397_v23  ;;  %v1772_v24 = vmul.f32 %v1771_v34, %v5397_v23 }
 0x252   : > { %v1319_v50 = vadd.f32 %v1317_v38, %v1313_v39  ;;  %v1418_v38 = vstv %s3994_s26  ;;  %s5581_s26 = sld [smem:[#allocation3 + $0xf4]] }
 0x254   : > { %1676 = vrot.lane.b32.xlu2 %v1671_v46, %s4485_s8  ;;  %1690 = vrot.lane.b32.xlu1 %v1685_v48, %s4484_s23  ;;  %v1333_v3 = vadd.f32 %v1328_v4, %v1319_v50  ;;  %v1420_v46 = vmul.f32 %v1418_v38, %v5204_v42  ;;  %v1419_v48 = vmul.f32 %v1418_v38, %v5185_v26 }
 0x255   : > { %1710 = vrot.lane.b32.xlu0 %v1705_v30, %s4485_s8 }
 0x256   : > { %v5429_v49 = vpop.permute.xlu2 %1395  ;;  %v1347_v12 = vadd.f32 %v5395_v31, %v1333_v3  ;;  %v1819_v3 = vstv %s5493_s11  ;;  %s5600_s11 = sld [smem:[#allocation3 + $0xf7]] }
 0x257   : > { %v1344_v52 = vpop.permute.xlu0 %1343  ;;  %v1330_v43 = vpop.permute.xlu1 %1329 }
 0x258   : > { %v1334_v51 = vadd.f32 %v1330_v43, %v1320_v45  ;;  %v5469_v15 = vadd.f32 %v1664_v11, %v1347_v12  ;;  %v1853_v11 = vstv %s5506_s30  ;;  %s5622_s30 = sld [smem:[#allocation3 + $0xf8]] }
 0x25a   : > { %v1348_v63 = vadd.f32 %v1344_v52, %v1334_v51 }
 0x25c   : > { %1708 = vrot.lane.b32.xlu2 %v1704_v25, %s4485_s8  ;;  %1722 = vrot.lane.b32.xlu1 %v1718_v59, %s4484_s23  ;;  %v5475_v31 = vadd.f32 %v1665_v14, %v1348_v63  ;;  %v1773_v25 = vmul.f32 %v1771_v34, %v5415_v36 }
 0x25d   : > { %1742 = vrot.lane.b32.xlu0 %v1738_v58, %s4485_s8  ;;  %v1787_v58 = vmul.f32 %v1785_v6, %v5415_v36 }
 0x25e   : > { %v1412_v10 = vpop.permute.xlu2 %1411 }
 0x25f   : > { %v1376_v62 = vpop.permute.xlu0 %1375  ;;  %v1362_v56 = vpop.permute.xlu1 %1361 }
 0x260   : > { %v1367_v44 = vadd.f32 %v1362_v56, %v5254_v29  ;;  %v1806_v56 = vmul.f32 %v1805_v55, %v5431_v53 }
 0x262   : > { %v1381_v33 = vadd.f32 %v1376_v62, %v1367_v44  ;;  %v1839_v62 = vstv %s5490_s13  ;;  %v1820_v44 = vmul.f32 %v1819_v3, %v5431_v53  ;;  %s5593_s13 = sld [smem:[#allocation3 + $0xf0]] }
 0x263   : > { %v1840_v19 = vmul.f32 %v1839_v62, %v5433_v60 }
 0x264   : > { %1724 = vrot.lane.b32.xlu2 %v1719_v7, %s4484_s23  ;;  %v1387_v29 = vadd.f32 %v1385_v18, %v1381_v33  ;;  %1744 = vrot.lane.b32.xlu1 %v1739_v9, %s4485_s8  ;;  %v1486_v33 = vstv %s5503_s22  ;;  %v1821_v9 = vmul.f32 %v1819_v3, %v5413_v61  ;;  %s5615_s22 = sld [smem:[#allocation3 + $0xfa]] }
 0x265   : > { %1758 = vrot.lane.b32.xlu0 %v1753_v8, %s4484_s23  ;;  %v1487_v14 = vmul.f32 %v1486_v33, %v5183_v21 }
 0x266   : > { %v5473_v17 = vpop.permute.xlu2 %1443  ;;  %v1401_v41 = vadd.f32 %v5429_v49, %v1387_v29  ;;  %v1807_v49 = vmul.f32 %v1805_v55, %v5413_v61  ;;  %v1855_v29 = vmul.f32 %v1853_v11, %v5449_v2 }
 0x267   : > { %v1398_v13 = vpop.permute.xlu0 %1397  ;;  %v1378_v20 = vpop.permute.xlu1 %1377 }
 0x268   : > { %v1382_v4 = vadd.f32 %v1378_v20, %v1368_v16  ;;  %v1765_v16 = vstv %s5510_s5  ;;  %s5638_s5 = sld [smem:[#allocation3 + $0x1e]] }
 0x26a   : > { %v1388_v32 = vadd.f32 %v1386_v27, %v1382_v4  ;;  %v1766_v27 = vmul.f32 %v1765_v16, %v5397_v23 }
 0x26c   : > { %v1402_v28 = vadd.f32 %v1398_v13, %v1388_v32  ;;  %1756 = vrot.lane.b32.xlu2 %v1752_v35, %s4484_s23  ;;  %1776 = vrot.lane.b32.xlu1 %v1772_v24, %s4485_s8  ;;  %v1841_v13 = vmul.f32 %v1839_v62, %v5449_v2 }
 0x26d   : > { %1790 = vrot.lane.b32.xlu0 %v1786_v22, %s4484_s23  ;;  %v1887_v22 = vstv %s5517_s7  ;;  %s5641_s7 = sld [smem:[#allocation3 + $0xfb]] }
 0x26e   : > { %v1466_v39 = vpop.permute.xlu2 %1465  ;;  %v1416_v50 = vadd.f32 %v1412_v10, %v1402_v28  ;;  %v1488_v28 = vmul.f32 %v1486_v33, %v5167_v1  ;;  %v1520_v1 = vstv %s4003_s1  ;;  %s5653_s1 = sld [smem:[#allocation3 + $0x25]] }
 0x26f   : > { %v1430_v45 = vpop.permute.xlu0 %1429  ;;  %v1410_v30 = vpop.permute.xlu1 %1409  ;;  %v1470_v4 = vadd.f32 %v1466_v39, %v5324_v54  ;;  %v1854_v54 = vmul.f32 %v1853_v11, %v5433_v60  ;;  %v1888_v39 = vmul.f32 %v1887_v22, %v5397_v23  ;;  %v1588_v11 = vstv %s5566_s14  ;;  %s5696_s14 = sld [smem:[#allocation3 + $0x2b]] }
 0x270   : > { %v1415_v52 = vadd.f32 %v1410_v30, %v1401_v41  ;;  %v1422_v43 = vadd.f32 %v1420_v46, %v1416_v50 }
 0x272   : > { %v1421_v57 = vadd.f32 %v1419_v48, %v1415_v52 }
 0x274   : > { %1778 = vrot.lane.b32.xlu2 %v1773_v25, %s4485_s8  ;;  %1792 = vrot.lane.b32.xlu1 %v1787_v58, %s4484_s23  ;;  %v1435_v37 = vadd.f32 %v1430_v45, %v1421_v57  ;;  %v1873_v45 = vstv %s5520_s0  ;;  %v1522_v57 = vmul.f32 %v1520_v1, %v5204_v42  ;;  %s5650_s0 = sld [smem:[#allocation3 + $0x26]] }
 0x275   : > { %1812 = vrot.lane.b32.xlu0 %v1807_v49, %s4485_s8  ;;  %v1874_v46 = vmul.f32 %v1873_v45, %v5397_v23  ;;  %v1521_v49 = vmul.f32 %v1520_v1, %v5185_v26  ;;  %v1875_v3 = vmul.f32 %v1873_v45, %v5415_v36 }
 0x276   : > { %v1498_v59 = vpop.permute.xlu2 %1497  ;;  %v1449_v20 = vadd.f32 %v5473_v17, %v1435_v37  ;;  %v1767_v17 = vmul.f32 %v1765_v16, %v5415_v36 }
 0x277   : > { %v1446_v51 = vpop.permute.xlu0 %1445  ;;  %v1432_v10 = vpop.permute.xlu1 %1431 }
 0x278   : > { %v1436_v18 = vadd.f32 %v1432_v10, %v1422_v43  ;;  %v5538_v24 = vadd.f32 %v1766_v27, %v1449_v20  ;;  %v1907_v10 = vstv %s5542_s20  ;;  %v1589_v20 = vmul.f32 %v1588_v11, %v5183_v21  ;;  %s5663_s20 = sld [smem:[#allocation3 + $0x21]] }
 0x279   : > { %v1908_v37 = vmul.f32 %v1907_v10, %v5431_v53 }
 0x27a   : > { %v1450_v6 = vadd.f32 %v1446_v51, %v1436_v18 }
 0x27c   : > { %1810 = vrot.lane.b32.xlu2 %v1806_v56, %s4485_s8  ;;  %1824 = vrot.lane.b32.xlu1 %v1820_v44, %s4484_s23  ;;  %v5544_v41 = vadd.f32 %v1767_v17, %v1450_v6  ;;  %v1889_v56 = vmul.f32 %v1887_v22, %v5415_v36  ;;  %v4296_v22 = vld [vmem:[#allocation2 + $0x39] sm:$0xff] }
 0x27d   : > { %1844 = vrot.lane.b32.xlu0 %v1840_v19, %s4485_s8  ;;  %v1590_v17 = vmul.f32 %v4296_v22, %v1588_v11 }
 0x27e   : > { %v1514_v47 = vpop.permute.xlu2 %1513 }
 0x27f   : > { %v1478_v7 = vpop.permute.xlu0 %1477  ;;  %v1464_v63 = vpop.permute.xlu1 %1463 }
 0x280   : > { %v1469_v8 = vadd.f32 %v1464_v63, %v5314_v40 }
 0x282   : > { %v1483_v12 = vadd.f32 %v1478_v7, %v1469_v8  ;;  %v1921_v7 = vstv %s5556_s12  ;;  %s5677_s12 = sld [smem:[#allocation3 + $0xf3]] }
 0x283   : > { %v1922_v33 = vmul.f32 %v1921_v7, %v5431_v53  ;;  %v1923_v16 = vmul.f32 %v1921_v7, %v5413_v61 }
 0x284   : > { %1826 = vrot.lane.b32.xlu2 %v1821_v9, %s4484_s23  ;;  %v1489_v40 = vadd.f32 %v1487_v14, %v1483_v12  ;;  %1846 = vrot.lane.b32.xlu1 %v1841_v13, %s4485_s8 }
 0x285   : > { %1860 = vrot.lane.b32.xlu0 %v1855_v29, %s4484_s23  ;;  %v1955_v29 = vstv %s5569_s6  ;;  %s5702_s6 = sld [smem:[#allocation3 + $0x29]] }
 0x286   : > { %v5534_v34 = vpop.permute.xlu2 %1545  ;;  %v1503_v43 = vadd.f32 %v1498_v59, %v1489_v40  ;;  %v1909_v59 = vmul.f32 %v1907_v10, %v5413_v61  ;;  %v1957_v13 = vmul.f32 %v1955_v29, %v5449_v2 }
 0x287   : > { %v1500_v32 = vpop.permute.xlu0 %1499  ;;  %v1480_v35 = vpop.permute.xlu1 %1479 }
 0x288   : > { %v1484_v38 = vadd.f32 %v1480_v35, %v1470_v4  ;;  %v1989_v35 = vstv %s5578_s25  ;;  %s5718_s25 = sld [smem:[#allocation3 + $0x2c]] }
 0x289   : > { %v1991_v7 = vmul.f32 %v1989_v35, %v5415_v36 }
 0x28a   : > { %v1490_v50 = vadd.f32 %v1488_v28, %v1484_v38  ;;  %v1975_v38 = vstv %s5581_s26  ;;  %s5728_s26 = sld [smem:[#allocation3 + $0x66]] }
 0x28c   : > { %v1504_v30 = vadd.f32 %v1500_v32, %v1490_v50  ;;  %1858 = vrot.lane.b32.xlu2 %v1854_v54, %s4484_s23  ;;  %1878 = vrot.lane.b32.xlu1 %v1874_v46, %s4485_s8  ;;  %v1956_v54 = vmul.f32 %v1955_v29, %v5433_v60  ;;  %v1976_v46 = vmul.f32 %v1975_v38, %v5397_v23 }
 0x28d   : > { %1892 = vrot.lane.b32.xlu0 %v1888_v39, %s4484_s23  ;;  %v1990_v39 = vmul.f32 %v1989_v35, %v5397_v23 }
 0x28e   : > { %v1568_v48 = vpop.permute.xlu2 %1567  ;;  %v1518_v55 = vadd.f32 %v1514_v47, %v1504_v30  ;;  %v1941_v47 = vstv %s5553_s10  ;;  %s5671_s10 = sld [smem:[#allocation3 + $0x28]] }
 0x28f   : > { %v1532_v52 = vpop.permute.xlu0 %1531  ;;  %v1512_v25 = vpop.permute.xlu1 %1511  ;;  %v1942_v63 = vmul.f32 %v1941_v47, %v5433_v60  ;;  %v1943_v40 = vmul.f32 %v1941_v47, %v5449_v2  ;;  %v1572_v6 = vadd.f32 %v1568_v48, %v5385_v0  ;;  %v1867_v0 = vstv %s5587_s9  ;;  %s5745_s9 = sld [smem:[#allocation3 + $0x6e]] }
 0x290   : > { %v1517_v58 = vadd.f32 %v1512_v25, %v1503_v43  ;;  %v1524_v51 = vadd.f32 %v1522_v57, %v1518_v55  ;;  %v1868_v43 = vmul.f32 %v1867_v0, %v5397_v23 }
 0x292   : > { %v1523_v62 = vadd.f32 %v1521_v49, %v1517_v58 }
 0x294   : > { %1880 = vrot.lane.b32.xlu2 %v1875_v3, %s4485_s8  ;;  %1894 = vrot.lane.b32.xlu1 %v1889_v56, %s4484_s23  ;;  %v1537_v4 = vadd.f32 %v1532_v52, %v1523_v62  ;;  %v1622_v52 = vstv %s5593_s13  ;;  %v4297_v62 = vld [vmem:[#allocation2 + $0x32] sm:$0xff]  ;;  %s5748_s13 = sld [smem:[#allocation3 + $0x6d]] }
 0x295   : > { %1914 = vrot.lane.b32.xlu0 %v1909_v59, %s4485_s8  ;;  %v1624_v58 = vmul.f32 %v1622_v52, %v5204_v42  ;;  %v1623_v3 = vmul.f32 %v4297_v62, %v1622_v52 }
 0x296   : > { %v1600_v26 = vpop.permute.xlu2 %1599  ;;  %v1551_v30 = vadd.f32 %v5534_v34, %v1537_v4 }
 0x297   : > { %v1548_v19 = vpop.permute.xlu0 %1547  ;;  %v1534_v44 = vpop.permute.xlu1 %1533 }
 0x298   : > { %v1538_v45 = vadd.f32 %v1534_v44, %v1524_v51  ;;  %v1869_v51 = vmul.f32 %v1867_v0, %v5415_v36  ;;  %v5618_v10 = vadd.f32 %v1868_v43, %v1551_v30  ;;  %v1977_v44 = vmul.f32 %v1975_v38, %v5415_v36 }
 0x29a   : > { %v1552_v48 = vadd.f32 %v1548_v19, %v1538_v45  ;;  %v2097_v45 = vstv %s5650_s0  ;;  %s5799_s0 = sld [smem:[#allocation3 + $0x74]] }
 0x29c   : > { %1912 = vrot.lane.b32.xlu2 %v1908_v37, %s4485_s8  ;;  %1926 = vrot.lane.b32.xlu1 %v1922_v33, %s4484_s23  ;;  %v5625_v19 = vadd.f32 %v1869_v51, %v1552_v48  ;;  %v1731_v48 = vstv %s5663_s20  ;;  %s5824_s20 = sld [smem:[#allocation3 + $0xb6]] }
 0x29d   : > { %1946 = vrot.lane.b32.xlu0 %v1942_v63, %s4485_s8 }
 0x29e   : > { %v1616_v8 = vpop.permute.xlu2 %1615 }
 0x29f   : > { %v1580_v18 = vpop.permute.xlu0 %1579  ;;  %v1566_v9 = vpop.permute.xlu1 %1565 }
 0x2a0   : > { %v1571_v12 = vadd.f32 %v1566_v9, %v5379_v5 }
 0x2a2   : > { %v1585_v14 = vadd.f32 %v1580_v18, %v1571_v12  ;;  %v2023_v18 = vstv %s5622_s30  ;;  %s5775_s30 = sld [smem:[#allocation3 + $0x73]] }
 0x2a3   : > { %v2024_v12 = vmul.f32 %v2023_v18, %v5431_v53 }
 0x2a4   : > { %1928 = vrot.lane.b32.xlu2 %v1923_v16, %s4484_s23  ;;  %v1591_v5 = vadd.f32 %v1589_v20, %v1585_v14  ;;  %1948 = vrot.lane.b32.xlu1 %v1943_v40, %s4485_s8  ;;  %v2057_v40 = vstv %s5641_s7  ;;  %s5783_s7 = sld [smem:[#allocation3 + $0x71]] }
 0x2a5   : > { %1962 = vrot.lane.b32.xlu0 %v1957_v13, %s4484_s23  ;;  %v1697_v13 = vstv %s5638_s5  ;;  %s5778_s5 = sld [smem:[#allocation3 + $0x24]] }
 0x2a6   : > { %v5596_v27 = vpop.permute.xlu2 %1647  ;;  %v1605_v25 = vadd.f32 %v1600_v26, %v1591_v5  ;;  %v2009_v26 = vstv %s5600_s11  ;;  %v1698_v4 = vmul.f32 %v1697_v13, %v5431_v53  ;;  %s4030_s11 = sld [smem:[#allocation3 + $0x69]] }
 0x2a7   : > { %v1602_v21 = vpop.permute.xlu0 %1601  ;;  %v1582_v32 = vpop.permute.xlu1 %1581  ;;  %v2011_v47 = vmul.f32 %v2009_v26, %v5413_v61  ;;  %v2010_v9 = vmul.f32 %v2009_v26, %v5431_v53  ;;  %v1732_v26 = vmul.f32 %v1731_v48, %v5433_v60 }
 0x2a8   : > { %v1586_v28 = vadd.f32 %v1582_v32, %v1572_v6  ;;  %v2025_v6 = vmul.f32 %v2023_v18, %v5413_v61 }
 0x2aa   : > { %v1592_v50 = vadd.f32 %v1590_v17, %v1586_v28  ;;  %v5668_v28 = vld [vmem:[#allocation2 + $0x60] sm:$0xff] }
 0x2ab   : > { %v2098_v30 = vmul.f32 %v2097_v45, %v5668_v28 }
 0x2ac   : > { %v1606_v1 = vadd.f32 %v1602_v21, %v1592_v50  ;;  %1960 = vrot.lane.b32.xlu2 %v1956_v54, %s4484_s23  ;;  %1980 = vrot.lane.b32.xlu1 %v1976_v46, %s4485_s8  ;;  %v2059_v21 = vmul.f32 %v2057_v40, %v5449_v2  ;;  %v1699_v50 = vmul.f32 %v1697_v13, %v5413_v61 }
 0x2ad   : > { %1994 = vrot.lane.b32.xlu0 %v1990_v39, %s4484_s23  ;;  %v2083_v39 = vstv %s5653_s1  ;;  %v2058_v46 = vmul.f32 %v2057_v40, %v5433_v60  ;;  %s5804_s1 = sld [smem:[#allocation3 + $0xae]] }
 0x2ae   : > { %v1677_v55 = vpop.permute.xlu2 %1676  ;;  %v1620_v49 = vadd.f32 %v1616_v8, %v1606_v1  ;;  %v2043_v8 = vstv %s5615_s22  ;;  %s5762_s22 = sld [smem:[#allocation3 + $0x70]] }
 0x2af   : > { %v5612_v57 = vpop.permute.xlu0 %1633  ;;  %v1614_v34 = vpop.permute.xlu1 %1613  ;;  %v2044_v11 = vmul.f32 %v2043_v8, %v5433_v60  ;;  %v2045_v32 = vmul.f32 %v2043_v8, %v5449_v2 }
 0x2b0   : > { %v1619_v59 = vadd.f32 %v1614_v34, %v1605_v25  ;;  %v5620_v56 = vadd.f32 %v1624_v58, %v1620_v49  ;;  %v1733_v49 = vmul.f32 %v1731_v48, %v5449_v2  ;;  %v5689_v58 = vld [vmem:[#allocation2 + $0x68] sm:$0xff] }
 0x2b1   : > { %v5691_v34 = vld [vmem:[#allocation2 + $0x69] sm:$0xff] }
 0x2b2   : > { %v5627_v42 = vadd.f32 %v1623_v3, %v1619_v59  ;;  %v2117_v3 = vstv %s5671_s10  ;;  %s5827_s10 = sld [smem:[#allocation3 + $0xb5]] }
 0x2b3   : > { %v2119_v8 = vmul.f32 %v2117_v3, %v5691_v34 }
 0x2b4   : > { %1982 = vrot.lane.b32.xlu2 %v1977_v44, %s4485_s8  ;;  %1996 = vrot.lane.b32.xlu1 %v1991_v7, %s4484_s23  ;;  %v1639_v51 = vadd.f32 %v5612_v57, %v5627_v42  ;;  %v1969_v57 = vstv %s5677_s12  ;;  %v2099_v42 = vmul.f32 %v2097_v45, %v5689_v58  ;;  %s4039_s12 = sld [smem:[#allocation3 + $0xb1]] }
 0x2b5   : > { %2016 = vrot.lane.b32.xlu0 %v2011_v47, %s4485_s8 }
 0x2b6   : > { %v1709_v37 = vpop.permute.xlu2 %1708  ;;  %v1653_v18 = vadd.f32 %v5596_v27, %v1639_v51  ;;  %v5723_v27 = vld [vmem:[#allocation2 + $0x62] sm:$0xff] }
 0x2b7   : > { %v5635_v63 = vpop.permute.xlu0 %1649  ;;  %v1636_v33 = vpop.permute.xlu1 %1635 }
 0x2b8   : > { %v1640_v59 = vadd.f32 %v1636_v33, %v5620_v56  ;;  %v1970_v33 = vmul.f32 %v1969_v57, %v5397_v23  ;;  %v2131_v23 = vstv %s5702_s6  ;;  %s5854_s6 = sld [smem:[#allocation3 + $0xbb]] }
 0x2ba   : > { %v1654_v56 = vadd.f32 %v5635_v63, %v1640_v59 }
 0x2bc   : > { %2014 = vrot.lane.b32.xlu2 %v2010_v9, %s4485_s8  ;;  %2028 = vrot.lane.b32.xlu1 %v2024_v12, %s4484_s23  ;;  %v1971_v12 = vmul.f32 %v1969_v57, %v5415_v36  ;;  %v2219_v57 = vstv %s5762_s22  ;;  %s5900_s22 = sld [smem:[#allocation3 + $0xfd]] }
 0x2bd   : > { %2048 = vrot.lane.b32.xlu0 %v2044_v11, %s4485_s8 }
 0x2be   : > { %v1725_v29 = vpop.permute.xlu2 %1724  ;;  %v5733_v13 = vadd.f32 %v1971_v12, %v1654_v56  ;;  %v2221_v12 = vmul.f32 %v2219_v57, %v5691_v34 }
 0x2bf   : > { %v1689_v14 = vpop.permute.xlu0 %1688  ;;  %v1675_v16 = vpop.permute.xlu1 %1674 }
 0x2c0   : > { %v1680_v20 = vadd.f32 %v1675_v16, %v5469_v15  ;;  %v1681_v15 = vadd.f32 %v1677_v55, %v5475_v31  ;;  %v2084_v31 = vmul.f32 %v2083_v39, %v5668_v28  ;;  %v5730_v16 = vadd.f32 %v1970_v33, %v1653_v18 }
 0x2c2   : > { %v1694_v5 = vadd.f32 %v1689_v14, %v1680_v20  ;;  %v2151_v14 = vstv %s5696_s14  ;;  %s5840_s14 = sld [smem:[#allocation3 + $0xb8]] }
 0x2c3   : > { %v2152_v36 = vmul.f32 %v2151_v14, %v5723_v27 }
 0x2c4   : > { %2030 = vrot.lane.b32.xlu2 %v2025_v6, %s4484_s23  ;;  %v1700_v35 = vadd.f32 %v1698_v4, %v1694_v5  ;;  %2050 = vrot.lane.b32.xlu1 %v2045_v32, %s4485_s8  ;;  %v2165_v32 = vstv %s5718_s25  ;;  %s5859_s25 = sld [smem:[#allocation3 + $0xb9]] }
 0x2c5   : > { %2064 = vrot.lane.b32.xlu0 %v2059_v21, %s4484_s23  ;;  %v5741_v21 = vld [vmem:[#allocation2 + $0x6a] sm:$0xff] }
 0x2c6   : > { %v5666_v22 = vpop.permute.xlu2 %1756  ;;  %v1714_v55 = vadd.f32 %v1709_v37, %v1700_v35  ;;  %v2085_v37 = vmul.f32 %v2083_v39, %v5689_v58  ;;  %v1799_v35 = vstv %s5728_s26  ;;  %v2167_v45 = vmul.f32 %v2165_v32, %v5741_v21  ;;  %s4060_s26 = sld [smem:[#allocation3 + $0x6c]] }
 0x2c7   : > { %v1711_v17 = vpop.permute.xlu0 %1710  ;;  %v1691_v38 = vpop.permute.xlu1 %1690 }
 0x2c8   : > { %v1695_v54 = vadd.f32 %v1691_v38, %v1681_v15  ;;  %v2133_v38 = vmul.f32 %v2131_v23, %v5691_v34 }
 0x2ca   : > { %v1701_v0 = vadd.f32 %v1699_v50, %v1695_v54  ;;  %v1800_v50 = vmul.f32 %v1799_v35, %v5431_v53  ;;  %v2153_v54 = vmul.f32 %v2151_v14, %v5741_v21 }
 0x2cc   : > { %v1715_v1 = vadd.f32 %v1711_v17, %v1701_v0  ;;  %2062 = vrot.lane.b32.xlu2 %v2058_v46, %s4484_s23  ;;  %2088 = vrot.lane.b32.xlu1 %v2084_v31, %s4485_s8  ;;  %v2199_v31 = vstv %s5745_s9  ;;  %s5871_s9 = sld [smem:[#allocation3 + $0xbc]] }
 0x2cd   : > { %2102 = vrot.lane.b32.xlu0 %v2098_v30, %s4484_s23  ;;  %v2200_v51 = vmul.f32 %v2199_v31, %v5668_v28  ;;  %v2201_v14 = vmul.f32 %v2199_v31, %v5689_v58 }
 0x2ce   : > { %v5684_v52 = vpop.permute.xlu2 %1778  ;;  %v1729_v25 = vadd.f32 %v1725_v29, %v1715_v1  ;;  %v5721_v29 = vld [vmem:[#allocation2 + $0x61] sm:$0xff]  ;;  %v1801_v1 = vmul.f32 %v1799_v35, %v5413_v61 }
 0x2cf   : > { %v5686_v43 = vpop.permute.xlu0 %1742  ;;  %v1723_v62 = vpop.permute.xlu1 %1722  ;;  %v2118_v20 = vmul.f32 %v2117_v3, %v5721_v29  ;;  %v2132_v40 = vmul.f32 %v2131_v23, %v5721_v29  ;;  %v2220_v35 = vmul.f32 %v2219_v57, %v5721_v29 }
 0x2d0   : > { %v1728_v44 = vadd.f32 %v1723_v62, %v1714_v55  ;;  %v5700_v47 = vadd.f32 %v1733_v49, %v1729_v25  ;;  %v2185_v55 = vstv %s5748_s13  ;;  %v2166_v49 = vmul.f32 %v2165_v32, %v5723_v27  ;;  %s5878_s13 = sld [smem:[#allocation3 + $0xf6]] }
 0x2d1   : > { %v2186_v62 = vmul.f32 %v2185_v55, %v5668_v28  ;;  %v2233_v32 = vstv %s5783_s7  ;;  %s5928_s7 = sld [smem:[#allocation3 + $0x103]] }
 0x2d2   : > { %v5704_v7 = vadd.f32 %v1732_v26, %v1728_v44 }
 0x2d4   : > { %2090 = vrot.lane.b32.xlu2 %v2085_v37, %s4485_s8  ;;  %2104 = vrot.lane.b32.xlu1 %v2099_v42, %s4484_s23  ;;  %v1748_v23 = vadd.f32 %v5686_v43, %v5704_v7 }
 0x2d5   : > { %2124 = vrot.lane.b32.xlu0 %v2119_v8, %s4485_s8 }
 0x2d6   : > { %v1811_v9 = vpop.permute.xlu2 %1810 }
 0x2d7   : > { %v5716_v11 = vpop.permute.xlu0 %1758  ;;  %v5725_v63 = vpop.permute.xlu1 %1744 }
 0x2dc   : > { %2122 = vrot.lane.b32.xlu2 %v2118_v20, %s4485_s8  ;;  %2136 = vrot.lane.b32.xlu1 %v2132_v40, %s4484_s23  ;;  %v1749_v20 = vadd.f32 %v5725_v63, %v5700_v47  ;;  %v1762_v63 = vadd.f32 %v5666_v22, %v1748_v23  ;;  %v2321_v23 = vstv %s5840_s14  ;;  %s5969_s14 = sld [smem:[#allocation3 + $0x2e]] }
 0x2dd   : > { %2156 = vrot.lane.b32.xlu0 %v2152_v36, %s4485_s8 }
 0x2de   : > { %v1827_v5 = vpop.permute.xlu2 %1826  ;;  %v1763_v43 = vadd.f32 %v5716_v11, %v1749_v20 }
 0x2df   : > { %v1791_v6 = vpop.permute.xlu0 %1790  ;;  %v1777_v4 = vpop.permute.xlu1 %1776 }
 0x2e0   : > { %v1782_v15 = vadd.f32 %v1777_v4, %v5538_v24  ;;  %v1783_v24 = vadd.f32 %v5684_v52, %v5544_v41  ;;  %v1833_v52 = vstv %s4030_s11  ;;  %v2077_v4 = vstv %s5778_s5  ;;  %s5895_s11 = sld [smem:[#allocation3 + $0xfe]] }
 0x2e1   : > { %v1835_v37 = vmul.f32 %v1833_v52, %v5449_v2  ;;  %v1834_v42 = vmul.f32 %v1833_v52, %v5433_v60  ;;  %v2078_v7 = vmul.f32 %v2077_v4, %v5668_v28  ;;  %s5915_s5 = sld [smem:[#allocation3 + $0x100]] }
 0x2e2   : > { %v1796_v17 = vadd.f32 %v1791_v6, %v1782_v15  ;;  %v2253_v6 = vstv %s5775_s30  ;;  %v2234_v15 = vmul.f32 %v2233_v32, %v5721_v29  ;;  %s4048_s30 = sld [smem:[#allocation3 + $0xf9]] }
 0x2e3   : > { %v2254_v47 = vmul.f32 %v2253_v6, %v5723_v27 }
 0x2e4   : > { %2138 = vrot.lane.b32.xlu2 %v2133_v38, %s4484_s23  ;;  %v1802_v39 = vadd.f32 %v1800_v50, %v1796_v17  ;;  %2158 = vrot.lane.b32.xlu1 %v2153_v54, %s4485_s8  ;;  %v2079_v17 = vmul.f32 %v2077_v4, %v5689_v58  ;;  %v5817_v38 = vadd.f32 %v2078_v7, %v1762_v63 }
 0x2e5   : > { %2172 = vrot.lane.b32.xlu0 %v2167_v45, %s4484_s23 }
 0x2e6   : > { %v5759_v0 = vpop.permute.xlu2 %1858  ;;  %v1816_v26 = vadd.f32 %v1811_v9, %v1802_v39  ;;  %v2187_v9 = vmul.f32 %v2185_v55, %v5689_v58  ;;  %v5820_v50 = vadd.f32 %v2079_v17, %v1763_v43  ;;  %v2267_v39 = vstv %s5799_s0  ;;  %s5932_s0 = sld [smem:[#allocation3 + $0x101]] }
 0x2e7   : > { %v1813_v46 = vpop.permute.xlu0 %1812  ;;  %v1793_v30 = vpop.permute.xlu1 %1792  ;;  %v2269_v31 = vmul.f32 %v2267_v39, %v5741_v21 }
 0x2e8   : > { %v1797_v48 = vadd.f32 %v1793_v30, %v1783_v24  ;;  %v1901_v24 = vstv %s5804_s1  ;;  %v2235_v30 = vmul.f32 %v2233_v32, %v5691_v34  ;;  %s5944_s1 = sld [smem:[#allocation3 + $0x104]] }
 0x2ea   : > { %v1803_v25 = vadd.f32 %v1801_v1, %v1797_v48  ;;  %v1902_v1 = vmul.f32 %v1901_v24, %v5431_v53  ;;  %v2255_v48 = vmul.f32 %v2253_v6, %v5741_v21 }
 0x2ec   : > { %v1817_v41 = vadd.f32 %v1813_v46, %v1803_v25  ;;  %2170 = vrot.lane.b32.xlu2 %v2166_v49, %s4484_s23  ;;  %2190 = vrot.lane.b32.xlu1 %v2186_v62, %s4485_s8  ;;  %v2301_v62 = vstv %s5824_s20  ;;  %s5949_s20 = sld [smem:[#allocation3 + $0x27]] }
 0x2ed   : > { %2204 = vrot.lane.b32.xlu0 %v2200_v51, %s4484_s23  ;;  %v2303_v43 = vmul.f32 %v2301_v62, %v5689_v58 }
 0x2ee   : > { %v1881_v3 = vpop.permute.xlu2 %1880  ;;  %v1831_v44 = vadd.f32 %v1827_v5, %v1817_v41  ;;  %v1903_v41 = vmul.f32 %v1901_v24, %v5413_v61 }
 0x2ef   : > { %v5772_v59 = vpop.permute.xlu0 %1844  ;;  %v1825_v8 = vpop.permute.xlu1 %1824 }
 0x2f0   : > { %v1830_v18 = vadd.f32 %v1825_v8, %v1816_v26  ;;  %v5781_v56 = vadd.f32 %v1835_v37, %v1831_v44  ;;  %v2287_v26 = vstv %s5827_s10  ;;  %v2268_v37 = vmul.f32 %v2267_v39, %v5723_v27  ;;  %s5954_s10 = sld [smem:[#allocation3 + $0xb4]] }
 0x2f1   : > { %v2302_v8 = vmul.f32 %v2301_v62, %v5668_v28  ;;  %v2288_v57 = vmul.f32 %v2287_v26, %v5668_v28  ;;  %v2179_v39 = vstv %s4060_s26  ;;  %s6014_s26 = sld [smem:[#allocation3 + $0x34]] }
 0x2f2   : > { %v5785_v33 = vadd.f32 %v1834_v42, %v1830_v18 }
 0x2f4   : > { %2192 = vrot.lane.b32.xlu2 %v2187_v9, %s4485_s8  ;;  %2206 = vrot.lane.b32.xlu1 %v2201_v14, %s4484_s23  ;;  %v1850_v7 = vadd.f32 %v5772_v59, %v5785_v33 }
 0x2f5   : > { %2226 = vrot.lane.b32.xlu0 %v2221_v12, %s4485_s8 }
 0x2f6   : > { %v1913_v36 = vpop.permute.xlu2 %1912  ;;  %v1864_v59 = vadd.f32 %v5759_v0, %v1850_v7  ;;  %v4299_v7 = vld [vmem:[#allocation2 + $0x4a] sm:$0xff] }
 0x2f7   : > { %v5797_v40 = vpop.permute.xlu0 %1860  ;;  %v5801_v5 = vpop.permute.xlu1 %1846 }
 0x2f8   : > { %v1851_v17 = vadd.f32 %v5801_v5, %v5781_v56  ;;  %v2180_v56 = vmul.f32 %v2179_v39, %v5668_v28 }
 0x2fa   : > { %v1865_v33 = vadd.f32 %v5797_v40, %v1851_v17  ;;  %v5897_v0 = vadd.f32 %v2180_v56, %v1864_v59  ;;  %v2437_v56 = vstv %s5932_s0  ;;  %s6079_s0 = sld [smem:[#allocation3 + $0x79]] }
 0x2fc   : > { %2224 = vrot.lane.b32.xlu2 %v2220_v35, %s4485_s8  ;;  %2238 = vrot.lane.b32.xlu1 %v2234_v15, %s4484_s23  ;;  %v2323_v35 = vmul.f32 %v2321_v23, %v5691_v34  ;;  %v2355_v15 = vstv %s5854_s6  ;;  %s5976_s6 = sld [smem:[#allocation3 + $0x2a]] }
 0x2fd   : > { %2258 = vrot.lane.b32.xlu0 %v2254_v47, %s4485_s8  ;;  %v2357_v62 = vmul.f32 %v2355_v15, %v5741_v21 }
 0x2fe   : > { %v1929_v45 = vpop.permute.xlu2 %1928 }
 0x2ff   : > { %v1893_v11 = vpop.permute.xlu0 %1892  ;;  %v1879_v54 = vpop.permute.xlu1 %1878 }
 0x300   : > { %v1884_v22 = vadd.f32 %v1879_v54, %v5618_v10  ;;  %v1885_v10 = vadd.f32 %v1881_v3, %v5625_v19  ;;  %v1935_v3 = vstv %s4039_s12  ;;  %v2356_v54 = vmul.f32 %v2355_v15, %v5723_v27  ;;  %s5964_s12 = sld [smem:[#allocation3 + $0x2f]] }
 0x301   : > { %v1937_v12 = vmul.f32 %v1935_v3, %v5449_v2  ;;  %v1936_v20 = vmul.f32 %v1935_v3, %v5433_v60 }
 0x302   : > { %v1898_v46 = vadd.f32 %v1893_v11, %v1884_v22  ;;  %v2322_v11 = vmul.f32 %v2321_v23, %v5721_v29 }
 0x304   : > { %2240 = vrot.lane.b32.xlu2 %v2235_v30, %s4484_s23  ;;  %v1904_v55 = vadd.f32 %v1902_v1, %v1898_v46  ;;  %2260 = vrot.lane.b32.xlu1 %v2255_v48, %s4485_s8  ;;  %v2181_v46 = vmul.f32 %v2179_v39, %v5689_v58  ;;  %v2003_v1 = vstv %s5878_s13  ;;  %s6033_s13 = sld [smem:[#allocation3 + $0x35]] }
 0x305   : > { %2274 = vrot.lane.b32.xlu0 %v2269_v31, %s4484_s23  ;;  %v2369_v31 = vstv %s5871_s9  ;;  %s6019_s9 = sld [smem:[#allocation3 + $0x32]] }
 0x306   : > { %v5837_v25 = vpop.permute.xlu2 %1960  ;;  %v1918_v18 = vadd.f32 %v1913_v36, %v1904_v55  ;;  %v2289_v36 = vmul.f32 %v2287_v26, %v5689_v58  ;;  %v5902_v48 = vadd.f32 %v2181_v46, %v1865_v33  ;;  %v2457_v33 = vstv %s5928_s7  ;;  %s6065_s7 = sld [smem:[#allocation3 + $0x72]] }
 0x307   : > { %v1915_v49 = vpop.permute.xlu0 %1914  ;;  %v1895_v51 = vpop.permute.xlu1 %1894  ;;  %v2438_v46 = vmul.f32 %v2437_v56, %v5721_v29 }
 0x308   : > { %v1899_v52 = vadd.f32 %v1895_v51, %v1885_v10  ;;  %v2004_v51 = vmul.f32 %v2003_v1, %v5431_v53  ;;  %v4298_v53 = vld [vmem:[#allocation2 + $0x51] sm:$0xff] }
 0x30a   : > { %v1905_v44 = vadd.f32 %v1903_v41, %v1899_v52 }
 0x30c   : > { %v1919_v19 = vadd.f32 %v1915_v49, %v1905_v44  ;;  %2272 = vrot.lane.b32.xlu2 %v2268_v37, %s4484_s23  ;;  %2292 = vrot.lane.b32.xlu1 %v2288_v57, %s4485_s8  ;;  %v2371_v49 = vmul.f32 %v2369_v31, %v5741_v21  ;;  %v2403_v37 = vstv %s5895_s11  ;;  %s6042_s11 = sld [smem:[#allocation3 + $0x6f]] }
 0x30d   : > { %2306 = vrot.lane.b32.xlu0 %v2302_v8, %s4484_s23  ;;  %v2005_v8 = vmul.f32 %v4298_v53, %v2003_v1 }
 0x30e   : > { %v1983_v42 = vpop.permute.xlu2 %1982  ;;  %v1933_v9 = vadd.f32 %v1929_v45, %v1919_v19  ;;  %v2335_v45 = vstv %s5859_s25  ;;  %v2389_v19 = vstv %s5900_s22  ;;  %s5991_s25 = sld [smem:[#allocation3 + $0x31]] }
 0x30f   : > { %v5850_v61 = vpop.permute.xlu0 %1946  ;;  %v1927_v14 = vpop.permute.xlu1 %1926  ;;  %v2336_v24 = vmul.f32 %v2335_v45, %v5721_v29  ;;  %v2337_v10 = vmul.f32 %v2335_v45, %v5691_v34  ;;  %v1987_v41 = vadd.f32 %v1983_v42, %v5733_v13  ;;  %v2037_v42 = vstv %s4048_s30  ;;  %s6055_s22 = sld [smem:[#allocation3 + $0x77]] }
 0x310   : > { %v1932_v6 = vadd.f32 %v1927_v14, %v1918_v18  ;;  %v5857_v4 = vadd.f32 %v1937_v12, %v1933_v9  ;;  %v2370_v18 = vmul.f32 %v2369_v31, %v5723_v27  ;;  %v2404_v9 = vmul.f32 %v2403_v37, %v5668_v28  ;;  %s6058_s30 = sld [smem:[#allocation3 + $0x76]] }
 0x311   : > { %v2390_v12 = vmul.f32 %v2389_v19, %v5668_v28  ;;  %v2038_v15 = vmul.f32 %v4299_v7, %v2037_v42 }
 0x312   : > { %v5861_v32 = vadd.f32 %v1936_v20, %v1932_v6 }
 0x314   : > { %2294 = vrot.lane.b32.xlu2 %v2289_v36, %s4485_s8  ;;  %2308 = vrot.lane.b32.xlu1 %v2303_v43, %s4484_s23  ;;  %v2039_v36 = vmul.f32 %v2037_v42, %v5449_v2  ;;  %v2423_v43 = vstv %s5915_s5  ;;  %v2405_v2 = vmul.f32 %v2403_v37, %v5689_v58  ;;  %v1952_v1 = vadd.f32 %v5850_v61, %v5861_v32  ;;  %s6060_s5 = sld [smem:[#allocation3 + $0xfc]] }
 0x315   : > { %2328 = vrot.lane.b32.xlu0 %v2323_v35, %s4485_s8  ;;  %v2281_v61 = vstv %s5954_s10  ;;  %v2459_v32 = vmul.f32 %v2457_v33, %v5741_v21  ;;  %s6121_s10 = sld [smem:[#allocation3 + $0x7d]] }
 0x316   : > { %v2015_v60 = vpop.permute.xlu2 %2014 }
 0x317   : > { %v5869_v47 = vpop.permute.xlu0 %1962  ;;  %v5875_v63 = vpop.permute.xlu1 %1948 }
 0x31c   : > { %2326 = vrot.lane.b32.xlu2 %v2322_v11, %s4485_s8  ;;  %2340 = vrot.lane.b32.xlu1 %v2336_v24, %s4484_s23 }
 0x31d   : > { %2360 = vrot.lane.b32.xlu0 %v2356_v54, %s4485_s8  ;;  %v2425_v54 = vmul.f32 %v2423_v43, %v5691_v34 }
 0x31e   : > { %v2031_v5 = vpop.permute.xlu2 %2030 }
 0x31f   : > { %v1995_v22 = vpop.permute.xlu0 %1994  ;;  %v1981_v30 = vpop.permute.xlu1 %1980 }
 0x320   : > { %v1986_v40 = vadd.f32 %v1981_v30, %v5730_v16 }
 0x322   : > { %v2000_v55 = vadd.f32 %v1995_v22, %v1986_v40  ;;  %v2458_v22 = vmul.f32 %v2457_v33, %v5723_v27  ;;  %v2532_v33 = vstv %s5991_s25  ;;  %s6142_s25 = sld [smem:[#allocation3 + $0x2d]] }
 0x324   : > { %2342 = vrot.lane.b32.xlu2 %v2337_v10, %s4484_s23  ;;  %v2006_v16 = vadd.f32 %v2004_v51, %v2000_v55  ;;  %2362 = vrot.lane.b32.xlu1 %v2357_v62, %s4485_s8  ;;  %v2471_v55 = vstv %s5944_s1  ;;  %v2111_v10 = vstv %s5949_s20  ;;  %v2439_v62 = vmul.f32 %v2437_v56, %v5691_v34  ;;  %s6104_s1 = sld [smem:[#allocation3 + $0x7c]] }
 0x325   : > { %2376 = vrot.lane.b32.xlu0 %v2371_v49, %s4484_s23  ;;  %v1953_v49 = vadd.f32 %v5875_v63, %v5857_v4  ;;  %v2282_v63 = vmul.f32 %v2281_v61, %v5668_v28  ;;  %v2472_v42 = vmul.f32 %v2471_v55, %v5723_v27  ;;  %s6109_s20 = sld [smem:[#allocation3 + $0x7a]] }
 0x326   : > { %v5912_v52 = vpop.permute.xlu2 %2062  ;;  %v2020_v20 = vadd.f32 %v2015_v60, %v2006_v16  ;;  %v2391_v60 = vmul.f32 %v2389_v19, %v5689_v58  ;;  %v2512_v19 = vstv %s5964_s12  ;;  %s6126_s12 = sld [smem:[#allocation3 + $0xb7]] }
 0x327   : > { %v2017_v26 = vpop.permute.xlu0 %2016  ;;  %v1997_v44 = vpop.permute.xlu1 %1996  ;;  %v1967_v4 = vadd.f32 %v5869_v47, %v1953_v49 }
 0x328   : > { %v2001_v57 = vadd.f32 %v1997_v44, %v1987_v41  ;;  %v2473_v41 = vmul.f32 %v2471_v55, %v5741_v21  ;;  %v1966_v44 = vadd.f32 %v5837_v25, %v1952_v1  ;;  %v2283_v25 = vmul.f32 %v2281_v61, %v5689_v58  ;;  %v6035_v55 = vld [vmem:[#allocation2 + $0x79] sm:$0xff] }
 0x32a   : > { %v2007_v3 = vadd.f32 %v2005_v8, %v2001_v57  ;;  %v5988_v57 = vld [vmem:[#allocation2 + $0x78] sm:$0xff] }
 0x32c   : > { %v2021_v13 = vadd.f32 %v2017_v26, %v2007_v3  ;;  %2374 = vrot.lane.b32.xlu2 %v2370_v18, %s4484_s23  ;;  %2394 = vrot.lane.b32.xlu1 %v2390_v12, %s4485_s8  ;;  %v2112_v26 = vmul.f32 %v2111_v10, %v5721_v29  ;;  %v5993_v3 = vadd.f32 %v2282_v63, %v1966_v44  ;;  %v2498_v12 = vstv %s5969_s14  ;;  %v6051_v44 = vld [vmem:[#allocation2 + $0x82] sm:$0xff]  ;;  %s6137_s14 = sld [smem:[#allocation3 + $0xbf]] }
 0x32d   : > { %2408 = vrot.lane.b32.xlu0 %v2404_v9, %s4484_s23  ;;  %v2113_v18 = vmul.f32 %v2111_v10, %v5691_v34  ;;  %v6037_v10 = vld [vmem:[#allocation2 + $0x7a] sm:$0xff]  ;;  %v2213_v63 = vstv %s6042_s11  ;;  %s6186_s11 = sld [smem:[#allocation3 + $0xc2]] }
 0x32e   : > { %v2091_v14 = vpop.permute.xlu2 %2090  ;;  %v2035_v6 = vadd.f32 %v2031_v5, %v2021_v13  ;;  %v2424_v5 = vmul.f32 %v2423_v43, %v5721_v29  ;;  %v5997_v13 = vadd.f32 %v2283_v25, %v1967_v4 }
 0x32f   : > { %v5924_v23 = vpop.permute.xlu0 %2048  ;;  %v2029_v35 = vpop.permute.xlu1 %2028  ;;  %v2095_v37 = vadd.f32 %v2091_v14, %v5820_v50  ;;  %v2513_v14 = vmul.f32 %v2512_v19, %v5988_v57 }
 0x330   : > { %v2034_v17 = vadd.f32 %v2029_v35, %v2020_v20  ;;  %v5930_v45 = vadd.f32 %v2039_v36, %v2035_v6  ;;  %v2499_v20 = vmul.f32 %v2498_v12, %v5988_v57  ;;  %v2145_v6 = vstv %s5976_s6  ;;  %s6140_s6 = sld [smem:[#allocation3 + $0xbe]] }
 0x331   : > { %v2146_v56 = vmul.f32 %v2145_v6, %v5723_v27 }
 0x332   : > { %v5934_v11 = vadd.f32 %v2038_v15, %v2034_v17  ;;  %v2147_v17 = vmul.f32 %v2145_v6, %v5741_v21  ;;  %v2614_v6 = vstv %s6055_s22  ;;  %s6202_s22 = sld [smem:[#allocation3 + $0xc5]] }
 0x334   : > { %2396 = vrot.lane.b32.xlu2 %v2391_v60, %s4485_s8  ;;  %2410 = vrot.lane.b32.xlu1 %v2405_v2, %s4484_s23  ;;  %v6009_v60 = vld [vmem:[#allocation2 + $0x81] sm:$0xff] }
 0x335   : > { %2430 = vrot.lane.b32.xlu0 %v2425_v54, %s4485_s8  ;;  %v6011_v54 = vld [vmem:[#allocation2 + $0x80] sm:$0xff] }
 0x336   : > { %v2123_v39 = vpop.permute.xlu2 %2122 }
 0x337   : > { %v5942_v24 = vpop.permute.xlu0 %2064  ;;  %v5946_v59 = vpop.permute.xlu1 %2050 }
 0x33c   : > { %2428 = vrot.lane.b32.xlu2 %v2424_v5, %s4485_s8  ;;  %2442 = vrot.lane.b32.xlu1 %v2438_v46, %s4484_s23  ;;  %v2500_v46 = vmul.f32 %v2498_v12, %v6011_v54 }
 0x33d   : > { %2462 = vrot.lane.b32.xlu0 %v2458_v22, %s4485_s8 }
 0x33e   : > { %v2139_v30 = vpop.permute.xlu2 %2138 }
 0x33f   : > { %v2103_v31 = vpop.permute.xlu0 %2102  ;;  %v2089_v40 = vpop.permute.xlu1 %2088 }
 0x340   : > { %v2094_v51 = vadd.f32 %v2089_v40, %v5817_v38 }
 0x342   : > { %v2108_v16 = vadd.f32 %v2103_v31, %v2094_v51  ;;  %v2514_v31 = vmul.f32 %v2512_v19, %v6011_v54  ;;  %v2566_v51 = vstv %s6014_s26  ;;  %v2214_v19 = vmul.f32 %v2213_v63, %v5721_v29  ;;  %s6148_s26 = sld [smem:[#allocation3 + $0xba]] }
 0x344   : > { %2444 = vrot.lane.b32.xlu2 %v2439_v62, %s4484_s23  ;;  %v2114_v38 = vadd.f32 %v2112_v26, %v2108_v16  ;;  %2464 = vrot.lane.b32.xlu1 %v2459_v32, %s4485_s8  ;;  %v2546_v62 = vstv %s6019_s9  ;;  %v2533_v16 = vmul.f32 %v2532_v33, %v6035_v55  ;;  %s6159_s9 = sld [smem:[#allocation3 + $0xc1]] }
 0x345   : > { %2478 = vrot.lane.b32.xlu0 %v2473_v41, %s4484_s23  ;;  %v2567_v41 = vmul.f32 %v2566_v51, %v6037_v10  ;;  %v2547_v26 = vmul.f32 %v2546_v62, %v6035_v55  ;;  %v2548_v25 = vmul.f32 %v2546_v62, %v6009_v60 }
 0x346   : > { %v5985_v53 = vpop.permute.xlu2 %2170  ;;  %v2128_v7 = vadd.f32 %v2123_v39, %v2114_v38  ;;  %v2580_v38 = vstv %s6033_s13  ;;  %s6181_s13 = sld [smem:[#allocation3 + $0xc4]] }
 0x347   : > { %v2125_v8 = vpop.permute.xlu0 %2124  ;;  %v2105_v47 = vpop.permute.xlu1 %2104 }
 0x348   : > { %v2109_v9 = vadd.f32 %v2105_v47, %v2095_v37  ;;  %v2582_v47 = vmul.f32 %v2580_v38, %v6051_v44 }
 0x34a   : > { %v2115_v50 = vadd.f32 %v2113_v18, %v2109_v9  ;;  %v2568_v18 = vmul.f32 %v2566_v51, %v6051_v44  ;;  %v2055_v9 = vadd.f32 %v5946_v59, %v5930_v45  ;;  %v2383_v45 = vstv %s6060_s5  ;;  %s6218_s5 = sld [smem:[#allocation3 + $0x107]] }
 0x34c   : > { %v2129_v36 = vadd.f32 %v2125_v8, %v2115_v50  ;;  %2476 = vrot.lane.b32.xlu2 %v2472_v42, %s4484_s23  ;;  %2503 = vrot.lane.b32.xlu1 %v2499_v20, %s4485_s8  ;;  %v2069_v59 = vadd.f32 %v5942_v24, %v2055_v9 }
 0x34d   : > { %2517 = vrot.lane.b32.xlu0 %v2513_v14, %s4484_s23  ;;  %v2054_v14 = vadd.f32 %v5924_v23, %v5934_v11 }
 0x34e   : > { %v2193_v35 = vpop.permute.xlu2 %2192  ;;  %v2143_v15 = vadd.f32 %v2139_v30, %v2129_v36  ;;  %v2534_v30 = vmul.f32 %v2532_v33, %v6009_v60  ;;  %v2215_v36 = vmul.f32 %v2213_v63, %v5691_v34 }
 0x34f   : > { %v6006_v43 = vpop.permute.xlu0 %2156  ;;  %v2137_v2 = vpop.permute.xlu1 %2136  ;;  %v2197_v12 = vadd.f32 %v2193_v35, %v5902_v48  ;;  %v2615_v35 = vmul.f32 %v2614_v6, %v5988_v57  ;;  %v2068_v23 = vadd.f32 %v5912_v52, %v2054_v14  ;;  %v2315_v14 = vstv %s6126_s12  ;;  %s6262_s12 = sld [smem:[#allocation3 + $0x10a]] }
 0x350   : > { %v2142_v5 = vadd.f32 %v2137_v2, %v2128_v7  ;;  %v6017_v22 = vadd.f32 %v2147_v17, %v2143_v15  ;;  %v2600_v15 = vstv %s6058_s30  ;;  %v2581_v17 = vmul.f32 %v2580_v38, %v6037_v10  ;;  %s6207_s30 = sld [smem:[#allocation3 + $0xff]] }
 0x351   : > { %v2247_v2 = vstv %s6065_s7  ;;  %v2601_v33 = vmul.f32 %v2600_v15, %v5988_v57  ;;  %s6221_s7 = sld [smem:[#allocation3 + $0x106]] }
 0x352   : > { %v6021_v39 = vadd.f32 %v2146_v56, %v2142_v5  ;;  %v2385_v56 = vmul.f32 %v2383_v45, %v5689_v58  ;;  %v2384_v5 = vmul.f32 %v2383_v45, %v5668_v28  ;;  %v2249_v24 = vmul.f32 %v2247_v2, %v5741_v21 }
 0x353   : > { %v2248_v28 = vmul.f32 %v2247_v2, %v5723_v27 }
 0x354   : > { %2505 = vrot.lane.b32.xlu2 %v2500_v46, %s4485_s8  ;;  %2519 = vrot.lane.b32.xlu1 %v2514_v31, %s4484_s23  ;;  %v6099_v52 = vadd.f32 %v2385_v56, %v2069_v59  ;;  %v6101_v62 = vadd.f32 %v2384_v5, %v2068_v23  ;;  %v2317_v23 = vmul.f32 %v2315_v14, %v5691_v34  ;;  %v2702_v56 = vstv %s6140_s6  ;;  %s6279_s6 = sld [smem:[#allocation3 + $0x30]] }
 0x355   : > { %2539 = vrot.lane.b32.xlu0 %v2534_v30, %s4485_s8  ;;  %v2492_v5 = vstv %s6142_s25  ;;  %s6294_s25 = sld [smem:[#allocation3 + $0x38]] }
 0x356   : > { %v6029_v1 = vpop.permute.xlu2 %2224  ;;  %v2494_v34 = vmul.f32 %v2492_v5, %v6011_v54 }
 0x357   : > { %v6031_v40 = vpop.permute.xlu0 %2172  ;;  %v6039_v49 = vpop.permute.xlu1 %2158 }
 0x358   : > { %v2163_v45 = vadd.f32 %v6039_v49, %v6017_v22 }
 0x35c   : > { %2537 = vrot.lane.b32.xlu2 %v2533_v16, %s4485_s8  ;;  %2551 = vrot.lane.b32.xlu1 %v2547_v26, %s4484_s23 }
 0x35d   : > { %2571 = vrot.lane.b32.xlu0 %v2567_v41, %s4485_s8  ;;  %v2634_v41 = vstv %s6079_s0  ;;  %s6223_s0 = sld [smem:[#allocation3 + $0x75]] }
 0x35e   : > { %v2241_v61 = vpop.permute.xlu2 %2240 }
 0x35f   : > { %v2205_v32 = vpop.permute.xlu0 %2204  ;;  %v2191_v4 = vpop.permute.xlu1 %2190 }
 0x360   : > { %v2196_v37 = vadd.f32 %v2191_v4, %v5897_v0  ;;  %v2616_v4 = vmul.f32 %v2614_v6, %v6011_v54 }
 0x362   : > { %v2210_v8 = vadd.f32 %v2205_v32, %v2196_v37 }
 0x364   : > { %2553 = vrot.lane.b32.xlu2 %v2548_v25, %s4484_s23  ;;  %v2216_v0 = vadd.f32 %v2214_v19, %v2210_v8  ;;  %2573 = vrot.lane.b32.xlu1 %v2568_v18, %s4485_s8  ;;  %v2668_v8 = vstv %s6104_s1  ;;  %v2648_v25 = vstv %s6109_s20  ;;  %s6229_s1 = sld [smem:[#allocation3 + $0x102]] }
 0x365   : > { %2587 = vrot.lane.b32.xlu0 %v2582_v47, %s4484_s23  ;;  %v2635_v47 = vmul.f32 %v2634_v41, %v6035_v55  ;;  %v2669_v19 = vmul.f32 %v2668_v8, %v6037_v10  ;;  %v2649_v18 = vmul.f32 %v2648_v25, %v6035_v55  ;;  %s6240_s20 = sld [smem:[#allocation3 + $0x109]] }
 0x366   : > { %v6074_v50 = vpop.permute.xlu2 %2272  ;;  %v2230_v31 = vadd.f32 %v6029_v1, %v2216_v0  ;;  %v2602_v1 = vmul.f32 %v2600_v15, %v6011_v54  ;;  %v2316_v15 = vmul.f32 %v2315_v14, %v5721_v29 }
 0x367   : > { %v2227_v42 = vpop.permute.xlu0 %2226  ;;  %v2207_v20 = vpop.permute.xlu1 %2206 }
 0x368   : > { %v2211_v7 = vadd.f32 %v2207_v20, %v2197_v12 }
 0x36a   : > { %v2217_v48 = vadd.f32 %v2215_v36, %v2211_v7  ;;  %v2650_v36 = vmul.f32 %v2648_v25, %v6009_v60 }
 0x36c   : > { %v2231_v11 = vadd.f32 %v2227_v42, %v2217_v48  ;;  %2585 = vrot.lane.b32.xlu2 %v2581_v17, %s4484_s23  ;;  %2605 = vrot.lane.b32.xlu1 %v2601_v33, %s4485_s8  ;;  %v2682_v42 = vstv %s6121_s10  ;;  %v2670_v17 = vmul.f32 %v2668_v8, %v6051_v44  ;;  %v2716_v33 = vstv %s6137_s14  ;;  %s6260_s10 = sld [smem:[#allocation3 + $0x10c]] }
 0x36d   : > { %2619 = vrot.lane.b32.xlu0 %v2615_v35, %s4484_s23  ;;  %v2684_v7 = vmul.f32 %v2682_v42, %v6051_v44  ;;  %v2683_v22 = vmul.f32 %v2682_v42, %v6037_v10  ;;  %v2717_v49 = vmul.f32 %v2716_v33, %v5988_v57  ;;  %v2736_v8 = vstv %s6159_s9  ;;  %s6276_s14 = sld [smem:[#allocation3 + $0x10d]] }
 0x36e   : > { %v2295_v46 = vpop.permute.xlu2 %2294  ;;  %v2245_v51 = vadd.f32 %v2241_v61, %v2231_v11  ;;  %v2636_v61 = vmul.f32 %v2634_v41, %v6009_v60  ;;  %s6299_s9 = sld [smem:[#allocation3 + $0xbd]] }
 0x36f   : > { %v6096_v30 = vpop.permute.xlu0 %2258  ;;  %v2239_v16 = vpop.permute.xlu1 %2238  ;;  %v2299_v59 = vadd.f32 %v2295_v46, %v5997_v13  ;;  %v2703_v13 = vmul.f32 %v2702_v56, %v5988_v57  ;;  %v2349_v46 = vstv %s6148_s26  ;;  %s6297_s26 = sld [smem:[#allocation3 + $0x37]] }
 0x370   : > { %v2244_v58 = vadd.f32 %v2239_v16, %v2230_v31  ;;  %v6107_v26 = vadd.f32 %v2249_v24, %v2245_v51  ;;  %v2177_v24 = vadd.f32 %v6031_v40, %v2163_v45  ;;  %v2350_v25 = vmul.f32 %v2349_v46, %v5723_v27 }
 0x371   : > { %v2784_v45 = vstv %s6202_s22  ;;  %s6341_s22 = sld [smem:[#allocation3 + $0x3d]] }
 0x372   : > { %v6111_v32 = vadd.f32 %v2248_v28, %v2244_v58  ;;  %v2351_v58 = vmul.f32 %v2349_v46, %v5741_v21 }
 0x374   : > { %2607 = vrot.lane.b32.xlu2 %v2602_v1, %s4485_s8  ;;  %2621 = vrot.lane.b32.xlu1 %v2616_v4, %s4484_s23  ;;  %v6176_v1 = vadd.f32 %v2494_v34, %v2177_v24  ;;  %v2804_v34 = vstv %s6221_s7  ;;  %s6365_s7 = sld [smem:[#allocation3 + $0x3e]] }
 0x375   : > { %2641 = vrot.lane.b32.xlu0 %v2636_v61, %s4485_s8  ;;  %v2162_v61 = vadd.f32 %v6006_v43, %v6021_v39  ;;  %v2718_v43 = vmul.f32 %v2716_v33, %v6011_v54  ;;  %v2493_v39 = vmul.f32 %v2492_v5, %v5988_v57 }
 0x376   : > { %v2327_v38 = vpop.permute.xlu2 %2326 }
 0x377   : > { %v6119_v63 = vpop.permute.xlu0 %2274  ;;  %v6123_v37 = vpop.permute.xlu1 %2260 }
 0x378   : > { %v2265_v5 = vadd.f32 %v6123_v37, %v6107_v26  ;;  %v2785_v26 = vmul.f32 %v2784_v45, %v6037_v10  ;;  %v2805_v37 = vmul.f32 %v2804_v34, %v5988_v57 }
 0x37c   : > { %2639 = vrot.lane.b32.xlu2 %v2635_v47, %s4485_s8  ;;  %2653 = vrot.lane.b32.xlu1 %v2649_v18, %s4484_s23  ;;  %v2704_v18 = vmul.f32 %v2702_v56, %v6011_v54 }
 0x37d   : > { %2673 = vrot.lane.b32.xlu0 %v2669_v19, %s4485_s8 }
 0x37e   : > { %v2343_v0 = vpop.permute.xlu2 %2342 }
 0x37f   : > { %v2307_v9 = vpop.permute.xlu0 %2306  ;;  %v2293_v12 = vpop.permute.xlu1 %2292 }
 0x380   : > { %v2298_v20 = vadd.f32 %v2293_v12, %v5993_v3 }
 0x382   : > { %v2312_v6 = vadd.f32 %v2307_v9, %v2298_v20  ;;  %v2176_v9 = vadd.f32 %v5985_v53, %v2162_v61  ;;  %v2770_v20 = vstv %s6181_s13  ;;  %v2750_v53 = vstv %s6186_s11  ;;  %s6305_s13 = sld [smem:[#allocation3 + $0x33]] }
 0x383   : > { %v2752_v33 = vmul.f32 %v2750_v53, %v6009_v60  ;;  %v2772_v56 = vmul.f32 %v2770_v20, %v6051_v44  ;;  %s6319_s11 = sld [smem:[#allocation3 + $0x3a]] }
 0x384   : > { %2655 = vrot.lane.b32.xlu2 %v2650_v36, %s4484_s23  ;;  %v2318_v3 = vadd.f32 %v2316_v15, %v2312_v6  ;;  %2675 = vrot.lane.b32.xlu1 %v2670_v17, %s4485_s8  ;;  %v6198_v27 = vadd.f32 %v2493_v39, %v2176_v9  ;;  %v2737_v6 = vmul.f32 %v2736_v8, %v6035_v55  ;;  %v2838_v9 = vstv %s6240_s20  ;;  %s6388_s20 = sld [smem:[#allocation3 + $0x105]] }
 0x385   : > { %2689 = vrot.lane.b32.xlu0 %v2684_v7, %s4484_s23  ;;  %v2771_v36 = vmul.f32 %v2770_v20, %v6037_v10  ;;  %v2751_v7 = vmul.f32 %v2750_v53, %v6035_v55  ;;  %v4301_v20 = vld [vmem:[#allocation2 + $0x62] sm:$0xff] }
 0x386   : > { %v6156_v48 = vpop.permute.xlu2 %2374  ;;  %v2332_v41 = vadd.f32 %v2327_v38, %v2318_v3 }
 0x387   : > { %v2329_v35 = vpop.permute.xlu0 %2328  ;;  %v2309_v2 = vpop.permute.xlu1 %2308 }
 0x388   : > { %v2313_v11 = vadd.f32 %v2309_v2, %v2299_v59  ;;  %v2417_v59 = vstv %s6207_s30  ;;  %s6344_s30 = sld [smem:[#allocation3 + $0x3b]] }
 0x38a   : > { %v2319_v31 = vadd.f32 %v2317_v23, %v2313_v11  ;;  %v2786_v23 = vmul.f32 %v2784_v45, %v6051_v44  ;;  %v2418_v11 = vmul.f32 %v2417_v59, %v5721_v29 }
 0x38c   : > { %v2333_v51 = vadd.f32 %v2329_v35, %v2319_v31  ;;  %2687 = vrot.lane.b32.xlu2 %v2683_v22, %s4484_s23  ;;  %2707 = vrot.lane.b32.xlu1 %v2703_v13, %s4485_s8  ;;  %v4300_v13 = vld [vmem:[#allocation2 + $0x69] sm:$0xff] }
 0x38d   : > { %2721 = vrot.lane.b32.xlu0 %v2717_v49, %s4484_s23  ;;  %v2818_v49 = vstv %s6218_s5  ;;  %v2419_v46 = vmul.f32 %v4300_v13, %v2417_v59  ;;  %v2872_v59 = vstv %s6260_s10  ;;  %s6360_s5 = sld [smem:[#allocation3 + $0x78]] }
 0x38e   : > { %v2397_v16 = vpop.permute.xlu2 %2396  ;;  %v2347_v28 = vadd.f32 %v2343_v0, %v2333_v51  ;;  %v2738_v0 = vmul.f32 %v2736_v8, %v6009_v60  ;;  %s6394_s10 = sld [smem:[#allocation3 + $0x7b]] }
 0x38f   : > { %v6173_v40 = vpop.permute.xlu0 %2360  ;;  %v2341_v4 = vpop.permute.xlu1 %2340  ;;  %v2401_v24 = vadd.f32 %v2397_v16, %v6099_v52  ;;  %v2819_v52 = vmul.f32 %v2818_v49, %v5988_v57  ;;  %v2451_v16 = vstv %s6229_s1  ;;  %s6385_s1 = sld [smem:[#allocation3 + $0x7f]] }
 0x390   : > { %v2346_v47 = vadd.f32 %v2341_v4, %v2332_v41  ;;  %v6184_v19 = vadd.f32 %v2351_v58, %v2347_v28  ;;  %v2594_v41 = vstv %s6223_s0  ;;  %v2279_v28 = vadd.f32 %v6119_v63, %v2265_v5  ;;  %s6380_s0 = sld [smem:[#allocation3 + $0x80]] }
 0x391   : > { %v2596_v4 = vmul.f32 %v2594_v41, %v6011_v54  ;;  %v2452_v53 = vmul.f32 %v4301_v20, %v2451_v16  ;;  %v2560_v20 = vstv %s6305_s13  ;;  %s6457_s13 = sld [smem:[#allocation3 + $0xc7]] }
 0x392   : > { %v6188_v38 = vadd.f32 %v2350_v25, %v2346_v47 }
 0x394   : > { %2709 = vrot.lane.b32.xlu2 %v2704_v18, %s4485_s8  ;;  %2723 = vrot.lane.b32.xlu1 %v2718_v43, %s4484_s23  ;;  %v2453_v18 = vmul.f32 %v2451_v16, %v5741_v21  ;;  %v2806_v21 = vmul.f32 %v2804_v34, %v6011_v54 }
 0x395   : > { %2743 = vrot.lane.b32.xlu0 %v2738_v0, %s4485_s8  ;;  %v6256_v0 = vadd.f32 %v2596_v4, %v2279_v28 }
 0x396   : > { %v2429_v12 = vpop.permute.xlu2 %2428 }
 0x397   : > { %v6200_v42 = vpop.permute.xlu0 %2376  ;;  %v6204_v14 = vpop.permute.xlu1 %2362 }
 0x398   : > { %v2367_v28 = vadd.f32 %v6204_v14, %v6184_v19 }
 0x39c   : > { %2741 = vrot.lane.b32.xlu2 %v2737_v6, %s4485_s8  ;;  %2755 = vrot.lane.b32.xlu1 %v2751_v7, %s4484_s23 }
 0x39d   : > { %2775 = vrot.lane.b32.xlu0 %v2771_v36, %s4485_s8 }
 0x39e   : > { %v2445_v15 = vpop.permute.xlu2 %2444 }
 0x39f   : > { %v2409_v17 = vpop.permute.xlu0 %2408  ;;  %v2395_v3 = vpop.permute.xlu1 %2394 }
 0x3a0   : > { %v2400_v35 = vadd.f32 %v2395_v3, %v6101_v62  ;;  %v2595_v3 = vmul.f32 %v2594_v41, %v5988_v57  ;;  %v2874_v41 = vmul.f32 %v2872_v59, %v6051_v44 }
 0x3a2   : > { %v2414_v2 = vadd.f32 %v2409_v17, %v2400_v35 }
 0x3a4   : > { %2757 = vrot.lane.b32.xlu2 %v2752_v33, %s4484_s23  ;;  %v2420_v62 = vadd.f32 %v2418_v11, %v2414_v2  ;;  %2777 = vrot.lane.b32.xlu1 %v2772_v56, %s4485_s8  ;;  %v2852_v33 = vstv %s6262_s12  ;;  %v2873_v11 = vmul.f32 %v2872_v59, %v6037_v10  ;;  %v2947_v59 = vstv %s6319_s11  ;;  %s6405_s12 = sld [smem:[#allocation3 + $0x82]] }
 0x3a5   : > { %2791 = vrot.lane.b32.xlu0 %v2786_v23, %s4484_s23  ;;  %v2853_v56 = vmul.f32 %v2852_v33, %v6035_v55  ;;  %s6462_s11 = sld [smem:[#allocation3 + $0x36]] }
 0x3a6   : > { %v6237_v29 = vpop.permute.xlu2 %2476  ;;  %v2434_v25 = vadd.f32 %v2429_v12, %v2420_v62  ;;  %v2264_v12 = vadd.f32 %v6096_v30, %v6111_v32 }
 0x3a7   : > { %v2431_v31 = vpop.permute.xlu0 %2430  ;;  %v2411_v22 = vpop.permute.xlu1 %2410 }
 0x3a8   : > { %v2415_v51 = vadd.f32 %v2411_v22, %v2401_v24  ;;  %v2278_v17 = vadd.f32 %v6074_v50, %v2264_v12  ;;  %v2839_v50 = vmul.f32 %v2838_v9, %v6035_v55  ;;  %v2526_v22 = vstv %s6279_s6  ;;  %s6424_s6 = sld [smem:[#allocation3 + $0x83]] }
 0x3a9   : > { %v2527_v34 = vmul.f32 %v2526_v22, %v6035_v55  ;;  %v2528_v4 = vmul.f32 %v2526_v22, %v6009_v60  ;;  %v2562_v12 = vmul.f32 %v2560_v20, %v6051_v44  ;;  %v2981_v22 = vstv %s6341_s22  ;;  %s6468_s22 = sld [smem:[#allocation3 + $0xc3]] }
 0x3aa   : > { %v2421_v58 = vadd.f32 %v2419_v46, %v2415_v51  ;;  %v6281_v35 = vadd.f32 %v2595_v3, %v2278_v17  ;;  %v2854_v46 = vmul.f32 %v2852_v33, %v6009_v60 }
 0x3ac   : > { %v2435_v61 = vadd.f32 %v2431_v31, %v2421_v58  ;;  %2789 = vrot.lane.b32.xlu2 %v2785_v26, %s4484_s23  ;;  %2809 = vrot.lane.b32.xlu1 %v2805_v37, %s4485_s8  ;;  %v2886_v31 = vstv %s6276_s14  ;;  %v6314_v37 = vld [vmem:[#allocation2 + $0x90] sm:$0xff]  ;;  %s6421_s14 = sld [smem:[#allocation3 + $0x85]] }
 0x3ad   : > { %2823 = vrot.lane.b32.xlu0 %v2819_v52, %s4484_s23  ;;  %v2888_v51 = vmul.f32 %v2886_v31, %v6051_v44  ;;  %v2887_v19 = vmul.f32 %v2886_v31, %v6037_v10 }
 0x3ae   : > { %v2506_v8 = vpop.permute.xlu2 %2505  ;;  %v2449_v47 = vadd.f32 %v2445_v15, %v2435_v61  ;;  %v2820_v15 = vmul.f32 %v2818_v49, %v6011_v54  ;;  %v2927_v61 = vstv %s6294_s25  ;;  %s6436_s25 = sld [smem:[#allocation3 + $0xc0]] }
 0x3af   : > { %v6253_v63 = vpop.permute.xlu0 %2462  ;;  %v2510_v43 = vadd.f32 %v2506_v8, %v6176_v1  ;;  %v2443_v39 = vpop.permute.xlu1 %2442  ;;  %v2840_v1 = vmul.f32 %v2838_v9, %v6009_v60  ;;  %v2928_v14 = vmul.f32 %v2927_v61, %v6314_v37 }
 0x3b0   : > { %v2448_v6 = vadd.f32 %v2443_v39, %v2434_v25  ;;  %v2455_v36 = vadd.f32 %v2453_v18, %v2449_v47  ;;  %v2913_v25 = vstv %s6297_s26  ;;  %v2696_v47 = vstv %s6299_s9  ;;  %s6439_s26 = sld [smem:[#allocation3 + $0x86]] }
 0x3b1   : > { %v2381_v18 = vadd.f32 %v6200_v42, %v2367_v28  ;;  %v2914_v9 = vmul.f32 %v2913_v25, %v6314_v37  ;;  %s6454_s9 = sld [smem:[#allocation3 + $0xc8]] }
 0x3b2   : > { %v6266_v7 = vadd.f32 %v2452_v53, %v2448_v6 }
 0x3b4   : > { %2811 = vrot.lane.b32.xlu2 %v2806_v21, %s4485_s8  ;;  %2825 = vrot.lane.b32.xlu1 %v2820_v15, %s4484_s23  ;;  %v6336_v15 = vld [vmem:[#allocation2 + $0x98] sm:$0xff] }
 0x3b5   : > { %2845 = vrot.lane.b32.xlu0 %v2840_v1, %s4485_s8  ;;  %v6334_v1 = vld [vmem:[#allocation2 + $0x99] sm:$0xff]  ;;  %v2915_v33 = vmul.f32 %v2913_v25, %v6336_v15  ;;  %v2995_v25 = vstv %s6365_s7  ;;  %s6497_s7 = sld [smem:[#allocation3 + $0xcb]] }
 0x3b6   : > { %v2538_v30 = vpop.permute.xlu2 %2537 }
 0x3b7   : > { %v2479_v32 = vpop.permute.xlu0 %2478  ;;  %v2465_v45 = vpop.permute.xlu1 %2464 }
 0x3b8   : > { %v2469_v2 = vadd.f32 %v2465_v45, %v2455_v36 }
 0x3ba   : > { %v6284_v23 = vadd.f32 %v2479_v32, %v2469_v2 }
 0x3bc   : > { %2843 = vrot.lane.b32.xlu2 %v2839_v50, %s4485_s8  ;;  %2857 = vrot.lane.b32.xlu1 %v2853_v56, %s4484_s23  ;;  %v2949_v50 = vmul.f32 %v2947_v59, %v6334_v1 }
 0x3bd   : > { %2877 = vrot.lane.b32.xlu0 %v2873_v11, %s4485_s8 }
 0x3be   : > { %v2554_v62 = vpop.permute.xlu2 %2553 }
 0x3bf   : > { %v2518_v5 = vpop.permute.xlu0 %2517  ;;  %v2504_v24 = vpop.permute.xlu1 %2503 }
 0x3c0   : > { %v2509_v49 = vadd.f32 %v2504_v24, %v6198_v27  ;;  %v6357_v24 = vld [vmem:[#allocation2 + $0x92] sm:$0xff] }
 0x3c2   : > { %v2523_v13 = vadd.f32 %v2518_v5, %v2509_v49  ;;  %v6355_v5 = vld [vmem:[#allocation2 + $0x91] sm:$0xff] }
 0x3c4   : > { %2859 = vrot.lane.b32.xlu2 %v2854_v46, %s4484_s23  ;;  %v2529_v27 = vadd.f32 %v2527_v34, %v2523_v13  ;;  %2879 = vrot.lane.b32.xlu1 %v2874_v41, %s4485_s8  ;;  %v2961_v13 = vstv %s6344_s30  ;;  %v2366_v46 = vadd.f32 %v6173_v40, %v6188_v38  ;;  %v2948_v34 = vmul.f32 %v2947_v59, %v6355_v5  ;;  %s6478_s30 = sld [smem:[#allocation3 + $0xca]] }
 0x3c5   : > { %2893 = vrot.lane.b32.xlu0 %v2888_v51, %s4484_s23  ;;  %v2982_v41 = vmul.f32 %v2981_v22, %v6357_v24  ;;  %v2697_v40 = vmul.f32 %v2696_v47, %v5988_v57  ;;  %v2662_v59 = vstv %s6394_s10  ;;  %s6529_s10 = sld [smem:[#allocation3 + $0x10f]] }
 0x3c6   : > { %v6312_v58 = vpop.permute.xlu2 %2585  ;;  %v2543_v52 = vadd.f32 %v2538_v30, %v2529_v27  ;;  %v2561_v30 = vmul.f32 %v2560_v20, %v6037_v10  ;;  %v2962_v27 = vmul.f32 %v2961_v13, %v6355_v5  ;;  %v2380_v28 = vadd.f32 %v6156_v48, %v2366_v46 }
 0x3c7   : > { %v2540_v26 = vpop.permute.xlu0 %2539  ;;  %v2520_v16 = vpop.permute.xlu1 %2519  ;;  %v3049_v46 = vstv %s6405_s12  ;;  %s6534_s12 = sld [smem:[#allocation3 + $0x7e]] }
 0x3c8   : > { %v2524_v8 = vadd.f32 %v2520_v16, %v2510_v43  ;;  %v2698_v43 = vmul.f32 %v2696_v47, %v6011_v54  ;;  %v2963_v47 = vmul.f32 %v2961_v13, %v6334_v1 }
 0x3ca   : > { %v2530_v39 = vadd.f32 %v2528_v4, %v2524_v8  ;;  %v6332_v21 = vadd.f32 %v2698_v43, %v2381_v18  ;;  %v6382_v4 = vadd.f32 %v2697_v40, %v2380_v28  ;;  %v3029_v43 = vstv %s6380_s0  ;;  %s6509_s0 = sld [smem:[#allocation3 + $0x108]] }
 0x3cc   : > { %v2544_v53 = vadd.f32 %v2540_v26, %v2530_v39  ;;  %2891 = vrot.lane.b32.xlu2 %v2887_v19, %s4484_s23  ;;  %2918 = vrot.lane.b32.xlu1 %v2914_v9, %s4485_s8 }
 0x3cd   : > { %2932 = vrot.lane.b32.xlu0 %v2928_v14, %s4484_s23 }
 0x3ce   : > { %v2608_v6 = vpop.permute.xlu2 %2607  ;;  %v2558_v36 = vadd.f32 %v2554_v62, %v2544_v53 }
 0x3cf   : > { %v2572_v42 = vpop.permute.xlu0 %2571  ;;  %v6339_v17 = vadd.f32 %v2608_v6, %v6256_v0  ;;  %v2552_v3 = vpop.permute.xlu1 %2551  ;;  %v2929_v0 = vmul.f32 %v2927_v61, %v6336_v15  ;;  %v2628_v61 = vstv %s6360_s5  ;;  %s6494_s5 = sld [smem:[#allocation3 + $0xcd]] }
 0x3d0   : > { %v2557_v32 = vadd.f32 %v2552_v3, %v2543_v52  ;;  %v2564_v45 = vadd.f32 %v2562_v12, %v2558_v36  ;;  %v6377_v52 = vld [vmem:[#allocation2 + $0x9a] sm:$0xff]  ;;  %v2629_v39 = vmul.f32 %v2628_v61, %v6035_v55  ;;  %v2630_v6 = vmul.f32 %v2628_v61, %v6009_v60 }
 0x3d1   : > { %v2997_v18 = vmul.f32 %v2995_v25, %v6377_v52  ;;  %v2983_v19 = vmul.f32 %v2981_v22, %v6377_v52  ;;  %v3015_v36 = vstv %s6385_s1  ;;  %v2798_v12 = vstv %s6388_s20  ;;  %s6512_s1 = sld [smem:[#allocation3 + $0xce]] }
 0x3d2   : > { %v2563_v2 = vadd.f32 %v2561_v30, %v2557_v32  ;;  %v2996_v30 = vmul.f32 %v2995_v25, %v6357_v24  ;;  %v3030_v32 = vmul.f32 %v3029_v43, %v6314_v37  ;;  %v3063_v61 = vstv %s6424_s6  ;;  %s6523_s20 = sld [smem:[#allocation3 + $0x110]] }
 0x3d3   : > { %s6549_s6 = sld [smem:[#allocation3 + $0x112]] }
 0x3d4   : > { %v6350_v11 = vadd.f32 %v2572_v42, %v2563_v2  ;;  %2920 = vrot.lane.b32.xlu2 %v2915_v33, %s4485_s8  ;;  %2934 = vrot.lane.b32.xlu1 %v2929_v0, %s4484_s23 }
 0x3d5   : > { %2954 = vrot.lane.b32.xlu0 %v2949_v50, %s4485_s8 }
 0x3d6   : > { %v2640_v56 = vpop.permute.xlu2 %2639 }
 0x3d7   : > { %v2588_v62 = vpop.permute.xlu0 %2587  ;;  %v2574_v31 = vpop.permute.xlu1 %2573 }
 0x3d8   : > { %v2578_v49 = vadd.f32 %v2574_v31, %v2564_v45  ;;  %v3016_v45 = vmul.f32 %v3015_v36, %v6314_v37 }
 0x3da   : > { %v6367_v51 = vadd.f32 %v2588_v62, %v2578_v49  ;;  %v2663_v49 = vmul.f32 %v2662_v59, %v6037_v10 }
 0x3dc   : > { %2952 = vrot.lane.b32.xlu2 %v2948_v34, %s4485_s8  ;;  %2966 = vrot.lane.b32.xlu1 %v2962_v27, %s4484_s23  ;;  %v3031_v27 = vmul.f32 %v3029_v43, %v6336_v15  ;;  %v3097_v43 = vstv %s6439_s26  ;;  %s6566_s26 = sld [smem:[#allocation3 + $0x113]] }
 0x3dd   : > { %2986 = vrot.lane.b32.xlu0 %v2982_v41, %s4485_s8  ;;  %v3017_v41 = vmul.f32 %v3015_v36, %v6336_v15 }
 0x3de   : > { %v2656_v38 = vpop.permute.xlu2 %2655 }
 0x3df   : > { %v2620_v26 = vpop.permute.xlu0 %2619  ;;  %v2606_v16 = vpop.permute.xlu1 %2605 }
 0x3e0   : > { %v2611_v8 = vadd.f32 %v2606_v16, %v6281_v35 }
 0x3e2   : > { %v2625_v48 = vadd.f32 %v2620_v26, %v2611_v8  ;;  %v3083_v26 = vstv %s6421_s14  ;;  %v2468_v8 = vadd.f32 %v6253_v63, %v6266_v7  ;;  %v2799_v63 = vmul.f32 %v2798_v12, %v5988_v57  ;;  %s6540_s14 = sld [smem:[#allocation3 + $0x10b]] }
 0x3e3   : > { %v3099_v57 = vmul.f32 %v3097_v43, %v6377_v52  ;;  %v3085_v36 = vmul.f32 %v3083_v26, %v6377_v52 }
 0x3e4   : > { %2968 = vrot.lane.b32.xlu2 %v2963_v47, %s4484_s23  ;;  %v2631_v35 = vadd.f32 %v2629_v39, %v2625_v48  ;;  %2988 = vrot.lane.b32.xlu1 %v2983_v19, %s4485_s8  ;;  %v3050_v48 = vmul.f32 %v3049_v46, %v6355_v5  ;;  %v3084_v47 = vmul.f32 %v3083_v26, %v6357_v24  ;;  %v3151_v26 = vstv %s6478_s30  ;;  %s6603_s30 = sld [smem:[#allocation3 + $0xc6]] }
 0x3e5   : > { %3002 = vrot.lane.b32.xlu0 %v2997_v18, %s4484_s23  ;;  %v3064_v18 = vmul.f32 %v3063_v61, %v6355_v5 }
 0x3e6   : > { %v6399_v14 = vpop.permute.xlu2 %2687  ;;  %v2645_v20 = vadd.f32 %v2640_v56, %v2631_v35  ;;  %v2664_v56 = vmul.f32 %v2662_v59, %v6051_v44  ;;  %v2482_v35 = vadd.f32 %v6237_v29, %v2468_v8 }
 0x3e7   : > { %v2642_v9 = vpop.permute.xlu0 %2641  ;;  %v2622_v53 = vpop.permute.xlu1 %2621 }
 0x3e8   : > { %v2626_v42 = vadd.f32 %v2622_v53, %v6339_v17  ;;  %v2800_v17 = vmul.f32 %v2798_v12, %v6011_v54  ;;  %v6459_v53 = vadd.f32 %v2799_v63, %v2482_v35  ;;  %v3152_v35 = vmul.f32 %v3151_v26, %v6355_v5 }
 0x3ea   : > { %v2632_v3 = vadd.f32 %v2630_v6, %v2626_v42  ;;  %v6418_v62 = vadd.f32 %v2800_v17, %v6284_v23  ;;  %v3051_v23 = vmul.f32 %v3049_v46, %v6334_v1  ;;  %v3065_v42 = vmul.f32 %v3063_v61, %v6334_v1 }
 0x3eb   : > { %v3117_v17 = vstv %s6457_s13  ;;  %s6581_s13 = sld [smem:[#allocation3 + $0x116]] }
 0x3ec   : > { %v2646_v2 = vadd.f32 %v2642_v9, %v2632_v3  ;;  %3000 = vrot.lane.b32.xlu2 %v2996_v30, %s4484_s23  ;;  %3020 = vrot.lane.b32.xlu1 %v3016_v45, %s4485_s8  ;;  %v2730_v9 = vstv %s6436_s25  ;;  %v3131_v45 = vstv %s6454_s9  ;;  %s6564_s25 = sld [smem:[#allocation3 + $0x115]] }
 0x3ed   : > { %3034 = vrot.lane.b32.xlu0 %v3030_v32, %s4484_s23  ;;  %v2731_v29 = vmul.f32 %v2730_v9, %v6035_v55  ;;  %v2732_v59 = vmul.f32 %v2730_v9, %v6009_v60  ;;  %v3133_v61 = vmul.f32 %v3131_v45, %v6336_v15  ;;  %s6578_s9 = sld [smem:[#allocation3 + $0x39]] }
 0x3ee   : > { %v2710_v33 = vpop.permute.xlu2 %2709  ;;  %v2660_v0 = vadd.f32 %v2656_v38, %v2646_v2 }
 0x3ef   : > { %v2674_v50 = vpop.permute.xlu0 %2673  ;;  %v2714_v31 = vadd.f32 %v2710_v33, %v6332_v21  ;;  %v2654_v22 = vpop.permute.xlu1 %2653  ;;  %v2907_v33 = vstv %s6462_s11  ;;  %s6595_s11 = sld [smem:[#allocation3 + $0x41]] }
 0x3f0   : > { %v2659_v13 = vadd.f32 %v2654_v22, %v2645_v20  ;;  %v2666_v54 = vadd.f32 %v2664_v56, %v2660_v0  ;;  %v3098_v0 = vmul.f32 %v3097_v43, %v6357_v24  ;;  %v3132_v56 = vmul.f32 %v3131_v45, %v6314_v37 }
 0x3f1   : > { %v3118_v22 = vmul.f32 %v3117_v17, %v6314_v37  ;;  %v2909_v60 = vmul.f32 %v2907_v33, %v6336_v15 }
 0x3f2   : > { %v2665_v34 = vadd.f32 %v2663_v49, %v2659_v13  ;;  %v2764_v49 = vstv %s6468_s22  ;;  %s6598_s22 = sld [smem:[#allocation3 + $0x40]] }
 0x3f4   : > { %v6430_v21 = vadd.f32 %v2674_v50, %v2665_v34  ;;  %3022 = vrot.lane.b32.xlu2 %v3017_v41, %s4485_s8  ;;  %3036 = vrot.lane.b32.xlu1 %v3031_v27, %s4484_s23  ;;  %v2766_v34 = vmul.f32 %v2764_v49, %v6051_v44  ;;  %v6491_v41 = vadd.f32 %v2909_v60, %v6367_v51 }
 0x3f5   : > { %3056 = vrot.lane.b32.xlu0 %v3051_v23, %s4485_s8  ;;  %v3119_v44 = vmul.f32 %v3117_v17, %v6336_v15  ;;  %v3153_v51 = vmul.f32 %v3151_v26, %v6334_v1 }
 0x3f6   : > { %v2742_v28 = vpop.permute.xlu2 %2741 }
 0x3f7   : > { %v2690_v40 = vpop.permute.xlu0 %2689  ;;  %v2676_v38 = vpop.permute.xlu1 %2675 }
 0x3f8   : > { %v2680_v16 = vadd.f32 %v2676_v38, %v2666_v54 }
 0x3fa   : > { %v6443_v25 = vadd.f32 %v2690_v40, %v2680_v16 }
 0x3fc   : > { %3054 = vrot.lane.b32.xlu2 %v3050_v48, %s4485_s8  ;;  %3068 = vrot.lane.b32.xlu1 %v3064_v18, %s4484_s23 }
 0x3fd   : > { %3088 = vrot.lane.b32.xlu0 %v3084_v47, %s4485_s8  ;;  %v3185_v47 = vstv %s6494_s5  ;;  %s6612_s5 = sld [smem:[#allocation3 + $0x3c]] }
 0x3fe   : > { %v2758_v39 = vpop.permute.xlu2 %2757  ;;  %v3186_v63 = vmul.f32 %v3185_v47, %v6357_v24 }
 0x3ff   : > { %v2722_v19 = vpop.permute.xlu0 %2721  ;;  %v2708_v7 = vpop.permute.xlu1 %2707 }
 0x400   : > { %v2713_v20 = vadd.f32 %v2708_v7, %v6382_v4 }
 0x402   : > { %v2727_v6 = vadd.f32 %v2722_v19, %v2713_v20 }
 0x404   : > { %3070 = vrot.lane.b32.xlu2 %v3065_v42, %s4484_s23  ;;  %v2733_v4 = vadd.f32 %v2731_v29, %v2727_v6  ;;  %3090 = vrot.lane.b32.xlu1 %v3085_v36, %s4485_s8  ;;  %v2832_v6 = vstv %s6509_s0  ;;  %v2908_v42 = vmul.f32 %v2907_v33, %v6314_v37  ;;  %v3199_v36 = vstv %s6512_s1  ;;  %s6644_s0 = sld [smem:[#allocation3 + $0x46]] }
 0x405   : > { %3104 = vrot.lane.b32.xlu0 %v3099_v57, %s4484_s23  ;;  %v2591_v57 = vadd.f32 %v6312_v58, %v6350_v11  ;;  %v2833_v45 = vmul.f32 %v2832_v6, %v6035_v55  ;;  %v3187_v58 = vmul.f32 %v3185_v47, %v6377_v52  ;;  %v3233_v33 = vstv %s6523_s20  ;;  %v4302_v55 = vld [vmem:[#allocation2 + $0x81] sm:$0xff]  ;;  %s6647_s1 = sld [smem:[#allocation3 + $0x44]] }
 0x406   : > { %v6473_v12 = vpop.permute.xlu2 %2789  ;;  %v2747_v30 = vadd.f32 %v2742_v28, %v2733_v4  ;;  %v2765_v28 = vmul.f32 %v2764_v49, %v6037_v10  ;;  %v3234_v60 = vmul.f32 %v3233_v33, %v6314_v37  ;;  %s6657_s20 = sld [smem:[#allocation3 + $0x47]] }
 0x407   : > { %v2744_v3 = vpop.permute.xlu0 %2743  ;;  %v2724_v32 = vpop.permute.xlu1 %2723  ;;  %v6532_v4 = vadd.f32 %v2908_v42, %v2591_v57 }
 0x408   : > { %v2728_v2 = vadd.f32 %v2724_v32, %v2714_v31  ;;  %v3201_v32 = vmul.f32 %v3199_v36, %v6377_v52 }
 0x40a   : > { %v2734_v50 = vadd.f32 %v2732_v59, %v2728_v2 }
 0x40c   : > { %v2748_v13 = vadd.f32 %v2744_v3, %v2734_v50  ;;  %3102 = vrot.lane.b32.xlu2 %v3098_v0, %s4484_s23  ;;  %3122 = vrot.lane.b32.xlu1 %v3118_v22, %s4485_s8  ;;  %v2834_v50 = vmul.f32 %v4302_v55, %v2832_v6  ;;  %v3009_v22 = vstv %s6534_s12  ;;  %s6682_s12 = sld [smem:[#allocation3 + $0x89]] }
 0x40d   : > { %3136 = vrot.lane.b32.xlu0 %v3132_v56, %s4484_s23  ;;  %v3219_v56 = vstv %s6529_s10  ;;  %s6664_s10 = sld [smem:[#allocation3 + $0x81]] }
 0x40e   : > { %v2812_v31 = vpop.permute.xlu2 %2811  ;;  %v2762_v46 = vadd.f32 %v2758_v39, %v2748_v13  ;;  %v3165_v39 = vstv %s6497_s7  ;;  %v3200_v13 = vmul.f32 %v3199_v36, %v6357_v24  ;;  %s6619_s7 = sld [smem:[#allocation3 + $0x43]] }
 0x40f   : > { %v2776_v54 = vpop.permute.xlu0 %2775  ;;  %v2816_v23 = vadd.f32 %v2812_v31, %v6418_v62  ;;  %v2756_v27 = vpop.permute.xlu1 %2755  ;;  %v3166_v7 = vmul.f32 %v3165_v39, %v6355_v5  ;;  %v3220_v31 = vmul.f32 %v3219_v56, %v6314_v37 }
 0x410   : > { %v2761_v40 = vadd.f32 %v2756_v27, %v2747_v30  ;;  %v2768_v38 = vadd.f32 %v2766_v34, %v2762_v46  ;;  %v3167_v30 = vmul.f32 %v3165_v39, %v6334_v1  ;;  %v3011_v34 = vmul.f32 %v3009_v22, %v6336_v15 }
 0x411   : > { %v3235_v39 = vmul.f32 %v3233_v33, %v6336_v15 }
 0x412   : > { %v2767_v16 = vadd.f32 %v2765_v28, %v2761_v40  ;;  %v4303_v40 = vld [vmem:[#allocation2 + $0x82] sm:$0xff]  ;;  %v6561_v26 = vadd.f32 %v3011_v34, %v6443_v25 }
 0x414   : > { %v6503_v62 = vadd.f32 %v2776_v54, %v2767_v16  ;;  %3124 = vrot.lane.b32.xlu2 %v3119_v44, %s4485_s8  ;;  %3138 = vrot.lane.b32.xlu1 %v3133_v61, %s4484_s23  ;;  %v2866_v54 = vstv %s6540_s14  ;;  %s6685_s14 = sld [smem:[#allocation3 + $0x88]] }
 0x415   : > { %3158 = vrot.lane.b32.xlu0 %v3153_v51, %s4485_s8  ;;  %v4304_v51 = vld [vmem:[#allocation2 + $0x7a] sm:$0xff] }
 0x416   : > { %v2844_v10 = vpop.permute.xlu2 %2843  ;;  %v2867_v61 = vmul.f32 %v4304_v51, %v2866_v54 }
 0x417   : > { %v2792_v8 = vpop.permute.xlu0 %2791  ;;  %v2778_v48 = vpop.permute.xlu1 %2777 }
 0x418   : > { %v2782_v18 = vadd.f32 %v2778_v48, %v2768_v38  ;;  %v2868_v38 = vmul.f32 %v4303_v40, %v2866_v54  ;;  %v3253_v48 = vstv %s6549_s6  ;;  %v3328_v54 = vstv %s6598_s22  ;;  %s6689_s6 = sld [smem:[#allocation3 + $0x10e]] }
 0x419   : > { %v3255_v25 = vmul.f32 %v3253_v48, %v6334_v1  ;;  %v3254_v42 = vmul.f32 %v3253_v48, %v6355_v5  ;;  %v6636_v48 = vld [vmem:[#allocation2 + $0xb0] sm:$0xff]  ;;  %s6736_s22 = sld [smem:[#allocation3 + $0xc9]] }
 0x41a   : > { %v6514_v19 = vadd.f32 %v2792_v8, %v2782_v18  ;;  %v3221_v18 = vmul.f32 %v3219_v56, %v6336_v15 }
 0x41c   : > { %3156 = vrot.lane.b32.xlu2 %v3152_v35, %s4485_s8  ;;  %3170 = vrot.lane.b32.xlu1 %v3166_v7, %s4484_s23 }
 0x41d   : > { %3190 = vrot.lane.b32.xlu0 %v3186_v63, %s4485_s8 }
 0x41e   : > { %v2860_v9 = vpop.permute.xlu2 %2859 }
 0x41f   : > { %v2824_v20 = vpop.permute.xlu0 %2823  ;;  %v2810_v43 = vpop.permute.xlu1 %2809 }
 0x420   : > { %v2815_v29 = vadd.f32 %v2810_v43, %v6459_v53  ;;  %v3267_v43 = vstv %s6566_s26  ;;  %s6701_s26 = sld [smem:[#allocation3 + $0x8b]] }
 0x421   : > { %v3269_v33 = vmul.f32 %v3267_v43, %v6334_v1 }
 0x422   : > { %v2829_v3 = vadd.f32 %v2824_v20, %v2815_v29  ;;  %v3268_v29 = vmul.f32 %v3267_v43, %v6355_v5 }
 0x424   : > { %3172 = vrot.lane.b32.xlu2 %v3167_v30, %s4484_s23  ;;  %v2835_v11 = vadd.f32 %v2833_v45, %v2829_v3  ;;  %3192 = vrot.lane.b32.xlu1 %v3187_v58, %s4485_s8  ;;  %v2693_v30 = vadd.f32 %v6399_v14, %v6430_v21  ;;  %v2941_v58 = vstv %s6578_s9  ;;  %s6720_s9 = sld [smem:[#allocation3 + $0x8e]] }
 0x425   : > { %3206 = vrot.lane.b32.xlu0 %v3201_v32, %s4484_s23  ;;  %v3010_v32 = vmul.f32 %v3009_v22, %v6314_v37  ;;  %v2942_v21 = vmul.f32 %v2941_v58, %v6355_v5  ;;  %v6616_v22 = vld [vmem:[#allocation2 + $0xa8] sm:$0xff] }
 0x426   : > { %v6545_v53 = vpop.permute.xlu2 %2891  ;;  %v2849_v2 = vadd.f32 %v2844_v10, %v2835_v11 }
 0x427   : > { %v2846_v59 = vpop.permute.xlu0 %2845  ;;  %v2826_v17 = vpop.permute.xlu1 %2825 }
 0x428   : > { %v2830_v0 = vadd.f32 %v2826_v17, %v2816_v23 }
 0x42a   : > { %v2836_v49 = vadd.f32 %v2834_v50, %v2830_v0 }
 0x42c   : > { %v2850_v46 = vadd.f32 %v2846_v59, %v2836_v49  ;;  %3204 = vrot.lane.b32.xlu2 %v3200_v13, %s4484_s23  ;;  %3224 = vrot.lane.b32.xlu1 %v3220_v31, %s4485_s8  ;;  %v6600_v59 = vadd.f32 %v3010_v32, %v2693_v30  ;;  %v3342_v13 = vstv %s6595_s11  ;;  %v3396_v30 = vstv %s6644_s0  ;;  %s6733_s11 = sld [smem:[#allocation3 + $0x8f]] }
 0x42d   : > { %3238 = vrot.lane.b32.xlu0 %v3234_v60, %s4484_s23  ;;  %v2943_v60 = vmul.f32 %v2941_v58, %v6334_v1  ;;  %s6768_s0 = sld [smem:[#allocation3 + $0xcc]] }
 0x42e   : > { %v2921_v23 = vpop.permute.xlu2 %2920  ;;  %v2864_v28 = vadd.f32 %v2860_v9, %v2850_v46  ;;  %v3287_v9 = vstv %s6564_s25  ;;  %v3111_v46 = vstv %s6603_s30  ;;  %s4138_s25 = sld [smem:[#allocation3 + $0x84]] }
 0x42f   : > { %v2878_v27 = vpop.permute.xlu0 %2877  ;;  %v2925_v16 = vadd.f32 %v2921_v23, %v6491_v41  ;;  %v2858_v44 = vpop.permute.xlu1 %2857  ;;  %v3288_v57 = vmul.f32 %v3287_v9, %v6357_v24  ;;  %v3289_v55 = vmul.f32 %v3287_v9, %v6377_v52  ;;  %v3330_v9 = vmul.f32 %v3328_v54, %v6636_v48  ;;  %s6752_s30 = sld [smem:[#allocation3 + $0xd1]] }
 0x430   : > { %v2863_v10 = vadd.f32 %v2858_v44, %v2849_v2  ;;  %v2870_v8 = vadd.f32 %v2868_v38, %v2864_v28  ;;  %v3301_v2 = vstv %s6581_s13  ;;  %v3329_v28 = vmul.f32 %v3328_v54, %v6616_v22  ;;  %s6723_s13 = sld [smem:[#allocation3 + $0x8c]] }
 0x431   : > { %v3303_v14 = vmul.f32 %v3301_v2, %v6377_v52  ;;  %v3302_v23 = vmul.f32 %v3301_v2, %v6357_v24  ;;  %v3113_v38 = vmul.f32 %v3111_v46, %v6336_v15 }
 0x432   : > { %v2869_v47 = vadd.f32 %v2867_v61, %v2863_v10 }
 0x434   : > { %v6572_v41 = vadd.f32 %v2878_v27, %v2869_v47  ;;  %3226 = vrot.lane.b32.xlu2 %v3221_v18, %s4485_s8  ;;  %3240 = vrot.lane.b32.xlu1 %v3235_v39, %s4484_s23  ;;  %v3343_v27 = vmul.f32 %v3342_v13, %v6616_v22  ;;  %v6638_v47 = vld [vmem:[#allocation2 + $0xb1] sm:$0xff]  ;;  %v3362_v39 = vstv %s6619_s7  ;;  %s6759_s7 = sld [smem:[#allocation3 + $0x3f]] }
 0x435   : > { %3260 = vrot.lane.b32.xlu0 %v3255_v25, %s4485_s8 }
 0x436   : > { %v2953_v35 = vpop.permute.xlu2 %2952 }
 0x437   : > { %v2894_v63 = vpop.permute.xlu0 %2893  ;;  %v2880_v7 = vpop.permute.xlu1 %2879 }
 0x438   : > { %v2884_v20 = vadd.f32 %v2880_v7, %v2870_v8  ;;  %v6634_v8 = vadd.f32 %v3113_v38, %v6514_v19 }
 0x43a   : > { %v6583_v6 = vadd.f32 %v2894_v63, %v2884_v20  ;;  %v3364_v20 = vmul.f32 %v3362_v39, %v6638_v47 }
 0x43c   : > { %3258 = vrot.lane.b32.xlu2 %v3254_v42, %s4485_s8  ;;  %3272 = vrot.lane.b32.xlu1 %v3268_v29, %s4484_s23  ;;  %v6659_v29 = vld [vmem:[#allocation2 + $0xa9] sm:$0xff] }
 0x43d   : > { %3292 = vrot.lane.b32.xlu0 %v3288_v57, %s4485_s8 }
 0x43e   : > { %v2969_v36 = vpop.permute.xlu2 %2968 }
 0x43f   : > { %v2933_v3 = vpop.permute.xlu0 %2932  ;;  %v2919_v45 = vpop.permute.xlu1 %2918 }
 0x440   : > { %v2924_v11 = vadd.f32 %v2919_v45, %v6532_v4  ;;  %v3376_v45 = vstv %s6647_s1  ;;  %s6773_s1 = sld [smem:[#allocation3 + $0x118]] }
 0x442   : > { %v2938_v17 = vadd.f32 %v2933_v3, %v2924_v11  ;;  %v3363_v11 = vmul.f32 %v3362_v39, %v6659_v29 }
 0x444   : > { %3274 = vrot.lane.b32.xlu2 %v3269_v33, %s4484_s23  ;;  %v2944_v4 = vadd.f32 %v2942_v21, %v2938_v17  ;;  %3294 = vrot.lane.b32.xlu1 %v3289_v55, %s4485_s8  ;;  %v3377_v17 = vmul.f32 %v3376_v45, %v6659_v29  ;;  %v2795_v21 = vadd.f32 %v6473_v12, %v6503_v62 }
 0x445   : > { %3308 = vrot.lane.b32.xlu0 %v3303_v14, %s4484_s23  ;;  %v3112_v55 = vmul.f32 %v3111_v46, %v6314_v37  ;;  %v3378_v12 = vmul.f32 %v3376_v45, %v6638_v47 }
 0x446   : > { %v6614_v50 = vpop.permute.xlu2 %3000  ;;  %v2958_v56 = vadd.f32 %v2953_v35, %v2944_v4  ;;  %v6678_v4 = vld [vmem:[#allocation2 + $0xb2] sm:$0xff] }
 0x447   : > { %v2955_v0 = vpop.permute.xlu0 %2954  ;;  %v2935_v49 = vpop.permute.xlu1 %2934  ;;  %v3398_v46 = vmul.f32 %v3396_v30, %v6678_v4 }
 0x448   : > { %v2939_v31 = vadd.f32 %v2935_v49, %v2925_v16  ;;  %v2975_v16 = vstv %s6612_s5  ;;  %v3043_v49 = vstv %s6664_s10  ;;  %s6755_s5 = sld [smem:[#allocation3 + $0xd0]] }
 0x449   : > { %v2977_v10 = vmul.f32 %v2975_v16, %v6377_v52  ;;  %v2976_v35 = vmul.f32 %v2975_v16, %v6357_v24  ;;  %v3044_v54 = vmul.f32 %v3043_v49, %v6355_v5  ;;  %v3045_v38 = vmul.f32 %v3043_v49, %v6334_v1  ;;  %s6794_s10 = sld [smem:[#allocation3 + $0x119]] }
 0x44a   : > { %v2945_v34 = vadd.f32 %v2943_v60, %v2939_v31  ;;  %v6687_v60 = vadd.f32 %v3112_v55, %v2795_v21  ;;  %v3498_v21 = vstv %s6720_s9  ;;  %s6840_s9 = sld [smem:[#allocation3 + $0x114]] }
 0x44c   : > { %v2959_v40 = vadd.f32 %v2955_v0, %v2945_v34  ;;  %3306 = vrot.lane.b32.xlu2 %v3302_v23, %s4484_s23  ;;  %3333 = vrot.lane.b32.xlu1 %v3329_v28, %s4485_s8 }
 0x44d   : > { %3347 = vrot.lane.b32.xlu0 %v3343_v27, %s4484_s23 }
 0x44e   : > { %v3023_v44 = vpop.permute.xlu2 %3022  ;;  %v2973_v61 = vadd.f32 %v2969_v36, %v2959_v40  ;;  %v6661_v36 = vld [vmem:[#allocation2 + $0xaa] sm:$0xff]  ;;  %v3444_v40 = vstv %s6682_s12  ;;  %s6805_s12 = sld [smem:[#allocation3 + $0x11b]] }
 0x44f   : > { %v2987_v51 = vpop.permute.xlu0 %2986  ;;  %v6641_v18 = vadd.f32 %v3023_v44, %v6561_v26  ;;  %v2967_v25 = vpop.permute.xlu1 %2966  ;;  %v3344_v26 = vmul.f32 %v3342_v13, %v6636_v48  ;;  %v3397_v2 = vmul.f32 %v3396_v30, %v6661_v36  ;;  %v3430_v44 = vstv %s6685_s14  ;;  %s6809_s14 = sld [smem:[#allocation3 + $0x111]] }
 0x450   : > { %v2972_v63 = vadd.f32 %v2967_v25, %v2958_v56  ;;  %v2979_v7 = vadd.f32 %v2977_v10, %v2973_v61  ;;  %v3410_v56 = vstv %s6657_s20  ;;  %v3445_v25 = vmul.f32 %v3444_v40, %v6616_v22  ;;  %s6787_s20 = sld [smem:[#allocation3 + $0xd3]] }
 0x451   : > { %v3412_v62 = vmul.f32 %v3410_v56, %v6678_v4  ;;  %v3411_v10 = vmul.f32 %v3410_v56, %v6661_v36  ;;  %v3431_v39 = vmul.f32 %v3430_v44, %v6616_v22 }
 0x452   : > { %v2978_v19 = vadd.f32 %v2976_v35, %v2972_v63 }
 0x454   : > { %v6652_v43 = vadd.f32 %v2987_v51, %v2978_v19  ;;  %3335 = vrot.lane.b32.xlu2 %v3330_v9, %s4485_s8  ;;  %3349 = vrot.lane.b32.xlu1 %v3344_v26, %s4484_s23  ;;  %v3213_v51 = vstv %s6689_s6  ;;  %s6821_s6 = sld [smem:[#allocation3 + $0x11c]] }
 0x455   : > { %3369 = vrot.lane.b32.xlu0 %v3364_v20, %s4485_s8  ;;  %v3215_v63 = vmul.f32 %v3213_v51, %v6336_v15 }
 0x456   : > { %v3055_v42 = vpop.permute.xlu2 %3054 }
 0x457   : > { %v3003_v57 = vpop.permute.xlu0 %3002  ;;  %v2989_v3 = vpop.permute.xlu1 %2988  ;;  %v6716_v26 = vadd.f32 %v3215_v63, %v6583_v6  ;;  %v3532_v63 = vstv %s6755_s5  ;;  %s6876_s5 = sld [smem:[#allocation3 + $0x42]] }
 0x458   : > { %v2993_v32 = vadd.f32 %v2989_v3, %v2979_v7  ;;  %v3464_v3 = vstv %s6701_s26  ;;  %s6831_s26 = sld [smem:[#allocation3 + $0x87]] }
 0x459   : > { %v3466_v6 = vmul.f32 %v3464_v3, %v6638_v47  ;;  %v3465_v49 = vmul.f32 %v3464_v3, %v6659_v29 }
 0x45a   : > { %v6667_v58 = vadd.f32 %v3003_v57, %v2993_v32 }
 0x45c   : > { %3367 = vrot.lane.b32.xlu2 %v3363_v11, %s4485_s8  ;;  %3381 = vrot.lane.b32.xlu1 %v3377_v17, %s4484_s23  ;;  %v3432_v11 = vmul.f32 %v3430_v44, %v6636_v48 }
 0x45d   : > { %3401 = vrot.lane.b32.xlu0 %v3397_v2, %s4485_s8  ;;  %v3446_v2 = vmul.f32 %v3444_v40, %v6636_v48 }
 0x45e   : > { %v3071_v33 = vpop.permute.xlu2 %3070 }
 0x45f   : > { %v3035_v14 = vpop.permute.xlu0 %3034  ;;  %v3021_v0 = vpop.permute.xlu1 %3020 }
 0x460   : > { %v3026_v13 = vadd.f32 %v3021_v0, %v6600_v59  ;;  %v3478_v0 = vstv %s6723_s13  ;;  %s6845_s13 = sld [smem:[#allocation3 + $0xd6]] }
 0x462   : > { %v3040_v31 = vadd.f32 %v3035_v14, %v3026_v13  ;;  %v3499_v13 = vmul.f32 %v3498_v21, %v6661_v36 }
 0x464   : > { %3383 = vrot.lane.b32.xlu2 %v3378_v12, %s4484_s23  ;;  %v3046_v59 = vadd.f32 %v3044_v54, %v3040_v31  ;;  %3403 = vrot.lane.b32.xlu1 %v3398_v46, %s4485_s8  ;;  %v3479_v31 = vmul.f32 %v3478_v0, %v6659_v29  ;;  %v2897_v54 = vadd.f32 %v6545_v53, %v6572_v41 }
 0x465   : > { %3417 = vrot.lane.b32.xlu0 %v3412_v62, %s4484_s23  ;;  %v3214_v46 = vmul.f32 %v3213_v51, %v6314_v37  ;;  %v3500_v41 = vmul.f32 %v3498_v21, %v6678_v4 }
 0x466   : > { %v6698_v34 = vpop.permute.xlu2 %3102  ;;  %v3060_v27 = vadd.f32 %v3055_v42, %v3046_v59 }
 0x467   : > { %v3057_v23 = vpop.permute.xlu0 %3056  ;;  %v3037_v28 = vpop.permute.xlu1 %3036  ;;  %v6757_v40 = vadd.f32 %v3214_v46, %v2897_v54 }
 0x468   : > { %v3041_v16 = vadd.f32 %v3037_v28, %v6641_v18  ;;  %v3077_v18 = vstv %s4138_s25  ;;  %s6827_s25 = sld [smem:[#allocation3 + $0xd4]] }
 0x469   : > { %v3079_v20 = vmul.f32 %v3077_v18, %v6377_v52  ;;  %v3078_v30 = vmul.f32 %v3077_v18, %v6357_v24  ;;  %v3322_v18 = vstv %s6759_s7  ;;  %s6893_s7 = sld [smem:[#allocation3 + $0xcf]] }
 0x46a   : > { %v3047_v61 = vadd.f32 %v3045_v38, %v3041_v16  ;;  %v3480_v16 = vmul.f32 %v3478_v0, %v6638_v47  ;;  %v3324_v3 = vmul.f32 %v3322_v18, %v6636_v48 }
 0x46c   : > { %v3061_v35 = vadd.f32 %v3057_v23, %v3047_v61  ;;  %3415 = vrot.lane.b32.xlu2 %v3411_v10, %s4484_s23  ;;  %3435 = vrot.lane.b32.xlu1 %v3431_v39, %s4485_s8  ;;  %v3512_v23 = vstv %s6733_s11  ;;  %s6861_s11 = sld [smem:[#allocation3 + $0xd7]] }
 0x46d   : > { %3449 = vrot.lane.b32.xlu0 %v3445_v25, %s4484_s23  ;;  %v3514_v53 = vmul.f32 %v3512_v23, %v6678_v4  ;;  %v3546_v25 = vstv %s6752_s30  ;;  %s6873_s30 = sld [smem:[#allocation3 + $0x11f]] }
 0x46e   : > { %v3125_v7 = vpop.permute.xlu2 %3124  ;;  %v3075_v9 = vadd.f32 %v3071_v33, %v3061_v35 }
 0x46f   : > { %v3089_v19 = vpop.permute.xlu0 %3088  ;;  %v3129_v42 = vadd.f32 %v3125_v7, %v6634_v8  ;;  %v3069_v57 = vpop.permute.xlu1 %3068 }
 0x470   : > { %v3074_v15 = vadd.f32 %v3069_v57, %v3060_v27  ;;  %v3081_v32 = vadd.f32 %v3079_v20, %v3075_v9  ;;  %v3145_v27 = vstv %s6736_s22  ;;  %v3547_v9 = vmul.f32 %v3546_v25, %v6616_v22  ;;  %s6863_s22 = sld [smem:[#allocation3 + $0x11e]] }
 0x471   : > { %v3146_v37 = vmul.f32 %v3145_v27, %v6355_v5  ;;  %v3147_v39 = vmul.f32 %v3145_v27, %v6334_v1  ;;  %v3533_v20 = vmul.f32 %v3532_v63, %v6616_v22  ;;  %v3179_v1 = vstv %s6768_s0  ;;  %s4165_s0 = sld [smem:[#allocation3 + $0x45]] }
 0x472   : > { %v3080_v45 = vadd.f32 %v3078_v30, %v3074_v15 }
 0x474   : > { %v6728_v8 = vadd.f32 %v3089_v19, %v3080_v45  ;;  %3437 = vrot.lane.b32.xlu2 %v3432_v11, %s4485_s8  ;;  %3451 = vrot.lane.b32.xlu1 %v3446_v2, %s4484_s23  ;;  %v3513_v19 = vmul.f32 %v3512_v23, %v6661_v36  ;;  %v6790_v45 = vadd.f32 %v3324_v3, %v6667_v58  ;;  %v3634_v2 = vstv %s6773_s1  ;;  %s6914_s1 = scalar_lea.vmem [#allocation12], %s4650_s29  ;;  %s4174_s29 = sld [smem:[#allocation3 + $0x8d]] }
 0x475   : > { %3471 = vrot.lane.b32.xlu0 %v3466_v6, %s4485_s8  ;;  %v3548_v58 = vmul.f32 %v3546_v25, %v6636_v48 }
 0x476   : > { %v3157_v17 = vpop.permute.xlu2 %3156 }
 0x477   : > { %v3105_v33 = vpop.permute.xlu0 %3104  ;;  %v3091_v14 = vpop.permute.xlu1 %3090 }
 0x478   : > { %v3095_v55 = vadd.f32 %v3091_v14, %v3081_v32  ;;  %v3181_v32 = vmul.f32 %v3179_v1, %v6377_v52  ;;  %v3534_v52 = vmul.f32 %v3532_v63, %v6636_v48 }
 0x47a   : > { %v6739_v56 = vadd.f32 %v3105_v33, %v3095_v55  ;;  %v3635_v55 = vmul.f32 %v3634_v2, %v6616_v22 }
 0x47c   : > { %3469 = vrot.lane.b32.xlu2 %v3465_v49, %s4485_s8  ;;  %3483 = vrot.lane.b32.xlu1 %v3479_v31, %s4484_s23  ;;  %v3648_v31 = vstv %s6794_s10  ;;  %s4195_s10 = sld [smem:[#allocation7 + $0x1]] }
 0x47d   : > { %3503 = vrot.lane.b32.xlu0 %v3499_v13, %s4485_s8  ;;  %v3566_v13 = vstv %s6787_s20  ;;  %v3650_v46 = vmul.f32 %v3648_v31, %v6636_v48  ;;  %s4186_s20 = sld [smem:[#allocation3 + $0x117]] }
 0x47e   : > { %v3173_v12 = vpop.permute.xlu2 %3172  ;;  %v3567_v54 = vmul.f32 %v3566_v13, %v6659_v29 }
 0x47f   : > { %v3137_v62 = vpop.permute.xlu0 %3136  ;;  %v3123_v59 = vpop.permute.xlu1 %3122 }
 0x480   : > { %v3128_v28 = vadd.f32 %v3123_v59, %v6687_v60  ;;  %v3636_v59 = vmul.f32 %v3634_v2, %v6636_v48 }
 0x482   : > { %v3142_v38 = vadd.f32 %v3137_v62, %v3128_v28 }
 0x484   : > { %3485 = vrot.lane.b32.xlu2 %v3480_v16, %s4484_s23  ;;  %v3148_v60 = vadd.f32 %v3146_v37, %v3142_v38  ;;  %3505 = vrot.lane.b32.xlu1 %v3500_v41, %s4485_s8  ;;  %v3668_v38 = vstv %s6805_s12  ;;  %v3247_v16 = vstv %s6809_s14  ;;  %v3006_v37 = vadd.f32 %v6614_v50, %v6652_v43  ;;  %s4180_s12 = sld [smem:[#allocation3 + $0xd2]] }
 0x485   : > { %3519 = vrot.lane.b32.xlu0 %v3514_v53, %s4484_s23  ;;  %v3323_v53 = vmul.f32 %v3322_v18, %v6616_v22  ;;  %v3248_v25 = vmul.f32 %v3247_v16, %v6355_v5  ;;  %v3682_v18 = vstv %s6821_s6  ;;  %v4305_v5 = vld [vmem:[#allocation2 + $0x99] sm:$0xff]  ;;  %v3669_v3 = vmul.f32 %v3668_v38, %v6659_v29  ;;  %s4189_s14 = sld [smem:[#allocation3 + $0x11a]] }
 0x486   : > { %v6770_v44 = vpop.permute.xlu2 %3204  ;;  %v3162_v61 = vadd.f32 %v3157_v17, %v3148_v60  ;;  %v3180_v17 = vmul.f32 %v3179_v1, %v6357_v24  ;;  %v3683_v1 = vmul.f32 %v3682_v18, %v6659_v29  ;;  %s4183_s6 = sld [smem:[#allocation3 + $0xd5]] }
 0x487   : > { %v3159_v51 = vpop.permute.xlu0 %3158  ;;  %v3139_v10 = vpop.permute.xlu1 %3138  ;;  %v6829_v60 = vadd.f32 %v3323_v53, %v3006_v37 }
 0x488   : > { %v3143_v35 = vadd.f32 %v3139_v10, %v3129_v42  ;;  %v3670_v10 = vmul.f32 %v3668_v38, %v6638_v47 }
 0x48a   : > { %v3149_v7 = vadd.f32 %v3147_v39, %v3143_v35  ;;  %v3568_v39 = vmul.f32 %v3566_v13, %v6638_v47 }
 0x48c   : > { %v3163_v57 = vadd.f32 %v3159_v51, %v3149_v7  ;;  %3517 = vrot.lane.b32.xlu2 %v3513_v19, %s4484_s23  ;;  %3537 = vrot.lane.b32.xlu1 %v3533_v20, %s4485_s8  ;;  %v3249_v7 = vmul.f32 %v4305_v5, %v3247_v16  ;;  %v3424_v20 = vstv %s6831_s26  ;;  %s6945_s26 = sld [smem:[#allocation7 + $0x2]] }
 0x48d   : > { %3551 = vrot.lane.b32.xlu0 %v3547_v9, %s4484_s23  ;;  %v3580_v9 = vstv %s6827_s25  ;;  %s4192_s25 = sld [smem:[#allocation3 + $0x11d]] }
 0x48e   : > { %v3227_v42 = vpop.permute.xlu2 %3226  ;;  %v3177_v15 = vadd.f32 %v3173_v12, %v3163_v57  ;;  %v3582_v13 = vmul.f32 %v3580_v9, %v6638_v47 }
 0x48f   : > { %v3191_v30 = vpop.permute.xlu0 %3190  ;;  %v3231_v11 = vadd.f32 %v3227_v42, %v6716_v26  ;;  %v3171_v6 = vpop.permute.xlu1 %3170  ;;  %v3581_v42 = vmul.f32 %v3580_v9, %v6659_v29 }
 0x490   : > { %v3176_v33 = vadd.f32 %v3171_v6, %v3162_v61  ;;  %v3183_v14 = vadd.f32 %v3181_v32, %v3177_v15  ;;  %v3649_v61 = vmul.f32 %v3648_v31, %v6616_v22  ;;  %v3426_v15 = vmul.f32 %v3424_v20, %v6636_v48 }
 0x491   : > { %v3281_v32 = vstv %s6840_s9  ;;  %s4201_s9 = sld [smem:[#allocation7 + $0x3]] }
 0x492   : > { %v3182_v21 = vadd.f32 %v3180_v17, %v3176_v33  ;;  %v4306_v17 = vld [vmem:[#allocation2 + $0x9a] sm:$0xff] }
 0x493   : > { %v3283_v33 = vmul.f32 %v4306_v17, %v3281_v32 }
 0x494   : > { %v6800_v0 = vadd.f32 %v3191_v30, %v3182_v21  ;;  %3539 = vrot.lane.b32.xlu2 %v3534_v52, %s4485_s8  ;;  %3553 = vrot.lane.b32.xlu1 %v3548_v58, %s4484_s23  ;;  %v3600_v52 = vstv %s6845_s13  ;;  %s4211_s13 = sshll.u32 %s4534_s19, 6  ;;  %s3770_s19 = sshll.u32 %s6914_s1, 4  ;;  %s3771_s19 = int_to_ptr.vmem [resolvable:$true] %s3770_s19 }
 0x495   : > { %3639 = vrot.lane.b32.xlu0 %v3635_v55, %s4485_s8  ;;  %v4307_v55 = vld [vmem:[#allocation2 + $0x92] sm:$0xff]  ;;  %v3602_v31 = vmul.f32 %v3600_v52, %v6678_v4  ;;  %v3601_v16 = vmul.f32 %v3600_v52, %v6661_v36 }
 0x496   : > { %v3259_v26 = vpop.permute.xlu2 %3258  ;;  %v3282_v58 = vmul.f32 %v4307_v55, %v3281_v32 }
 0x497   : > { %v3207_v24 = vpop.permute.xlu0 %3206  ;;  %v3193_v49 = vpop.permute.xlu1 %3192 }
 0x498   : > { %v3197_v12 = vadd.f32 %v3193_v49, %v3183_v14  ;;  %v6858_v14 = vadd.f32 %v3426_v15, %v6739_v56  ;;  %v3684_v56 = vmul.f32 %v3682_v18, %v6638_v47  ;;  %v3390_v15 = vstv %s4165_s0 }
 0x499   : > { %v3391_v55 = vmul.f32 %v3390_v15, %v6661_v36 }
 0x49a   : > { %v6811_v62 = vadd.f32 %v3207_v24, %v3197_v12 }
 0x49c   : > { %3571 = vrot.lane.b32.xlu2 %v3567_v54, %s4485_s8  ;;  %3641 = vrot.lane.b32.xlu1 %v3636_v59, %s4485_s8 }
 0x49d   : > { %3655 = vrot.lane.b32.xlu0 %v3650_v46, %s4484_s23 }
 0x49e   : > { %v3275_v23 = vpop.permute.xlu2 %3274 }
 0x49f   : > { %v3239_v27 = vpop.permute.xlu0 %3238  ;;  %v3225_v28 = vpop.permute.xlu1 %3224 }
 0x4a0   : > { %v3230_v41 = vadd.f32 %v3225_v28, %v6757_v40  ;;  %v3702_v28 = vstv %s6863_s22 }
 0x4a1   : > { %v3703_v37 = vmul.f32 %v3702_v28, %v6661_v36  ;;  %v3704_v18 = vmul.f32 %v3702_v28, %v6678_v4 }
 0x4a2   : > { %v3244_v51 = vadd.f32 %v3239_v27, %v3230_v41 }
 0x4a4   : > { %3653 = vrot.lane.b32.xlu2 %v3649_v61, %s4484_s23  ;;  %v3250_v50 = vadd.f32 %v3248_v25, %v3244_v51  ;;  %3573 = vrot.lane.b32.xlu1 %v3568_v39, %s4485_s8  ;;  %v3108_v61 = vadd.f32 %v6698_v34, %v6728_v8  ;;  %v3716_v39 = vstv %s6873_s30  ;;  %s3769_s30 = scalar_lea.hbm %s6995_s4, %s4211_s13 }
 0x4a5   : > { %3675 = vrot.lane.b32.xlu0 %v3670_v10, %s4485_s8  ;;  %v3425_v10 = vmul.f32 %v3424_v20, %v6616_v22  ;;  %v3718_v5 = vmul.f32 %v3716_v39, %v6678_v4 }
 0x4a6   : > { %v6842_v43 = vpop.permute.xlu2 %3306  ;;  %v3264_v35 = vadd.f32 %v3259_v26, %v3250_v50  ;;  %v3356_v50 = vstv %s6876_s5  ;;  %s3772_s5 = sshll.u32 %s3769_s30, 4  ;;  %s3773_s5 = int_to_ptr.hbm [resolvable:$true] %s3772_s5 }
 0x4a7   : > { %v3261_v40 = vpop.permute.xlu0 %3260  ;;  %v3241_v63 = vpop.permute.xlu1 %3240  ;;  %s4412_s0 = sshra.s32 %s3773_s5, 4  ;;  %s4413_s0 = int_to_ptr.hbm [resolvable:$true] %s4412_s0 }
 0x4a8   : > { %v3245_v19 = vadd.f32 %v3241_v63, %v3231_v11  ;;  %p4419_p7 = scmp.lt.s32.totalorder %s4413_s0, %s6995_s4 }
 0x4aa   : > { %v3251_v57 = vadd.f32 %v3249_v7, %v3245_v19  ;;  %v3357_v7 = vmul.f32 %v3356_v50, %v6659_v29 }
 0x4ac   : > { %v3265_v30 = vadd.f32 %v3261_v40, %v3251_v57  ;;  %3673 = vrot.lane.b32.xlu2 %v3669_v3, %s4485_s8  ;;  %3585 = vrot.lane.b32.xlu1 %v3581_v42, %s4484_s23  ;;  %v3358_v57 = vmul.f32 %v3356_v50, %v6638_v47  ;;  %v3628_v50 = vstv %s4186_s20 }
 0x4ad   : > { %3687 = vrot.lane.b32.xlu0 %v3683_v1, %s4484_s23  ;;  %v3526_v1 = vstv %s6893_s7  ;;  %s3758_s7 = scalar_lea.sflag [#allocation5], %s4647_s24 }
 0x4ae   : > { %v3336_v11 = vpop.permute.xlu2 %3335  ;;  %v3279_v2 = vadd.f32 %v3275_v23, %v3265_v30  ;;  %v3614_v23 = vstv %s6861_s11  ;;  %v3717_v30 = vmul.f32 %v3716_v39, %v6661_v36 }
 0x4af   : > { %v3293_v6 = vpop.permute.xlu0 %3292  ;;  %v3273_v21 = vpop.permute.xlu1 %3272  ;;  %v3615_v53 = vmul.f32 %v3614_v23, %v6661_v36  ;;  %v3616_v34 = vmul.f32 %v3614_v23, %v6678_v4 }
 0x4b0   : > { %v3278_v26 = vadd.f32 %v3273_v21, %v3264_v35  ;;  %v3285_v24 = vadd.f32 %v3283_v33, %v3279_v2  ;;  %v3427_v35 = vadd.f32 %v3425_v10, %v3108_v61  ;;  %v3392_v33 = vmul.f32 %v3390_v15, %v6678_v4 }
 0x4b2   : > { %v3284_v49 = vadd.f32 %v3282_v58, %v3278_v26 }
 0x4b4   : > { %v6868_v12 = vadd.f32 %v3293_v6, %v3284_v49  ;;  %3587 = vrot.lane.b32.xlu2 %v3582_v13, %s4484_s23  ;;  %3689 = vrot.lane.b32.xlu1 %v3684_v56, %s4484_s23  ;;  %v3528_v6 = vmul.f32 %v3526_v1, %v6636_v48 }
 0x4b5   : > { %3607 = vrot.lane.b32.xlu0 %v3602_v31, %s4485_s8 }
 0x4b6   : > { %v3368_v54 = vpop.permute.xlu2 %3367  ;;  %v6910_v21 = vadd.f32 %v3528_v6, %v6811_v62 }
 0x4b7   : > { %v3309_v46 = vpop.permute.xlu0 %3308  ;;  %v3295_v59 = vpop.permute.xlu1 %3294 }
 0x4b8   : > { %v3299_v27 = vadd.f32 %v3295_v59, %v3285_v24 }
 0x4ba   : > { %v6879_v38 = vadd.f32 %v3309_v46, %v3299_v27 }
 0x4bc   : > { %3605 = vrot.lane.b32.xlu2 %v3601_v16, %s4485_s8  ;;  %3707 = vrot.lane.b32.xlu1 %v3703_v37, %s4485_s8  ;;  %v3527_v37 = vmul.f32 %v3526_v1, %v6616_v22 }
 0x4bd   : > { %3619 = vrot.lane.b32.xlu0 %v3615_v53, %s4484_s23  ;;  %v3210_v53 = vadd.f32 %v6770_v44, %v6800_v0  ;;  %v3312_v44 = vadd.f32 %v6842_v43, %v6868_v12 }
 0x4be   : > { %v3384_v41 = vpop.permute.xlu2 %3383 }
 0x4bf   : > { %v3348_v51 = vpop.permute.xlu0 %3347  ;;  %v3334_v25 = vpop.permute.xlu1 %3333  ;;  %v3529_v10 = vadd.f32 %v3527_v37, %v3210_v53 }
 0x4c0   : > { %v3339_v40 = vadd.f32 %v3334_v25, %v6829_v60  ;;  %v3340_v60 = vadd.f32 %v3336_v11, %v6790_v45 }
 0x4c2   : > { %v3353_v63 = vadd.f32 %v3348_v51, %v3339_v40 }
 0x4c4   : > { %3709 = vrot.lane.b32.xlu2 %v3704_v18, %s4485_s8  ;;  %v3359_v8 = vadd.f32 %v3357_v7, %v3353_v63  ;;  %3621 = vrot.lane.b32.xlu1 %v3616_v34, %s4484_s23  ;;  %s3729_s8 = sld [smem:[#allocation7]]  ;;  %v3629_v7 = vmul.f32 %v3628_v50, %v6616_v22 }
 0x4c5   : > { %3723 = vrot.lane.b32.xlu0 %v3718_v5, %s4484_s23 }
 0x4c6   : > { %v3416_v19 = vpop.permute.xlu2 %3415  ;;  %v3373_v45 = vadd.f32 %v3368_v54, %v3359_v8  ;;  %v3631_v8 = vadd.f32 %v3629_v7, %v3312_v44  ;;  %v3594_v7 = vstv %s4183_s6 }
 0x4c7   : > { %v3370_v9 = vpop.permute.xlu0 %3369  ;;  %v3350_v20 = vpop.permute.xlu1 %3349 }
 0x4c8   : > { %v3354_v3 = vadd.f32 %v3350_v20, %v3340_v60  ;;  %v3630_v20 = vmul.f32 %v3628_v50, %v6636_v48 }
 0x4ca   : > { %v3360_v42 = vadd.f32 %v3358_v57, %v3354_v3  ;;  %v3730_v13 = vstv %s3729_s8  ;;  %s4414_s8 = scalar_lea.hbm %s4413_s0, 64 }
 0x4cb   : > { %p4415_p4 = scmp.ne.s32.totalorder %s4413_s0, %s4414_s8 }
 0x4cc   : > { %v3374_v32 = vadd.f32 %v3370_v9, %v3360_v42  ;;  %3721 = vrot.lane.b32.xlu2 %v3717_v30, %s4484_s23  ;;  %s4171_s23 = sld [smem:[#allocation3 + $0x8a]]  ;;  %v3632_v42 = vadd.f32 %v3630_v20, %v6879_v38 }
 0x4cd   : > { %p4416_p6 = pnand %p4415_p4, %p4565_p11 }
 0x4ce   : > { %v3438_v2 = vpop.permute.xlu2 %3437  ;;  %v3388_v11 = vadd.f32 %v3384_v41, %v3374_v32 }
 0x4cf   : > { %v3402_v17 = vpop.permute.xlu0 %3401  ;;  %v3382_v52 = vpop.permute.xlu1 %3381  ;;  %v3442_v63 = vadd.f32 %v3438_v2, %v6858_v14  ;;  %v3737_v2 = vstv %s4195_s10  ;;  %p4417_p13 = pneg %p4416_p6 }
 0x4d0   : > { %v3387_v58 = vadd.f32 %v3382_v52, %v3373_v45  ;;  %v3394_v26 = vadd.f32 %v3392_v33, %v3388_v11 }
 0x4d2   : > { %v3393_v24 = vadd.f32 %v3391_v55, %v3387_v58  ;;  %v3458_v51 = vstv %s4171_s23 }
 0x4d3   : > { %v3459_v39 = vmul.f32 %v3458_v51, %v6659_v29  ;;  %v3460_v34 = vmul.f32 %v3458_v51, %v6638_v47 }
 0x4d4   : > { %v3407_v49 = vadd.f32 %v3402_v17, %v3393_v24 }
 0x4d6   : > { %v3421_v31 = vadd.f32 %v3416_v19, %v3407_v49  ;;  %v3470_v56 = vpop.permute.xlu2 %3469  ;;  %v3492_v19 = vstv %s4174_s29  ;;  %v3560_v49 = vstv %s4180_s12  ;;  %s4418_s29 = scalar_lea.hbm %s6995_s4, 128 }
 0x4d7   : > { %v3418_v46 = vpop.permute.xlu0 %3417  ;;  %v3404_v54 = vpop.permute.xlu1 %3403  ;;  %v3494_v22 = vmul.f32 %v3492_v19, %v6678_v4  ;;  %v3493_v12 = vmul.f32 %v3492_v19, %v6661_v36  ;;  %p4420_p8 = scmp.lt.s32.totalorder %s4418_s29, %s4414_s8 }
 0x4d8   : > { %v3408_v59 = vadd.f32 %v3404_v54, %v3394_v26  ;;  %v3731_v23 = vadd.f32 %v3730_v13, %v3421_v31 }
 0x4d9   : > { %p4421_p0 = por %p4420_p8, %p4419_p7 }
 0x4da   : > { %v3422_v27 = vadd.f32 %v3418_v46, %v3408_v59  ;;  %3734 = vst.msk [vmem:[%s6914_s1] sm:$0xff] %vm3733_vm3, %v3731_v23  ;;  %v3662_v23 = vstv %s4189_s14 }
 0x4db   : > { %p4422_p5 = pnand %p4421_p0, %p4417_p13 }
 0x4dc   : > { %v3732_v62 = vadd.f32 %v3730_v13, %v3422_v27 }
 0x4de   : > { %3735 = vst.msk [vmem:[%s6914_s1 + $0x8] sm:$0xff] %vm3733_vm3, %v3732_v62  ;;  %v3486_v28 = vpop.permute.xlu2 %3485 }
 0x4df   : > { %v3450_v16 = vpop.permute.xlu0 %3449  ;;  %v3436_v41 = vpop.permute.xlu1 %3435 }
 0x4e0   : > { %v3441_v61 = vadd.f32 %v3436_v41, %v3427_v35  ;;  %v3663_v41 = vmul.f32 %v3662_v23, %v6659_v29 }
 0x4e2   : > { %v3455_v25 = vadd.f32 %v3450_v16, %v3441_v61  ;;  %v3562_v16 = vmul.f32 %v3560_v49, %v6638_v47 }
 0x4e4   : > { %v3461_v40 = vadd.f32 %v3459_v39, %v3455_v25 }
 0x4e6   : > { %v3518_v18 = vpop.permute.xlu2 %3517  ;;  %v3475_v3 = vadd.f32 %v3470_v56, %v3461_v40  ;;  %v3561_v56 = vmul.f32 %v3560_v49, %v6659_v29 }
 0x4e7   : > { %v3472_v5 = vpop.permute.xlu0 %3471  ;;  %v3452_v0 = vpop.permute.xlu1 %3451 }
 0x4e8   : > { %v3456_v35 = vadd.f32 %v3452_v0, %v3442_v63 }
 0x4ea   : > { %v3462_v60 = vadd.f32 %v3460_v34, %v3456_v35  ;;  %v3596_v34 = vmul.f32 %v3594_v7, %v6678_v4  ;;  %v3696_v35 = vstv %s4192_s25 }
 0x4ec   : > { %v3476_v9 = vadd.f32 %v3472_v5, %v3462_v60 }
 0x4ee   : > { %v3540_v57 = vpop.permute.xlu2 %3539  ;;  %v3490_v1 = vadd.f32 %v3486_v28, %v3476_v9 }
 0x4ef   : > { %v3504_v14 = vpop.permute.xlu0 %3503  ;;  %v3484_v43 = vpop.permute.xlu1 %3483  ;;  %v3544_v54 = vadd.f32 %v3540_v57, %v6910_v21  ;;  %v3664_v21 = vmul.f32 %v3662_v23, %v6638_v47  ;;  %v3697_v47 = vmul.f32 %v3696_v35, %v6661_v36 }
 0x4f0   : > { %v3489_v30 = vadd.f32 %v3484_v43, %v3475_v3  ;;  %v3496_v15 = vadd.f32 %v3494_v22, %v3490_v1 }
 0x4f2   : > { %v3495_v32 = vadd.f32 %v3493_v12, %v3489_v30 }
 0x4f4   : > { %v3509_v6 = vadd.f32 %v3504_v14, %v3495_v32  ;;  %v3595_v14 = vmul.f32 %v3594_v7, %v6661_v36 }
 0x4f6   : > { %v3523_v48 = vadd.f32 %v3518_v18, %v3509_v6  ;;  %v3572_v17 = vpop.permute.xlu2 %3571 }
 0x4f7   : > { %v3520_v45 = vpop.permute.xlu0 %3519  ;;  %v3506_v11 = vpop.permute.xlu1 %3505 }
 0x4f8   : > { %v3738_v33 = vadd.f32 %v3737_v2, %v3523_v48  ;;  %v3510_v52 = vadd.f32 %v3506_v11, %v3496_v15  ;;  %v3698_v15 = vmul.f32 %v3696_v35, %v6678_v4  ;;  %v3744_v48 = vstv %s6945_s26 }
 0x4fa   : > { %v3524_v55 = vadd.f32 %v3520_v45, %v3510_v52  ;;  %4196 = vst.msk [vmem:[%s6914_s1 + $0x10] sm:$0xff] %vm3733_vm3, %v3738_v33 }
 0x4fc   : > { %v3739_v38 = vadd.f32 %v3737_v2, %v3524_v55  ;;  %v3751_v55 = vstv %s4201_s9 }
 0x4fe   : > { %4197 = vst.msk [vmem:[%s6914_s1 + $0x18] sm:$0xff] %vm3733_vm3, %v3739_v38  ;;  %v3654_v26 = vpop.permute.xlu2 %3653 }
 0x4ff   : > { %v3552_v58 = vpop.permute.xlu0 %3551  ;;  %v3538_v24 = vpop.permute.xlu1 %3537 }
 0x500   : > { %v3543_v13 = vadd.f32 %v3538_v24, %v3529_v10 }
 0x502   : > { %v3557_v31 = vadd.f32 %v3552_v58, %v3543_v13 }
 0x504   : > { %v3563_v46 = vadd.f32 %v3561_v56, %v3557_v31 }
 0x506   : > { %v3674_v53 = vpop.permute.xlu2 %3673  ;;  %v3577_v9 = vadd.f32 %v3572_v17, %v3563_v46 }
 0x507   : > { %v3640_v59 = vpop.permute.xlu0 %3639  ;;  %v3554_v62 = vpop.permute.xlu1 %3553 }
 0x508   : > { %v3645_v27 = vadd.f32 %v3640_v59, %v3631_v8  ;;  %v3558_v28 = vadd.f32 %v3554_v62, %v3544_v54 }
 0x50a   : > { %v3659_v37 = vadd.f32 %v3654_v26, %v3645_v27  ;;  %v3564_v51 = vadd.f32 %v3562_v16, %v3558_v28 }
 0x50c   : > { %v3665_v61 = vadd.f32 %v3663_v41, %v3659_v37 }
 0x50e   : > { %v3588_v40 = vpop.permute.xlu2 %3587  ;;  %v3679_v60 = vadd.f32 %v3674_v53, %v3665_v61 }
 0x50f   : > { %v3656_v10 = vpop.permute.xlu0 %3655  ;;  %v3642_v25 = vpop.permute.xlu1 %3641 }
 0x510   : > { %v3646_v39 = vadd.f32 %v3642_v25, %v3632_v42 }
 0x512   : > { %v3660_v50 = vadd.f32 %v3656_v10, %v3646_v39 }
 0x514   : > { %v3666_v63 = vadd.f32 %v3664_v21, %v3660_v50 }
 0x516   : > { %v3606_v8 = vpop.permute.xlu2 %3605 }
 0x517   : > { %v3676_v18 = vpop.permute.xlu0 %3675  ;;  %v3574_v5 = vpop.permute.xlu1 %3573 }
 0x518   : > { %v3578_v44 = vadd.f32 %v3574_v5, %v3564_v51  ;;  %v3680_v42 = vadd.f32 %v3676_v18, %v3666_v63 }
 0x51a   : > { %v3592_v0 = vadd.f32 %v3588_v40, %v3578_v44 }
 0x51c   : > { %v3598_v29 = vadd.f32 %v3596_v34, %v3592_v0 }
 0x51e   : > { %v3710_v12 = vpop.permute.xlu2 %3709 }
 0x51f   : > { %v3688_v19 = vpop.permute.xlu0 %3687  ;;  %v3586_v57 = vpop.permute.xlu1 %3585 }
 0x520   : > { %v3693_v20 = vadd.f32 %v3688_v19, %v3679_v60  ;;  %v3591_v3 = vadd.f32 %v3586_v57, %v3577_v9 }
 0x522   : > { %v3699_v1 = vadd.f32 %v3697_v47, %v3693_v20  ;;  %v3597_v22 = vadd.f32 %v3595_v14, %v3591_v3 }
 0x524   : > { %v3611_v2 = vadd.f32 %v3606_v8, %v3597_v22 }
 0x526   : > { %v3722_v33 = vpop.permute.xlu2 %3721 }
 0x527   : > { %v3608_v43 = vpop.permute.xlu0 %3607  ;;  %v3690_v30 = vpop.permute.xlu1 %3689 }
 0x528   : > { %v3694_v32 = vadd.f32 %v3690_v30, %v3680_v42  ;;  %v3612_v26 = vadd.f32 %v3608_v43, %v3598_v29 }
 0x52a   : > { %v3700_v6 = vadd.f32 %v3698_v15, %v3694_v32 }
 0x52c   : > { %v3714_v58 = vadd.f32 %v3710_v12, %v3700_v6 }
 0x52f   : > { %v3620_v36 = vpop.permute.xlu0 %3619  ;;  %v3708_v45 = vpop.permute.xlu1 %3707 }
 0x530   : > { %v3625_v17 = vadd.f32 %v3620_v36, %v3611_v2  ;;  %v3713_v11 = vadd.f32 %v3708_v45, %v3699_v1 }
 0x532   : > { %v3745_v52 = vadd.f32 %v3744_v48, %v3625_v17  ;;  %v3727_v38 = vadd.f32 %v3722_v33, %v3713_v11 }
 0x534   : > { %4199 = vst.msk [vmem:[%s6914_s1 + $0x20] sm:$0xff] %vm3733_vm3, %v3745_v52  ;;  %v3752_v4 = vadd.f32 %v3751_v55, %v3727_v38 }
 0x536   : > { %4202 = vst.msk [vmem:[%s6914_s1 + $0x30] sm:$0xff] %vm3733_vm3, %v3752_v4 }
 0x537   : > { %v3724_v24 = vpop.permute.xlu0 %3723  ;;  %v3622_v13 = vpop.permute.xlu1 %3621 }
 0x538   : > { %v3728_v49 = vadd.f32 %v3724_v24, %v3714_v58  ;;  %v3626_v31 = vadd.f32 %v3622_v13, %v3612_v26 }
 0x53a   : > { %v3753_v56 = vadd.f32 %v3751_v55, %v3728_v49  ;;  %v3746_v46 = vadd.f32 %v3744_v48, %v3626_v31 }
 0x53c   : > { %4203 = vst.msk [vmem:[%s6914_s1 + $0x38] sm:$0xff] %vm3733_vm3, %v3753_v56 }
 0x53d   : > { %4200 = vst.msk [vmem:[%s6914_s1 + $0x28] sm:$0xff] %vm3733_vm3, %v3746_v46 }
 0x53e   : > { %4425 = shalt.err (!%p4422_p5)
}
 0x53f   : > { %s4486_s24 = smov 128   ;;  %s4487_s1 = smov 8  }
 0x540   : > { %4224 = dma.vmem_to_hbm [thread:$0]  (%p4565_p11), %s3771_s19, 1024, %s3773_s5, %s3758_s7, %s4486_s24, %s4486_s24, %s4487_s1  }
 0x541 PF: > { %s3787_s14 = sand.u32 1, %s4464_s15   ;;  %p7009_p9 = scmp.ge.s32.totalorder %s4476_s18, 2 }
 0x542   : > { %s3788_s6 = scalar_lea.sflag [#allocation5], %s3787_s14 }
 0x543   : > { %p4241_p10 = pnand %p7009_p9, %p4569_p12 }
 0x545   : > { %p4242_p1 = pneg %p4241_p10 }
 0x547   : > { %4459 = dma.done.wait (%p4242_p1), %s3788_s6, 1024  }
 0x548   : > { %4461 = vsyncadd (%p4242_p1), %s3788_s6, 4294966272  ;;  %s7010_s25 = sld [smem:[#allocation18_spill]]  ;;  %p22_p2 = scmp.ge.s32.totalorder %s4538_s21, 4  }
 0x549   : > { %s7011_s15 = smov %s4468_s16  ;;  %s7012_s16 = smov %s4472_s17 }
 0x54a   : > { %s7014_s18 = smov %s4538_s21  ;;  %24 = sbr.rel (!%p22_p2) target bundleno = 12 (0xc), region = 113 }
 0x54e   : > { %s7013_s17 = smov %s7010_s25 }
 0x54f   :  { %3794 = vsyncpa [#allocation4], 1 }
 0x550   :  { %3796 = vsyncpa [#allocation4 + $0x1], 1 }
 0x551   :  { %3797 = vsyncpa [#allocation11], 1 }
 0x552   :  { %3799 = vsyncpa [#allocation11 + $0x1], 1 }
 0x553   :  { %3800 = vsyncpa [#allocation5], 1 }
 0x554   :  { %3802 = vsyncpa [#allocation5 + $0x1], 1 }
 0x555   :  { %3803 = vsyncpa [#allocation6], 1 }
 0x556   :  { %3805 = vsyncpa [#allocation6 + $0x1], 1 }
 0x557   :  { %3806 = vsyncpa [#allocation8], 1 }

</bundles_post_ra>
